<compile_context>
chip_gen: v7x
topology: tpu7x:2x2x1
jax: 0.10.0
libtpu: 0.0.40
codegen_flags: <defaults>
</compile_context>

<pallas_src>
import functools

import jax
import jax.numpy as jnp
from jax.experimental import pallas as pl
from jax.experimental.pallas import tpu as pltpu


# ----------------------------- Pallas kernel ------------------------------ #

def _decoder_kernel(x_ref, st_ref, swide_ref, *args, num_layers, cheb_k2,
                    hidden_dim):
    """Fused ADCRNN decoder step: all layers, whole batch, one invocation.

    x_ref     : (R, Din)      layer-0 input, R = B*N (batch folded into rows)
    st_ref    : (L, R, Dh)    previous hidden state per layer
    swide_ref : (R, K2*R)     column-concat of block-diag Chebyshev supports
    args      : per layer 6 weight refs
                  wgx (K2, Cin, 2*Dh), wgh (K2, Dh, 2*Dh), bg (1, 2*Dh),
                  wux (K2, Cin,   Dh), wuh (K2, Dh,   Dh), bu (1,   Dh)
                followed by the output ref out (L, R, Dh).
    """
    out_ref = args[-1]
    w_refs = args[:-1]
    dh = hidden_dim

    s_wide = swide_ref[...]                       # (R, K2*R), layer-invariant
    cur = x_ref[...]                              # (R, Cin) current input

    for layer in range(num_layers):               # static unroll (L is tiny)
        wgx, wgh, bg, wux, wuh, bu = w_refs[6 * layer: 6 * layer + 6]
        st = st_ref[layer]                        # (R, Dh)

        # Gate branch:
        #   sum_k (S_k @ [cur|st]) @ Wg_k == S_wide @ vstack_k(cur@Wgx_k + st@Wgh_k)
        # Each per-k product is (R, 2*Dh) and dies into the row-stacked slab
        # immediately (sublane concat, R multiple of 8 -> no XLU).
        pg = jnp.concatenate(
            [jnp.dot(cur, wgx[k], preferred_element_type=jnp.float32)
             + jnp.dot(st, wgh[k], preferred_element_type=jnp.float32)
             for k in range(cheb_k2)], axis=0)    # (K2*R, 2*Dh)
        zr = jax.nn.sigmoid(
            jnp.dot(s_wide, pg, preferred_element_type=jnp.float32)
            + bg[...])                            # (R, 2*Dh): one deep-K matmul
        z = zr[:, :dh]
        r = zr[:, dh:]                            # one lane shift/layer (XLU slot)

        # Candidate branch on [cur | z*st], same reassociation.
        zst = z * st
        pu = jnp.concatenate(
            [jnp.dot(cur, wux[k], preferred_element_type=jnp.float32)
             + jnp.dot(zst, wuh[k], preferred_element_type=jnp.float32)
             for k in range(cheb_k2)], axis=0)    # (K2*R, Dh)
        hc = jnp.tanh(
            jnp.dot(s_wide, pu, preferred_element_type=jnp.float32)
            + bu[...])                            # (R, Dh): one deep-K matmul

        # GRU-style mix (f32 elementwise epilogue, safe on v5e).
        h = r * st + (1.0 - r) * hc               # (R, Dh)
        out_ref[layer] = h.astype(out_ref.dtype)
        cur = h                                   # next layer's input (VMEM, f32)


# ----------------------------- JAX glue ----------------------------------- #

def build_cheb_supports(supports, cheb_k):
    """AGCN's Chebyshev expansion of supports[0:2]. -> (2*cheb_k, N, N)."""
    n = supports[0].shape[0]
    out = []
    for s in supports[:2]:
        ks = [jnp.eye(n, dtype=s.dtype), s]
        for _ in range(2, cheb_k):
            ks.append(2.0 * (s @ ks[-1]) - ks[-2])
        out.extend(ks)
    return jnp.stack(out, axis=0)


def build_block_cheb_supports(supports, cheb_k, batch):
    """Block-diagonal (over batch) Chebyshev supports: kron(I_B, S_k).

    Folding the batch into the matmul M dimension lets the per-batch graph
    conv run as a plain 2-D matmul inside the kernel (no batched einsum, no
    grid over B).  Scales as (B*N)^2 -- fine at these sizes only.
    # TODO(synk): at realistic AGCRN sizes (N~200, B~64) drop the block-diag
    # fold: keep supports as (K2, N, N), use a batched dot_general / a
    # "parallel" grid axis over B (v7x has 2 TensorCores), single-buffer the
    # grid-invariant supports/weights (pl.Buffered(1)) and set
    # vmem_limit_bytes explicitly for v7x's 64 MiB VMEM.
    """
    cheb = build_cheb_supports(supports, cheb_k)              # (K2, N, N)
    n = cheb.shape[-1]
    eye_b = jnp.eye(batch, dtype=cheb.dtype)
    blk = jnp.einsum('bc,knm->kbncm', eye_b, cheb)
    return blk.reshape(cheb.shape[0], batch * n, batch * n)   # (K2, B*N, B*N)


def xavier_normal(key, shape):
    fan_in, fan_out = shape
    std = (2.0 / (fan_in + fan_out)) ** 0.5
    return std * jax.random.normal(key, shape, dtype=jnp.float32)


def init_decoder_params(key, node_num, dim_in, dim_out, cheb_k, num_layers):
    """Parameters in the original PyTorch layout: wg (2k*(Cin+Dh), 2Dh), ..."""
    params = []
    d_in = dim_in
    for _ in range(num_layers):
        key, kg, ku = jax.random.split(key, 3)
        wg = xavier_normal(kg, (2 * cheb_k * (d_in + dim_out), 2 * dim_out))
        bg = jnp.zeros((2 * dim_out,), dtype=jnp.float32)
        wu = xavier_normal(ku, (2 * cheb_k * (d_in + dim_out), dim_out))
        bu = jnp.zeros((dim_out,), dtype=jnp.float32)
        params.append((wg, bg, wu, bu))
        d_in = dim_out
    return params


def _split_params(params, dim_in, hidden_dim, cheb_k2):
    """Reshape PyTorch-layout AGCN weights into per-k split weights.

    The flat weight rows are ordered k-major, then [x ; state] within each k
    (matching the reference concat order), so wg.reshape(K2, Cin+Dh, 2*Dh)
    split at Cin reproduces the original contraction exactly.
    """
    flat = []
    d_in = dim_in
    dh = hidden_dim
    for (wg, bg, wu, bu) in params:
        wg_r = wg.reshape(cheb_k2, d_in + dh, 2 * dh)
        wu_r = wu.reshape(cheb_k2, d_in + dh, dh)
        flat += [wg_r[:, :d_in, :], wg_r[:, d_in:, :], bg.reshape(1, 2 * dh),
                 wu_r[:, :d_in, :], wu_r[:, d_in:, :], bu.reshape(1, dh)]
        d_in = dh
    return flat


def adcrnn_decoder_forward(xt, init_state, supports, params, cheb_k):
    """ADCRNN_Decoder.forward: returns (current_inputs, output_hidden list)."""
    B, N, Din = xt.shape
    L, _, _, Dh = init_state.shape
    K2 = 2 * cheb_k
    R = B * N

    sup_blk = build_block_cheb_supports(supports, cheb_k, B)  # (K2, R, R)
    # Column-concat the per-k supports once, host-side (free):
    #   S_wide @ vstack_k(P_k) == sum_k S_k @ P_k
    s_wide = sup_blk.transpose(1, 0, 2).reshape(R, K2 * R)    # (R, K2*R)

    x_flat = xt.reshape(R, Din)
    st_flat = init_state.reshape(L, R, Dh)
    w_args = _split_params(params, Din, Dh, K2)

    kernel = functools.partial(_decoder_kernel, num_layers=L, cheb_k2=K2,
                               hidden_dim=Dh)

    def full_block(a):
        zeros = (0,) * a.ndim
        return pl.BlockSpec(a.shape, lambda i, z=zeros: z)

    args = [x_flat, st_flat, s_wide] + w_args

    out = pl.pallas_call(
        kernel,
        out_shape=jax.ShapeDtypeStruct((L, R, Dh), xt.dtype),
        grid_spec=pl.GridSpec(
            grid=(1,),                     # single invocation: whole batch +
                                           # all layers fused; everything is
                                           # VMEM-resident (~120 KiB).
            in_specs=[full_block(a) for a in args],
            out_specs=pl.BlockSpec((L, R, Dh), lambda i: (0, 0, 0)),
        ),
        compiler_params=pltpu.CompilerParams(
            dimension_semantics=("arbitrary",)),
    )(*args)

    hidden = out.reshape(L, B, N, Dh)
    output_hidden = [hidden[i] for i in range(L)]
    return output_hidden[-1], output_hidden


# ------------------------- pure-JAX reference ------------------------------ #

def _agcn_ref(x, cheb_supports, w, b):
    xg = jnp.concatenate(
        [jnp.einsum('nm,bmc->bnc', cheb_supports[k], x)
         for k in range(cheb_supports.shape[0])], axis=-1)
    return jnp.einsum('bni,io->bno', xg, w) + b


def _cell_ref(x, state, cheb_supports, wg, bg, wu, bu, dh):
    zr = jax.nn.sigmoid(_agcn_ref(jnp.concatenate([x, state], -1),
                                  cheb_supports, wg, bg))
    z, r = zr[..., :dh], zr[..., dh:]
    hc = jnp.tanh(_agcn_ref(jnp.concatenate([x, z * state], -1),
                            cheb_supports, wu, bu))
    return r * state + (1.0 - r) * hc


def decoder_ref(xt, init_state, supports, params, cheb_k, dh):
    cheb_supports = build_cheb_supports(supports, cheb_k)
    cur = xt
    hid = []
    for i, (wg, bg, wu, bu) in enumerate(params):
        cur = _cell_ref(cur, init_state[i], cheb_supports, wg, bg, wu, bu, dh)
        hid.append(cur)
    return cur, hid


# --------------------------------- main ------------------------------------ #

if __name__ == "__main__":
    B, N, DIN, DH, CHEB_K, NUM_LAYERS = 2, 16, 2, 32, 3, 2

    key = jax.random.PRNGKey(0)
    k_x, k_s, k_a0, k_a1, k_p = jax.random.split(key, 5)

    xt = jax.random.normal(k_x, (B, N, DIN), dtype=jnp.float32)
    init_state = jax.random.normal(k_s, (NUM_LAYERS, B, N, DH),
                                   dtype=jnp.float32)
    supports = [
        jax.nn.softmax(jax.random.normal(k_a0, (N, N), dtype=jnp.float32), -1),
        jax.nn.softmax(jax.random.normal(k_a1, (N, N), dtype=jnp.float32), -1),
    ]
    params = init_decoder_params(k_p, N, DIN, DH, CHEB_K, NUM_LAYERS)

    out, hidden = adcrnn_decoder_forward(xt, init_state, supports, params,
                                         CHEB_K)
    out = jax.block_until_ready(out)
    hidden = [jax.block_until_ready(h) for h in hidden]

    # correctness check vs. pure-JAX reference of the PyTorch semantics
    out_ref, hidden_ref = decoder_ref(xt, init_state, supports, params,
                                      CHEB_K, DH)
    assert out.shape == (B, N, DH)
    assert len(hidden) == NUM_LAYERS
    # Slightly looser than 1e-5: the reassociated S_wide accumulation changes
    # the f32 summation order relative to the concat-based reference.
    assert jnp.allclose(out, out_ref, rtol=1e-4, atol=1e-4)
    for h, hr in zip(hidden, hidden_ref):
        assert jnp.allclose(h, hr, rtol=1e-4, atol=1e-4)

    print("KERNEL_OK")
</pallas_src>

<mosaic_0001>
module attributes {stable_mosaic.version = 11 : i64} {
  func.func @_decoder_kernel(%arg0: i32, %arg1: memref<32x2xf32, #tpu.memory_space<vmem>>, %arg2: memref<2x32x32xf32, #tpu.memory_space<vmem>>, %arg3: memref<32x192xf32, #tpu.memory_space<vmem>>, %arg4: memref<6x2x64xf32, #tpu.memory_space<vmem>>, %arg5: memref<6x32x64xf32, #tpu.memory_space<vmem>>, %arg6: memref<1x64xf32, #tpu.memory_space<vmem>>, %arg7: memref<6x2x32xf32, #tpu.memory_space<vmem>>, %arg8: memref<6x32x32xf32, #tpu.memory_space<vmem>>, %arg9: memref<1x32xf32, #tpu.memory_space<vmem>>, %arg10: memref<6x32x64xf32, #tpu.memory_space<vmem>>, %arg11: memref<6x32x64xf32, #tpu.memory_space<vmem>>, %arg12: memref<1x64xf32, #tpu.memory_space<vmem>>, %arg13: memref<6x32x32xf32, #tpu.memory_space<vmem>>, %arg14: memref<6x32x32xf32, #tpu.memory_space<vmem>>, %arg15: memref<1x32xf32, #tpu.memory_space<vmem>>, %arg16: memref<2x32x32xf32, #tpu.memory_space<vmem>>) attributes {dimension_semantics = [#tpu.dimension_semantics<arbitrary>], iteration_bounds = array<i64: 1>, scalar_prefetch = 0 : i64, scratch_operands = 0 : i64, tpu.core_type = #tpu.core_type<tc>, window_params = [{pipeline_mode = #tpu.pipeline_mode<synchronous>, transform_indices = @transform_0, window_bounds = array<i64: 32, 2>}, {pipeline_mode = #tpu.pipeline_mode<synchronous>, transform_indices = @transform_1, window_bounds = array<i64: 2, 32, 32>}, {pipeline_mode = #tpu.pipeline_mode<synchronous>, transform_indices = @transform_2, window_bounds = array<i64: 32, 192>}, {pipeline_mode = #tpu.pipeline_mode<synchronous>, transform_indices = @transform_3, window_bounds = array<i64: 6, 2, 64>}, {pipeline_mode = #tpu.pipeline_mode<synchronous>, transform_indices = @transform_4, window_bounds = array<i64: 6, 32, 64>}, {pipeline_mode = #tpu.pipeline_mode<synchronous>, transform_indices = @transform_5, window_bounds = array<i64: 1, 64>}, {pipeline_mode = #tpu.pipeline_mode<synchronous>, transform_indices = @transform_6, window_bounds = array<i64: 6, 2, 32>}, {pipeline_mode = #tpu.pipeline_mode<synchronous>, transform_indices = @transform_7, window_bounds = array<i64: 6, 32, 32>}, {pipeline_mode = #tpu.pipeline_mode<synchronous>, transform_indices = @transform_8, window_bounds = array<i64: 1, 32>}, {pipeline_mode = #tpu.pipeline_mode<synchronous>, transform_indices = @transform_9, window_bounds = array<i64: 6, 32, 64>}, {pipeline_mode = #tpu.pipeline_mode<synchronous>, transform_indices = @transform_10, window_bounds = array<i64: 6, 32, 64>}, {pipeline_mode = #tpu.pipeline_mode<synchronous>, transform_indices = @transform_11, window_bounds = array<i64: 1, 64>}, {pipeline_mode = #tpu.pipeline_mode<synchronous>, transform_indices = @transform_12, window_bounds = array<i64: 6, 32, 32>}, {pipeline_mode = #tpu.pipeline_mode<synchronous>, transform_indices = @transform_13, window_bounds = array<i64: 6, 32, 32>}, {pipeline_mode = #tpu.pipeline_mode<synchronous>, transform_indices = @transform_14, window_bounds = array<i64: 1, 32>}, {pipeline_mode = #tpu.pipeline_mode<synchronous>, transform_indices = @transform_15, window_bounds = array<i64: 2, 32, 32>}]} {
    %c0 = arith.constant 0 : index
    %c0_0 = arith.constant 0 : index
    %0 = vector.load %arg3[%c0, %c0_0] : memref<32x192xf32, #tpu.memory_space<vmem>>, vector<32x192xf32>
    %c0_1 = arith.constant 0 : index
    %c0_2 = arith.constant 0 : index
    %1 = vector.load %arg1[%c0_1, %c0_2] : memref<32x2xf32, #tpu.memory_space<vmem>>, vector<32x2xf32>
    %c0_3 = arith.constant 0 : index
    %c0_4 = arith.constant 0 : index
    %c0_5 = arith.constant 0 : index
    %2 = vector.load %arg2[%c0_3, %c0_4, %c0_5] : memref<2x32x32xf32, #tpu.memory_space<vmem>>, vector<1x32x32xf32>
    %3 = vector.shape_cast %2 : vector<1x32x32xf32> to vector<32x32xf32>
    %c0_6 = arith.constant 0 : index
    %c0_7 = arith.constant 0 : index
    %c0_8 = arith.constant 0 : index
    %4 = vector.load %arg4[%c0_6, %c0_7, %c0_8] : memref<6x2x64xf32, #tpu.memory_space<vmem>>, vector<1x2x64xf32>
    %5 = vector.shape_cast %4 : vector<1x2x64xf32> to vector<2x64xf32>
    %cst = arith.constant dense<0.000000e+00> : vector<32x64xf32>
    %6 = tpu.matmul %1, %5, %cst {dimension_numbers = #tpu.dot_dimension_numbers<[1], [0], [0], [1], [0, 0, 1, 1], [], []>} : vector<32x2xf32>, vector<2x64xf32>, vector<32x64xf32> -> vector<32x64xf32>
    %c0_9 = arith.constant 0 : index
    %c0_10 = arith.constant 0 : index
    %c0_11 = arith.constant 0 : index
    %7 = vector.load %arg5[%c0_9, %c0_10, %c0_11] : memref<6x32x64xf32, #tpu.memory_space<vmem>>, vector<1x32x64xf32>
    %8 = vector.shape_cast %7 : vector<1x32x64xf32> to vector<32x64xf32>
    %cst_12 = arith.constant dense<0.000000e+00> : vector<32x64xf32>
    %9 = tpu.matmul %3, %8, %cst_12 {dimension_numbers = #tpu.dot_dimension_numbers<[1], [0], [0], [1], [0, 0, 1, 1], [], []>} : vector<32x32xf32>, vector<32x64xf32>, vector<32x64xf32> -> vector<32x64xf32>
    %10 = arith.addf %6, %9 : vector<32x64xf32>
    %c1 = arith.constant 1 : index
    %c0_13 = arith.constant 0 : index
    %c0_14 = arith.constant 0 : index
    %11 = vector.load %arg4[%c1, %c0_13, %c0_14] : memref<6x2x64xf32, #tpu.memory_space<vmem>>, vector<1x2x64xf32>
    %12 = vector.shape_cast %11 : vector<1x2x64xf32> to vector<2x64xf32>
    %cst_15 = arith.constant dense<0.000000e+00> : vector<32x64xf32>
    %13 = tpu.matmul %1, %12, %cst_15 {dimension_numbers = #tpu.dot_dimension_numbers<[1], [0], [0], [1], [0, 0, 1, 1], [], []>} : vector<32x2xf32>, vector<2x64xf32>, vector<32x64xf32> -> vector<32x64xf32>
    %c1_16 = arith.constant 1 : index
    %c0_17 = arith.constant 0 : index
    %c0_18 = arith.constant 0 : index
    %14 = vector.load %arg5[%c1_16, %c0_17, %c0_18] : memref<6x32x64xf32, #tpu.memory_space<vmem>>, vector<1x32x64xf32>
    %15 = vector.shape_cast %14 : vector<1x32x64xf32> to vector<32x64xf32>
    %cst_19 = arith.constant dense<0.000000e+00> : vector<32x64xf32>
    %16 = tpu.matmul %3, %15, %cst_19 {dimension_numbers = #tpu.dot_dimension_numbers<[1], [0], [0], [1], [0, 0, 1, 1], [], []>} : vector<32x32xf32>, vector<32x64xf32>, vector<32x64xf32> -> vector<32x64xf32>
    %17 = arith.addf %13, %16 : vector<32x64xf32>
    %c2 = arith.constant 2 : index
    %c0_20 = arith.constant 0 : index
    %c0_21 = arith.constant 0 : index
    %18 = vector.load %arg4[%c2, %c0_20, %c0_21] : memref<6x2x64xf32, #tpu.memory_space<vmem>>, vector<1x2x64xf32>
    %19 = vector.shape_cast %18 : vector<1x2x64xf32> to vector<2x64xf32>
    %cst_22 = arith.constant dense<0.000000e+00> : vector<32x64xf32>
    %20 = tpu.matmul %1, %19, %cst_22 {dimension_numbers = #tpu.dot_dimension_numbers<[1], [0], [0], [1], [0, 0, 1, 1], [], []>} : vector<32x2xf32>, vector<2x64xf32>, vector<32x64xf32> -> vector<32x64xf32>
    %c2_23 = arith.constant 2 : index
    %c0_24 = arith.constant 0 : index
    %c0_25 = arith.constant 0 : index
    %21 = vector.load %arg5[%c2_23, %c0_24, %c0_25] : memref<6x32x64xf32, #tpu.memory_space<vmem>>, vector<1x32x64xf32>
    %22 = vector.shape_cast %21 : vector<1x32x64xf32> to vector<32x64xf32>
    %cst_26 = arith.constant dense<0.000000e+00> : vector<32x64xf32>
    %23 = tpu.matmul %3, %22, %cst_26 {dimension_numbers = #tpu.dot_dimension_numbers<[1], [0], [0], [1], [0, 0, 1, 1], [], []>} : vector<32x32xf32>, vector<32x64xf32>, vector<32x64xf32> -> vector<32x64xf32>
    %24 = arith.addf %20, %23 : vector<32x64xf32>
    %c3 = arith.constant 3 : index
    %c0_27 = arith.constant 0 : index
    %c0_28 = arith.constant 0 : index
    %25 = vector.load %arg4[%c3, %c0_27, %c0_28] : memref<6x2x64xf32, #tpu.memory_space<vmem>>, vector<1x2x64xf32>
    %26 = vector.shape_cast %25 : vector<1x2x64xf32> to vector<2x64xf32>
    %cst_29 = arith.constant dense<0.000000e+00> : vector<32x64xf32>
    %27 = tpu.matmul %1, %26, %cst_29 {dimension_numbers = #tpu.dot_dimension_numbers<[1], [0], [0], [1], [0, 0, 1, 1], [], []>} : vector<32x2xf32>, vector<2x64xf32>, vector<32x64xf32> -> vector<32x64xf32>
    %c3_30 = arith.constant 3 : index
    %c0_31 = arith.constant 0 : index
    %c0_32 = arith.constant 0 : index
    %28 = vector.load %arg5[%c3_30, %c0_31, %c0_32] : memref<6x32x64xf32, #tpu.memory_space<vmem>>, vector<1x32x64xf32>
    %29 = vector.shape_cast %28 : vector<1x32x64xf32> to vector<32x64xf32>
    %cst_33 = arith.constant dense<0.000000e+00> : vector<32x64xf32>
    %30 = tpu.matmul %3, %29, %cst_33 {dimension_numbers = #tpu.dot_dimension_numbers<[1], [0], [0], [1], [0, 0, 1, 1], [], []>} : vector<32x32xf32>, vector<32x64xf32>, vector<32x64xf32> -> vector<32x64xf32>
    %31 = arith.addf %27, %30 : vector<32x64xf32>
    %c4 = arith.constant 4 : index
    %c0_34 = arith.constant 0 : index
    %c0_35 = arith.constant 0 : index
    %32 = vector.load %arg4[%c4, %c0_34, %c0_35] : memref<6x2x64xf32, #tpu.memory_space<vmem>>, vector<1x2x64xf32>
    %33 = vector.shape_cast %32 : vector<1x2x64xf32> to vector<2x64xf32>
    %cst_36 = arith.constant dense<0.000000e+00> : vector<32x64xf32>
    %34 = tpu.matmul %1, %33, %cst_36 {dimension_numbers = #tpu.dot_dimension_numbers<[1], [0], [0], [1], [0, 0, 1, 1], [], []>} : vector<32x2xf32>, vector<2x64xf32>, vector<32x64xf32> -> vector<32x64xf32>
    %c4_37 = arith.constant 4 : index
    %c0_38 = arith.constant 0 : index
    %c0_39 = arith.constant 0 : index
    %35 = vector.load %arg5[%c4_37, %c0_38, %c0_39] : memref<6x32x64xf32, #tpu.memory_space<vmem>>, vector<1x32x64xf32>
    %36 = vector.shape_cast %35 : vector<1x32x64xf32> to vector<32x64xf32>
    %cst_40 = arith.constant dense<0.000000e+00> : vector<32x64xf32>
    %37 = tpu.matmul %3, %36, %cst_40 {dimension_numbers = #tpu.dot_dimension_numbers<[1], [0], [0], [1], [0, 0, 1, 1], [], []>} : vector<32x32xf32>, vector<32x64xf32>, vector<32x64xf32> -> vector<32x64xf32>
    %38 = arith.addf %34, %37 : vector<32x64xf32>
    %c5 = arith.constant 5 : index
    %c0_41 = arith.constant 0 : index
    %c0_42 = arith.constant 0 : index
    %39 = vector.load %arg4[%c5, %c0_41, %c0_42] : memref<6x2x64xf32, #tpu.memory_space<vmem>>, vector<1x2x64xf32>
    %40 = vector.shape_cast %39 : vector<1x2x64xf32> to vector<2x64xf32>
    %cst_43 = arith.constant dense<0.000000e+00> : vector<32x64xf32>
    %41 = tpu.matmul %1, %40, %cst_43 {dimension_numbers = #tpu.dot_dimension_numbers<[1], [0], [0], [1], [0, 0, 1, 1], [], []>} : vector<32x2xf32>, vector<2x64xf32>, vector<32x64xf32> -> vector<32x64xf32>
    %c5_44 = arith.constant 5 : index
    %c0_45 = arith.constant 0 : index
    %c0_46 = arith.constant 0 : index
    %42 = vector.load %arg5[%c5_44, %c0_45, %c0_46] : memref<6x32x64xf32, #tpu.memory_space<vmem>>, vector<1x32x64xf32>
    %43 = vector.shape_cast %42 : vector<1x32x64xf32> to vector<32x64xf32>
    %cst_47 = arith.constant dense<0.000000e+00> : vector<32x64xf32>
    %44 = tpu.matmul %3, %43, %cst_47 {dimension_numbers = #tpu.dot_dimension_numbers<[1], [0], [0], [1], [0, 0, 1, 1], [], []>} : vector<32x32xf32>, vector<32x64xf32>, vector<32x64xf32> -> vector<32x64xf32>
    %45 = arith.addf %41, %44 : vector<32x64xf32>
    %46 = tpu.concatenate %10, %17, %24, %31, %38, %45 in 0 : vector<32x64xf32>, vector<32x64xf32>, vector<32x64xf32>, vector<32x64xf32>, vector<32x64xf32>, vector<32x64xf32> -> vector<192x64xf32>
    %cst_48 = arith.constant dense<0.000000e+00> : vector<32x64xf32>
    %47 = tpu.matmul %0, %46, %cst_48 {dimension_numbers = #tpu.dot_dimension_numbers<[1], [0], [0], [1], [0, 0, 1, 1], [], []>} : vector<32x192xf32>, vector<192x64xf32>, vector<32x64xf32> -> vector<32x64xf32>
    %c0_49 = arith.constant 0 : index
    %c0_50 = arith.constant 0 : index
    %48 = vector.load %arg6[%c0_49, %c0_50] : memref<1x64xf32, #tpu.memory_space<vmem>>, vector<1x64xf32>
    %49 = vector.broadcast %48 : vector<1x64xf32> to vector<32x64xf32>
    %50 = arith.addf %47, %49 : vector<32x64xf32>
    %51 = arith.negf %50 : vector<32x64xf32>
    %52 = math.exp %51 : vector<32x64xf32>
    %cst_51 = arith.constant 1.000000e+00 : f32
    %53 = vector.broadcast %cst_51 : f32 to vector<32x64xf32>
    %54 = arith.addf %53, %52 : vector<32x64xf32>
    %55 = arith.divf %53, %54 : vector<32x64xf32>
    %56 = vector.extract_strided_slice %55 {offsets = [0, 0], sizes = [32, 32], strides = [1, 1]} : vector<32x64xf32> to vector<32x32xf32>
    %57 = vector.extract_strided_slice %55 {offsets = [0, 32], sizes = [32, 32], strides = [1, 1]} : vector<32x64xf32> to vector<32x32xf32>
    %58 = arith.mulf %56, %3 : vector<32x32xf32>
    %c0_52 = arith.constant 0 : index
    %c0_53 = arith.constant 0 : index
    %c0_54 = arith.constant 0 : index
    %59 = vector.load %arg7[%c0_52, %c0_53, %c0_54] : memref<6x2x32xf32, #tpu.memory_space<vmem>>, vector<1x2x32xf32>
    %60 = vector.shape_cast %59 : vector<1x2x32xf32> to vector<2x32xf32>
    %cst_55 = arith.constant dense<0.000000e+00> : vector<32x32xf32>
    %61 = tpu.matmul %1, %60, %cst_55 {dimension_numbers = #tpu.dot_dimension_numbers<[1], [0], [0], [1], [0, 0, 1, 1], [], []>} : vector<32x2xf32>, vector<2x32xf32>, vector<32x32xf32> -> vector<32x32xf32>
    %c0_56 = arith.constant 0 : index
    %c0_57 = arith.constant 0 : index
    %c0_58 = arith.constant 0 : index
    %62 = vector.load %arg8[%c0_56, %c0_57, %c0_58] : memref<6x32x32xf32, #tpu.memory_space<vmem>>, vector<1x32x32xf32>
    %63 = vector.shape_cast %62 : vector<1x32x32xf32> to vector<32x32xf32>
    %cst_59 = arith.constant dense<0.000000e+00> : vector<32x32xf32>
    %64 = tpu.matmul %58, %63, %cst_59 {dimension_numbers = #tpu.dot_dimension_numbers<[1], [0], [0], [1], [0, 0, 1, 1], [], []>} : vector<32x32xf32>, vector<32x32xf32>, vector<32x32xf32> -> vector<32x32xf32>
    %65 = arith.addf %61, %64 : vector<32x32xf32>
    %c1_60 = arith.constant 1 : index
    %c0_61 = arith.constant 0 : index
    %c0_62 = arith.constant 0 : index
    %66 = vector.load %arg7[%c1_60, %c0_61, %c0_62] : memref<6x2x32xf32, #tpu.memory_space<vmem>>, vector<1x2x32xf32>
    %67 = vector.shape_cast %66 : vector<1x2x32xf32> to vector<2x32xf32>
    %cst_63 = arith.constant dense<0.000000e+00> : vector<32x32xf32>
    %68 = tpu.matmul %1, %67, %cst_63 {dimension_numbers = #tpu.dot_dimension_numbers<[1], [0], [0], [1], [0, 0, 1, 1], [], []>} : vector<32x2xf32>, vector<2x32xf32>, vector<32x32xf32> -> vector<32x32xf32>
    %c1_64 = arith.constant 1 : index
    %c0_65 = arith.constant 0 : index
    %c0_66 = arith.constant 0 : index
    %69 = vector.load %arg8[%c1_64, %c0_65, %c0_66] : memref<6x32x32xf32, #tpu.memory_space<vmem>>, vector<1x32x32xf32>
    %70 = vector.shape_cast %69 : vector<1x32x32xf32> to vector<32x32xf32>
    %cst_67 = arith.constant dense<0.000000e+00> : vector<32x32xf32>
    %71 = tpu.matmul %58, %70, %cst_67 {dimension_numbers = #tpu.dot_dimension_numbers<[1], [0], [0], [1], [0, 0, 1, 1], [], []>} : vector<32x32xf32>, vector<32x32xf32>, vector<32x32xf32> -> vector<32x32xf32>
    %72 = arith.addf %68, %71 : vector<32x32xf32>
    %c2_68 = arith.constant 2 : index
    %c0_69 = arith.constant 0 : index
    %c0_70 = arith.constant 0 : index
    %73 = vector.load %arg7[%c2_68, %c0_69, %c0_70] : memref<6x2x32xf32, #tpu.memory_space<vmem>>, vector<1x2x32xf32>
    %74 = vector.shape_cast %73 : vector<1x2x32xf32> to vector<2x32xf32>
    %cst_71 = arith.constant dense<0.000000e+00> : vector<32x32xf32>
    %75 = tpu.matmul %1, %74, %cst_71 {dimension_numbers = #tpu.dot_dimension_numbers<[1], [0], [0], [1], [0, 0, 1, 1], [], []>} : vector<32x2xf32>, vector<2x32xf32>, vector<32x32xf32> -> vector<32x32xf32>
    %c2_72 = arith.constant 2 : index
    %c0_73 = arith.constant 0 : index
    %c0_74 = arith.constant 0 : index
    %76 = vector.load %arg8[%c2_72, %c0_73, %c0_74] : memref<6x32x32xf32, #tpu.memory_space<vmem>>, vector<1x32x32xf32>
    %77 = vector.shape_cast %76 : vector<1x32x32xf32> to vector<32x32xf32>
    %cst_75 = arith.constant dense<0.000000e+00> : vector<32x32xf32>
    %78 = tpu.matmul %58, %77, %cst_75 {dimension_numbers = #tpu.dot_dimension_numbers<[1], [0], [0], [1], [0, 0, 1, 1], [], []>} : vector<32x32xf32>, vector<32x32xf32>, vector<32x32xf32> -> vector<32x32xf32>
    %79 = arith.addf %75, %78 : vector<32x32xf32>
    %c3_76 = arith.constant 3 : index
    %c0_77 = arith.constant 0 : index
    %c0_78 = arith.constant 0 : index
    %80 = vector.load %arg7[%c3_76, %c0_77, %c0_78] : memref<6x2x32xf32, #tpu.memory_space<vmem>>, vector<1x2x32xf32>
    %81 = vector.shape_cast %80 : vector<1x2x32xf32> to vector<2x32xf32>
    %cst_79 = arith.constant dense<0.000000e+00> : vector<32x32xf32>
    %82 = tpu.matmul %1, %81, %cst_79 {dimension_numbers = #tpu.dot_dimension_numbers<[1], [0], [0], [1], [0, 0, 1, 1], [], []>} : vector<32x2xf32>, vector<2x32xf32>, vector<32x32xf32> -> vector<32x32xf32>
    %c3_80 = arith.constant 3 : index
    %c0_81 = arith.constant 0 : index
    %c0_82 = arith.constant 0 : index
    %83 = vector.load %arg8[%c3_80, %c0_81, %c0_82] : memref<6x32x32xf32, #tpu.memory_space<vmem>>, vector<1x32x32xf32>
    %84 = vector.shape_cast %83 : vector<1x32x32xf32> to vector<32x32xf32>
    %cst_83 = arith.constant dense<0.000000e+00> : vector<32x32xf32>
    %85 = tpu.matmul %58, %84, %cst_83 {dimension_numbers = #tpu.dot_dimension_numbers<[1], [0], [0], [1], [0, 0, 1, 1], [], []>} : vector<32x32xf32>, vector<32x32xf32>, vector<32x32xf32> -> vector<32x32xf32>
    %86 = arith.addf %82, %85 : vector<32x32xf32>
    %c4_84 = arith.constant 4 : index
    %c0_85 = arith.constant 0 : index
    %c0_86 = arith.constant 0 : index
    %87 = vector.load %arg7[%c4_84, %c0_85, %c0_86] : memref<6x2x32xf32, #tpu.memory_space<vmem>>, vector<1x2x32xf32>
    %88 = vector.shape_cast %87 : vector<1x2x32xf32> to vector<2x32xf32>
    %cst_87 = arith.constant dense<0.000000e+00> : vector<32x32xf32>
    %89 = tpu.matmul %1, %88, %cst_87 {dimension_numbers = #tpu.dot_dimension_numbers<[1], [0], [0], [1], [0, 0, 1, 1], [], []>} : vector<32x2xf32>, vector<2x32xf32>, vector<32x32xf32> -> vector<32x32xf32>
    %c4_88 = arith.constant 4 : index
    %c0_89 = arith.constant 0 : index
    %c0_90 = arith.constant 0 : index
    %90 = vector.load %arg8[%c4_88, %c0_89, %c0_90] : memref<6x32x32xf32, #tpu.memory_space<vmem>>, vector<1x32x32xf32>
    %91 = vector.shape_cast %90 : vector<1x32x32xf32> to vector<32x32xf32>
    %cst_91 = arith.constant dense<0.000000e+00> : vector<32x32xf32>
    %92 = tpu.matmul %58, %91, %cst_91 {dimension_numbers = #tpu.dot_dimension_numbers<[1], [0], [0], [1], [0, 0, 1, 1], [], []>} : vector<32x32xf32>, vector<32x32xf32>, vector<32x32xf32> -> vector<32x32xf32>
    %93 = arith.addf %89, %92 : vector<32x32xf32>
    %c5_92 = arith.constant 5 : index
    %c0_93 = arith.constant 0 : index
    %c0_94 = arith.constant 0 : index
    %94 = vector.load %arg7[%c5_92, %c0_93, %c0_94] : memref<6x2x32xf32, #tpu.memory_space<vmem>>, vector<1x2x32xf32>
    %95 = vector.shape_cast %94 : vector<1x2x32xf32> to vector<2x32xf32>
    %cst_95 = arith.constant dense<0.000000e+00> : vector<32x32xf32>
    %96 = tpu.matmul %1, %95, %cst_95 {dimension_numbers = #tpu.dot_dimension_numbers<[1], [0], [0], [1], [0, 0, 1, 1], [], []>} : vector<32x2xf32>, vector<2x32xf32>, vector<32x32xf32> -> vector<32x32xf32>
    %c5_96 = arith.constant 5 : index
    %c0_97 = arith.constant 0 : index
    %c0_98 = arith.constant 0 : index
    %97 = vector.load %arg8[%c5_96, %c0_97, %c0_98] : memref<6x32x32xf32, #tpu.memory_space<vmem>>, vector<1x32x32xf32>
    %98 = vector.shape_cast %97 : vector<1x32x32xf32> to vector<32x32xf32>
    %cst_99 = arith.constant dense<0.000000e+00> : vector<32x32xf32>
    %99 = tpu.matmul %58, %98, %cst_99 {dimension_numbers = #tpu.dot_dimension_numbers<[1], [0], [0], [1], [0, 0, 1, 1], [], []>} : vector<32x32xf32>, vector<32x32xf32>, vector<32x32xf32> -> vector<32x32xf32>
    %100 = arith.addf %96, %99 : vector<32x32xf32>
    %101 = tpu.concatenate %65, %72, %79, %86, %93, %100 in 0 : vector<32x32xf32>, vector<32x32xf32>, vector<32x32xf32>, vector<32x32xf32>, vector<32x32xf32>, vector<32x32xf32> -> vector<192x32xf32>
    %cst_100 = arith.constant dense<0.000000e+00> : vector<32x32xf32>
    %102 = tpu.matmul %0, %101, %cst_100 {dimension_numbers = #tpu.dot_dimension_numbers<[1], [0], [0], [1], [0, 0, 1, 1], [], []>} : vector<32x192xf32>, vector<192x32xf32>, vector<32x32xf32> -> vector<32x32xf32>
    %c0_101 = arith.constant 0 : index
    %c0_102 = arith.constant 0 : index
    %103 = vector.load %arg9[%c0_101, %c0_102] : memref<1x32xf32, #tpu.memory_space<vmem>>, vector<1x32xf32>
    %104 = vector.broadcast %103 : vector<1x32xf32> to vector<32x32xf32>
    %105 = arith.addf %102, %104 : vector<32x32xf32>
    %106 = math.tanh %105 : vector<32x32xf32>
    %107 = arith.mulf %57, %3 : vector<32x32xf32>
    %cst_103 = arith.constant 1.000000e+00 : f32
    %108 = vector.broadcast %cst_103 : f32 to vector<32x32xf32>
    %109 = arith.subf %108, %57 : vector<32x32xf32>
    %110 = arith.mulf %109, %106 : vector<32x32xf32>
    %111 = arith.addf %107, %110 : vector<32x32xf32>
    %c0_104 = arith.constant 0 : index
    %c0_105 = arith.constant 0 : index
    %c0_106 = arith.constant 0 : index
    %112 = vector.load %arg16[%c0_104, %c0_105, %c0_106] : memref<2x32x32xf32, #tpu.memory_space<vmem>>, vector<1x32x32xf32>
    %113 = vector.shape_cast %112 : vector<1x32x32xf32> to vector<32x32xf32>
    %114 = vector.shape_cast %111 : vector<32x32xf32> to vector<1x32x32xf32>
    tpu.vector_store %arg16[%c0_104, %c0_105, %c0_106], %114 {strides = array<i32>} : memref<2x32x32xf32, #tpu.memory_space<vmem>>, vector<1x32x32xf32>,
    %c1_107 = arith.constant 1 : index
    %c0_108 = arith.constant 0 : index
    %c0_109 = arith.constant 0 : index
    %115 = vector.load %arg2[%c1_107, %c0_108, %c0_109] : memref<2x32x32xf32, #tpu.memory_space<vmem>>, vector<1x32x32xf32>
    %116 = vector.shape_cast %115 : vector<1x32x32xf32> to vector<32x32xf32>
    %c0_110 = arith.constant 0 : index
    %c0_111 = arith.constant 0 : index
    %c0_112 = arith.constant 0 : index
    %117 = vector.load %arg10[%c0_110, %c0_111, %c0_112] : memref<6x32x64xf32, #tpu.memory_space<vmem>>, vector<1x32x64xf32>
    %118 = vector.shape_cast %117 : vector<1x32x64xf32> to vector<32x64xf32>
    %cst_113 = arith.constant dense<0.000000e+00> : vector<32x64xf32>
    %119 = tpu.matmul %111, %118, %cst_113 {dimension_numbers = #tpu.dot_dimension_numbers<[1], [0], [0], [1], [0, 0, 1, 1], [], []>} : vector<32x32xf32>, vector<32x64xf32>, vector<32x64xf32> -> vector<32x64xf32>
    %c0_114 = arith.constant 0 : index
    %c0_115 = arith.constant 0 : index
    %c0_116 = arith.constant 0 : index
    %120 = vector.load %arg11[%c0_114, %c0_115, %c0_116] : memref<6x32x64xf32, #tpu.memory_space<vmem>>, vector<1x32x64xf32>
    %121 = vector.shape_cast %120 : vector<1x32x64xf32> to vector<32x64xf32>
    %cst_117 = arith.constant dense<0.000000e+00> : vector<32x64xf32>
    %122 = tpu.matmul %116, %121, %cst_117 {dimension_numbers = #tpu.dot_dimension_numbers<[1], [0], [0], [1], [0, 0, 1, 1], [], []>} : vector<32x32xf32>, vector<32x64xf32>, vector<32x64xf32> -> vector<32x64xf32>
    %123 = arith.addf %119, %122 : vector<32x64xf32>
    %c1_118 = arith.constant 1 : index
    %c0_119 = arith.constant 0 : index
    %c0_120 = arith.constant 0 : index
    %124 = vector.load %arg10[%c1_118, %c0_119, %c0_120] : memref<6x32x64xf32, #tpu.memory_space<vmem>>, vector<1x32x64xf32>
    %125 = vector.shape_cast %124 : vector<1x32x64xf32> to vector<32x64xf32>
    %cst_121 = arith.constant dense<0.000000e+00> : vector<32x64xf32>
    %126 = tpu.matmul %111, %125, %cst_121 {dimension_numbers = #tpu.dot_dimension_numbers<[1], [0], [0], [1], [0, 0, 1, 1], [], []>} : vector<32x32xf32>, vector<32x64xf32>, vector<32x64xf32> -> vector<32x64xf32>
    %c1_122 = arith.constant 1 : index
    %c0_123 = arith.constant 0 : index
    %c0_124 = arith.constant 0 : index
    %127 = vector.load %arg11[%c1_122, %c0_123, %c0_124] : memref<6x32x64xf32, #tpu.memory_space<vmem>>, vector<1x32x64xf32>
    %128 = vector.shape_cast %127 : vector<1x32x64xf32> to vector<32x64xf32>
    %cst_125 = arith.constant dense<0.000000e+00> : vector<32x64xf32>
    %129 = tpu.matmul %116, %128, %cst_125 {dimension_numbers = #tpu.dot_dimension_numbers<[1], [0], [0], [1], [0, 0, 1, 1], [], []>} : vector<32x32xf32>, vector<32x64xf32>, vector<32x64xf32> -> vector<32x64xf32>
    %130 = arith.addf %126, %129 : vector<32x64xf32>
    %c2_126 = arith.constant 2 : index
    %c0_127 = arith.constant 0 : index
    %c0_128 = arith.constant 0 : index
    %131 = vector.load %arg10[%c2_126, %c0_127, %c0_128] : memref<6x32x64xf32, #tpu.memory_space<vmem>>, vector<1x32x64xf32>
    %132 = vector.shape_cast %131 : vector<1x32x64xf32> to vector<32x64xf32>
    %cst_129 = arith.constant dense<0.000000e+00> : vector<32x64xf32>
    %133 = tpu.matmul %111, %132, %cst_129 {dimension_numbers = #tpu.dot_dimension_numbers<[1], [0], [0], [1], [0, 0, 1, 1], [], []>} : vector<32x32xf32>, vector<32x64xf32>, vector<32x64xf32> -> vector<32x64xf32>
    %c2_130 = arith.constant 2 : index
    %c0_131 = arith.constant 0 : index
    %c0_132 = arith.constant 0 : index
    %134 = vector.load %arg11[%c2_130, %c0_131, %c0_132] : memref<6x32x64xf32, #tpu.memory_space<vmem>>, vector<1x32x64xf32>
    %135 = vector.shape_cast %134 : vector<1x32x64xf32> to vector<32x64xf32>
    %cst_133 = arith.constant dense<0.000000e+00> : vector<32x64xf32>
    %136 = tpu.matmul %116, %135, %cst_133 {dimension_numbers = #tpu.dot_dimension_numbers<[1], [0], [0], [1], [0, 0, 1, 1], [], []>} : vector<32x32xf32>, vector<32x64xf32>, vector<32x64xf32> -> vector<32x64xf32>
    %137 = arith.addf %133, %136 : vector<32x64xf32>
    %c3_134 = arith.constant 3 : index
    %c0_135 = arith.constant 0 : index
    %c0_136 = arith.constant 0 : index
    %138 = vector.load %arg10[%c3_134, %c0_135, %c0_136] : memref<6x32x64xf32, #tpu.memory_space<vmem>>, vector<1x32x64xf32>
    %139 = vector.shape_cast %138 : vector<1x32x64xf32> to vector<32x64xf32>
    %cst_137 = arith.constant dense<0.000000e+00> : vector<32x64xf32>
    %140 = tpu.matmul %111, %139, %cst_137 {dimension_numbers = #tpu.dot_dimension_numbers<[1], [0], [0], [1], [0, 0, 1, 1], [], []>} : vector<32x32xf32>, vector<32x64xf32>, vector<32x64xf32> -> vector<32x64xf32>
    %c3_138 = arith.constant 3 : index
    %c0_139 = arith.constant 0 : index
    %c0_140 = arith.constant 0 : index
    %141 = vector.load %arg11[%c3_138, %c0_139, %c0_140] : memref<6x32x64xf32, #tpu.memory_space<vmem>>, vector<1x32x64xf32>
    %142 = vector.shape_cast %141 : vector<1x32x64xf32> to vector<32x64xf32>
    %cst_141 = arith.constant dense<0.000000e+00> : vector<32x64xf32>
    %143 = tpu.matmul %116, %142, %cst_141 {dimension_numbers = #tpu.dot_dimension_numbers<[1], [0], [0], [1], [0, 0, 1, 1], [], []>} : vector<32x32xf32>, vector<32x64xf32>, vector<32x64xf32> -> vector<32x64xf32>
    %144 = arith.addf %140, %143 : vector<32x64xf32>
    %c4_142 = arith.constant 4 : index
    %c0_143 = arith.constant 0 : index
    %c0_144 = arith.constant 0 : index
    %145 = vector.load %arg10[%c4_142, %c0_143, %c0_144] : memref<6x32x64xf32, #tpu.memory_space<vmem>>, vector<1x32x64xf32>
    %146 = vector.shape_cast %145 : vector<1x32x64xf32> to vector<32x64xf32>
    %cst_145 = arith.constant dense<0.000000e+00> : vector<32x64xf32>
    %147 = tpu.matmul %111, %146, %cst_145 {dimension_numbers = #tpu.dot_dimension_numbers<[1], [0], [0], [1], [0, 0, 1, 1], [], []>} : vector<32x32xf32>, vector<32x64xf32>, vector<32x64xf32> -> vector<32x64xf32>
    %c4_146 = arith.constant 4 : index
    %c0_147 = arith.constant 0 : index
    %c0_148 = arith.constant 0 : index
    %148 = vector.load %arg11[%c4_146, %c0_147, %c0_148] : memref<6x32x64xf32, #tpu.memory_space<vmem>>, vector<1x32x64xf32>
    %149 = vector.shape_cast %148 : vector<1x32x64xf32> to vector<32x64xf32>
    %cst_149 = arith.constant dense<0.000000e+00> : vector<32x64xf32>
    %150 = tpu.matmul %116, %149, %cst_149 {dimension_numbers = #tpu.dot_dimension_numbers<[1], [0], [0], [1], [0, 0, 1, 1], [], []>} : vector<32x32xf32>, vector<32x64xf32>, vector<32x64xf32> -> vector<32x64xf32>
    %151 = arith.addf %147, %150 : vector<32x64xf32>
    %c5_150 = arith.constant 5 : index
    %c0_151 = arith.constant 0 : index
    %c0_152 = arith.constant 0 : index
    %152 = vector.load %arg10[%c5_150, %c0_151, %c0_152] : memref<6x32x64xf32, #tpu.memory_space<vmem>>, vector<1x32x64xf32>
    %153 = vector.shape_cast %152 : vector<1x32x64xf32> to vector<32x64xf32>
    %cst_153 = arith.constant dense<0.000000e+00> : vector<32x64xf32>
    %154 = tpu.matmul %111, %153, %cst_153 {dimension_numbers = #tpu.dot_dimension_numbers<[1], [0], [0], [1], [0, 0, 1, 1], [], []>} : vector<32x32xf32>, vector<32x64xf32>, vector<32x64xf32> -> vector<32x64xf32>
    %c5_154 = arith.constant 5 : index
    %c0_155 = arith.constant 0 : index
    %c0_156 = arith.constant 0 : index
    %155 = vector.load %arg11[%c5_154, %c0_155, %c0_156] : memref<6x32x64xf32, #tpu.memory_space<vmem>>, vector<1x32x64xf32>
    %156 = vector.shape_cast %155 : vector<1x32x64xf32> to vector<32x64xf32>
    %cst_157 = arith.constant dense<0.000000e+00> : vector<32x64xf32>
    %157 = tpu.matmul %116, %156, %cst_157 {dimension_numbers = #tpu.dot_dimension_numbers<[1], [0], [0], [1], [0, 0, 1, 1], [], []>} : vector<32x32xf32>, vector<32x64xf32>, vector<32x64xf32> -> vector<32x64xf32>
    %158 = arith.addf %154, %157 : vector<32x64xf32>
    %159 = tpu.concatenate %123, %130, %137, %144, %151, %158 in 0 : vector<32x64xf32>, vector<32x64xf32>, vector<32x64xf32>, vector<32x64xf32>, vector<32x64xf32>, vector<32x64xf32> -> vector<192x64xf32>
    %cst_158 = arith.constant dense<0.000000e+00> : vector<32x64xf32>
    %160 = tpu.matmul %0, %159, %cst_158 {dimension_numbers = #tpu.dot_dimension_numbers<[1], [0], [0], [1], [0, 0, 1, 1], [], []>} : vector<32x192xf32>, vector<192x64xf32>, vector<32x64xf32> -> vector<32x64xf32>
    %c0_159 = arith.constant 0 : index
    %c0_160 = arith.constant 0 : index
    %161 = vector.load %arg12[%c0_159, %c0_160] : memref<1x64xf32, #tpu.memory_space<vmem>>, vector<1x64xf32>
    %162 = vector.broadcast %161 : vector<1x64xf32> to vector<32x64xf32>
    %163 = arith.addf %160, %162 : vector<32x64xf32>
    %164 = arith.negf %163 : vector<32x64xf32>
    %165 = math.exp %164 : vector<32x64xf32>
    %cst_161 = arith.constant 1.000000e+00 : f32
    %166 = vector.broadcast %cst_161 : f32 to vector<32x64xf32>
    %167 = arith.addf %166, %165 : vector<32x64xf32>
    %168 = arith.divf %166, %167 : vector<32x64xf32>
    %169 = vector.extract_strided_slice %168 {offsets = [0, 0], sizes = [32, 32], strides = [1, 1]} : vector<32x64xf32> to vector<32x32xf32>
    %170 = vector.extract_strided_slice %168 {offsets = [0, 32], sizes = [32, 32], strides = [1, 1]} : vector<32x64xf32> to vector<32x32xf32>
    %171 = arith.mulf %169, %116 : vector<32x32xf32>
    %c0_162 = arith.constant 0 : index
    %c0_163 = arith.constant 0 : index
    %c0_164 = arith.constant 0 : index
    %172 = vector.load %arg13[%c0_162, %c0_163, %c0_164] : memref<6x32x32xf32, #tpu.memory_space<vmem>>, vector<1x32x32xf32>
    %173 = vector.shape_cast %172 : vector<1x32x32xf32> to vector<32x32xf32>
    %cst_165 = arith.constant dense<0.000000e+00> : vector<32x32xf32>
    %174 = tpu.matmul %111, %173, %cst_165 {dimension_numbers = #tpu.dot_dimension_numbers<[1], [0], [0], [1], [0, 0, 1, 1], [], []>} : vector<32x32xf32>, vector<32x32xf32>, vector<32x32xf32> -> vector<32x32xf32>
    %c0_166 = arith.constant 0 : index
    %c0_167 = arith.constant 0 : index
    %c0_168 = arith.constant 0 : index
    %175 = vector.load %arg14[%c0_166, %c0_167, %c0_168] : memref<6x32x32xf32, #tpu.memory_space<vmem>>, vector<1x32x32xf32>
    %176 = vector.shape_cast %175 : vector<1x32x32xf32> to vector<32x32xf32>
    %cst_169 = arith.constant dense<0.000000e+00> : vector<32x32xf32>
    %177 = tpu.matmul %171, %176, %cst_169 {dimension_numbers = #tpu.dot_dimension_numbers<[1], [0], [0], [1], [0, 0, 1, 1], [], []>} : vector<32x32xf32>, vector<32x32xf32>, vector<32x32xf32> -> vector<32x32xf32>
    %178 = arith.addf %174, %177 : vector<32x32xf32>
    %c1_170 = arith.constant 1 : index
    %c0_171 = arith.constant 0 : index
    %c0_172 = arith.constant 0 : index
    %179 = vector.load %arg13[%c1_170, %c0_171, %c0_172] : memref<6x32x32xf32, #tpu.memory_space<vmem>>, vector<1x32x32xf32>
    %180 = vector.shape_cast %179 : vector<1x32x32xf32> to vector<32x32xf32>
    %cst_173 = arith.constant dense<0.000000e+00> : vector<32x32xf32>
    %181 = tpu.matmul %111, %180, %cst_173 {dimension_numbers = #tpu.dot_dimension_numbers<[1], [0], [0], [1], [0, 0, 1, 1], [], []>} : vector<32x32xf32>, vector<32x32xf32>, vector<32x32xf32> -> vector<32x32xf32>
    %c1_174 = arith.constant 1 : index
    %c0_175 = arith.constant 0 : index
    %c0_176 = arith.constant 0 : index
    %182 = vector.load %arg14[%c1_174, %c0_175, %c0_176] : memref<6x32x32xf32, #tpu.memory_space<vmem>>, vector<1x32x32xf32>
    %183 = vector.shape_cast %182 : vector<1x32x32xf32> to vector<32x32xf32>
    %cst_177 = arith.constant dense<0.000000e+00> : vector<32x32xf32>
    %184 = tpu.matmul %171, %183, %cst_177 {dimension_numbers = #tpu.dot_dimension_numbers<[1], [0], [0], [1], [0, 0, 1, 1], [], []>} : vector<32x32xf32>, vector<32x32xf32>, vector<32x32xf32> -> vector<32x32xf32>
    %185 = arith.addf %181, %184 : vector<32x32xf32>
    %c2_178 = arith.constant 2 : index
    %c0_179 = arith.constant 0 : index
    %c0_180 = arith.constant 0 : index
    %186 = vector.load %arg13[%c2_178, %c0_179, %c0_180] : memref<6x32x32xf32, #tpu.memory_space<vmem>>, vector<1x32x32xf32>
    %187 = vector.shape_cast %186 : vector<1x32x32xf32> to vector<32x32xf32>
    %cst_181 = arith.constant dense<0.000000e+00> : vector<32x32xf32>
    %188 = tpu.matmul %111, %187, %cst_181 {dimension_numbers = #tpu.dot_dimension_numbers<[1], [0], [0], [1], [0, 0, 1, 1], [], []>} : vector<32x32xf32>, vector<32x32xf32>, vector<32x32xf32> -> vector<32x32xf32>
    %c2_182 = arith.constant 2 : index
    %c0_183 = arith.constant 0 : index
    %c0_184 = arith.constant 0 : index
    %189 = vector.load %arg14[%c2_182, %c0_183, %c0_184] : memref<6x32x32xf32, #tpu.memory_space<vmem>>, vector<1x32x32xf32>
    %190 = vector.shape_cast %189 : vector<1x32x32xf32> to vector<32x32xf32>
    %cst_185 = arith.constant dense<0.000000e+00> : vector<32x32xf32>
    %191 = tpu.matmul %171, %190, %cst_185 {dimension_numbers = #tpu.dot_dimension_numbers<[1], [0], [0], [1], [0, 0, 1, 1], [], []>} : vector<32x32xf32>, vector<32x32xf32>, vector<32x32xf32> -> vector<32x32xf32>
    %192 = arith.addf %188, %191 : vector<32x32xf32>
    %c3_186 = arith.constant 3 : index
    %c0_187 = arith.constant 0 : index
    %c0_188 = arith.constant 0 : index
    %193 = vector.load %arg13[%c3_186, %c0_187, %c0_188] : memref<6x32x32xf32, #tpu.memory_space<vmem>>, vector<1x32x32xf32>
    %194 = vector.shape_cast %193 : vector<1x32x32xf32> to vector<32x32xf32>
    %cst_189 = arith.constant dense<0.000000e+00> : vector<32x32xf32>
    %195 = tpu.matmul %111, %194, %cst_189 {dimension_numbers = #tpu.dot_dimension_numbers<[1], [0], [0], [1], [0, 0, 1, 1], [], []>} : vector<32x32xf32>, vector<32x32xf32>, vector<32x32xf32> -> vector<32x32xf32>
    %c3_190 = arith.constant 3 : index
    %c0_191 = arith.constant 0 : index
    %c0_192 = arith.constant 0 : index
    %196 = vector.load %arg14[%c3_190, %c0_191, %c0_192] : memref<6x32x32xf32, #tpu.memory_space<vmem>>, vector<1x32x32xf32>
    %197 = vector.shape_cast %196 : vector<1x32x32xf32> to vector<32x32xf32>
    %cst_193 = arith.constant dense<0.000000e+00> : vector<32x32xf32>
    %198 = tpu.matmul %171, %197, %cst_193 {dimension_numbers = #tpu.dot_dimension_numbers<[1], [0], [0], [1], [0, 0, 1, 1], [], []>} : vector<32x32xf32>, vector<32x32xf32>, vector<32x32xf32> -> vector<32x32xf32>
    %199 = arith.addf %195, %198 : vector<32x32xf32>
    %c4_194 = arith.constant 4 : index
    %c0_195 = arith.constant 0 : index
    %c0_196 = arith.constant 0 : index
    %200 = vector.load %arg13[%c4_194, %c0_195, %c0_196] : memref<6x32x32xf32, #tpu.memory_space<vmem>>, vector<1x32x32xf32>
    %201 = vector.shape_cast %200 : vector<1x32x32xf32> to vector<32x32xf32>
    %cst_197 = arith.constant dense<0.000000e+00> : vector<32x32xf32>
    %202 = tpu.matmul %111, %201, %cst_197 {dimension_numbers = #tpu.dot_dimension_numbers<[1], [0], [0], [1], [0, 0, 1, 1], [], []>} : vector<32x32xf32>, vector<32x32xf32>, vector<32x32xf32> -> vector<32x32xf32>
    %c4_198 = arith.constant 4 : index
    %c0_199 = arith.constant 0 : index
    %c0_200 = arith.constant 0 : index
    %203 = vector.load %arg14[%c4_198, %c0_199, %c0_200] : memref<6x32x32xf32, #tpu.memory_space<vmem>>, vector<1x32x32xf32>
    %204 = vector.shape_cast %203 : vector<1x32x32xf32> to vector<32x32xf32>
    %cst_201 = arith.constant dense<0.000000e+00> : vector<32x32xf32>
    %205 = tpu.matmul %171, %204, %cst_201 {dimension_numbers = #tpu.dot_dimension_numbers<[1], [0], [0], [1], [0, 0, 1, 1], [], []>} : vector<32x32xf32>, vector<32x32xf32>, vector<32x32xf32> -> vector<32x32xf32>
    %206 = arith.addf %202, %205 : vector<32x32xf32>
    %c5_202 = arith.constant 5 : index
    %c0_203 = arith.constant 0 : index
    %c0_204 = arith.constant 0 : index
    %207 = vector.load %arg13[%c5_202, %c0_203, %c0_204] : memref<6x32x32xf32, #tpu.memory_space<vmem>>, vector<1x32x32xf32>
    %208 = vector.shape_cast %207 : vector<1x32x32xf32> to vector<32x32xf32>
    %cst_205 = arith.constant dense<0.000000e+00> : vector<32x32xf32>
    %209 = tpu.matmul %111, %208, %cst_205 {dimension_numbers = #tpu.dot_dimension_numbers<[1], [0], [0], [1], [0, 0, 1, 1], [], []>} : vector<32x32xf32>, vector<32x32xf32>, vector<32x32xf32> -> vector<32x32xf32>
    %c5_206 = arith.constant 5 : index
    %c0_207 = arith.constant 0 : index
    %c0_208 = arith.constant 0 : index
    %210 = vector.load %arg14[%c5_206, %c0_207, %c0_208] : memref<6x32x32xf32, #tpu.memory_space<vmem>>, vector<1x32x32xf32>
    %211 = vector.shape_cast %210 : vector<1x32x32xf32> to vector<32x32xf32>
    %cst_209 = arith.constant dense<0.000000e+00> : vector<32x32xf32>
    %212 = tpu.matmul %171, %211, %cst_209 {dimension_numbers = #tpu.dot_dimension_numbers<[1], [0], [0], [1], [0, 0, 1, 1], [], []>} : vector<32x32xf32>, vector<32x32xf32>, vector<32x32xf32> -> vector<32x32xf32>
    %213 = arith.addf %209, %212 : vector<32x32xf32>
    %214 = tpu.concatenate %178, %185, %192, %199, %206, %213 in 0 : vector<32x32xf32>, vector<32x32xf32>, vector<32x32xf32>, vector<32x32xf32>, vector<32x32xf32>, vector<32x32xf32> -> vector<192x32xf32>
    %cst_210 = arith.constant dense<0.000000e+00> : vector<32x32xf32>
    %215 = tpu.matmul %0, %214, %cst_210 {dimension_numbers = #tpu.dot_dimension_numbers<[1], [0], [0], [1], [0, 0, 1, 1], [], []>} : vector<32x192xf32>, vector<192x32xf32>, vector<32x32xf32> -> vector<32x32xf32>
    %c0_211 = arith.constant 0 : index
    %c0_212 = arith.constant 0 : index
    %216 = vector.load %arg15[%c0_211, %c0_212] : memref<1x32xf32, #tpu.memory_space<vmem>>, vector<1x32xf32>
    %217 = vector.broadcast %216 : vector<1x32xf32> to vector<32x32xf32>
    %218 = arith.addf %215, %217 : vector<32x32xf32>
    %219 = math.tanh %218 : vector<32x32xf32>
    %220 = arith.mulf %170, %116 : vector<32x32xf32>
    %cst_213 = arith.constant 1.000000e+00 : f32
    %221 = vector.broadcast %cst_213 : f32 to vector<32x32xf32>
    %222 = arith.subf %221, %170 : vector<32x32xf32>
    %223 = arith.mulf %222, %219 : vector<32x32xf32>
    %224 = arith.addf %220, %223 : vector<32x32xf32>
    %c1_214 = arith.constant 1 : index
    %c0_215 = arith.constant 0 : index
    %c0_216 = arith.constant 0 : index
    %225 = vector.load %arg16[%c1_214, %c0_215, %c0_216] : memref<2x32x32xf32, #tpu.memory_space<vmem>>, vector<1x32x32xf32>
    %226 = vector.shape_cast %225 : vector<1x32x32xf32> to vector<32x32xf32>
    %227 = vector.shape_cast %224 : vector<32x32xf32> to vector<1x32x32xf32>
    tpu.vector_store %arg16[%c1_214, %c0_215, %c0_216], %227 {strides = array<i32>} : memref<2x32x32xf32, #tpu.memory_space<vmem>>, vector<1x32x32xf32>,
    return
  }
  func.func @transform_0(%arg0: i32) -> (i32, i32) {
    %c0_i32 = arith.constant 0 : i32
    %c0_i32_0 = arith.constant 0 : i32
    %c0_i32_1 = arith.constant 0 : i32
    return %c0_i32, %c0_i32_0 : i32, i32
  }
  func.func @transform_1(%arg0: i32) -> (i32, i32, i32) {
    %c0_i32 = arith.constant 0 : i32
    %c0_i32_0 = arith.constant 0 : i32
    %c0_i32_1 = arith.constant 0 : i32
    %c0_i32_2 = arith.constant 0 : i32
    return %c0_i32, %c0_i32_0, %c0_i32_1 : i32, i32, i32
  }
  func.func @transform_2(%arg0: i32) -> (i32, i32) {
    %c0_i32 = arith.constant 0 : i32
    %c0_i32_0 = arith.constant 0 : i32
    %c0_i32_1 = arith.constant 0 : i32
    return %c0_i32, %c0_i32_0 : i32, i32
  }
  func.func @transform_3(%arg0: i32) -> (i32, i32, i32) {
    %c0_i32 = arith.constant 0 : i32
    %c0_i32_0 = arith.constant 0 : i32
    %c0_i32_1 = arith.constant 0 : i32
    %c0_i32_2 = arith.constant 0 : i32
    return %c0_i32, %c0_i32_0, %c0_i32_1 : i32, i32, i32
  }
  func.func @transform_4(%arg0: i32) -> (i32, i32, i32) {
    %c0_i32 = arith.constant 0 : i32
    %c0_i32_0 = arith.constant 0 : i32
    %c0_i32_1 = arith.constant 0 : i32
    %c0_i32_2 = arith.constant 0 : i32
    return %c0_i32, %c0_i32_0, %c0_i32_1 : i32, i32, i32
  }
  func.func @transform_5(%arg0: i32) -> (i32, i32) {
    %c0_i32 = arith.constant 0 : i32
    %c0_i32_0 = arith.constant 0 : i32
    %c0_i32_1 = arith.constant 0 : i32
    return %c0_i32, %c0_i32_0 : i32, i32
  }
  func.func @transform_6(%arg0: i32) -> (i32, i32, i32) {
    %c0_i32 = arith.constant 0 : i32
    %c0_i32_0 = arith.constant 0 : i32
    %c0_i32_1 = arith.constant 0 : i32
    %c0_i32_2 = arith.constant 0 : i32
    return %c0_i32, %c0_i32_0, %c0_i32_1 : i32, i32, i32
  }
  func.func @transform_7(%arg0: i32) -> (i32, i32, i32) {
    %c0_i32 = arith.constant 0 : i32
    %c0_i32_0 = arith.constant 0 : i32
    %c0_i32_1 = arith.constant 0 : i32
    %c0_i32_2 = arith.constant 0 : i32
    return %c0_i32, %c0_i32_0, %c0_i32_1 : i32, i32, i32
  }
  func.func @transform_8(%arg0: i32) -> (i32, i32) {
    %c0_i32 = arith.constant 0 : i32
    %c0_i32_0 = arith.constant 0 : i32
    %c0_i32_1 = arith.constant 0 : i32
    return %c0_i32, %c0_i32_0 : i32, i32
  }
  func.func @transform_9(%arg0: i32) -> (i32, i32, i32) {
    %c0_i32 = arith.constant 0 : i32
    %c0_i32_0 = arith.constant 0 : i32
    %c0_i32_1 = arith.constant 0 : i32
    %c0_i32_2 = arith.constant 0 : i32
    return %c0_i32, %c0_i32_0, %c0_i32_1 : i32, i32, i32
  }
  func.func @transform_10(%arg0: i32) -> (i32, i32, i32) {
    %c0_i32 = arith.constant 0 : i32
    %c0_i32_0 = arith.constant 0 : i32
    %c0_i32_1 = arith.constant 0 : i32
    %c0_i32_2 = arith.constant 0 : i32
    return %c0_i32, %c0_i32_0, %c0_i32_1 : i32, i32, i32
  }
  func.func @transform_11(%arg0: i32) -> (i32, i32) {
    %c0_i32 = arith.constant 0 : i32
    %c0_i32_0 = arith.constant 0 : i32
    %c0_i32_1 = arith.constant 0 : i32
    return %c0_i32, %c0_i32_0 : i32, i32
  }
  func.func @transform_12(%arg0: i32) -> (i32, i32, i32) {
    %c0_i32 = arith.constant 0 : i32
    %c0_i32_0 = arith.constant 0 : i32
    %c0_i32_1 = arith.constant 0 : i32
    %c0_i32_2 = arith.constant 0 : i32
    return %c0_i32, %c0_i32_0, %c0_i32_1 : i32, i32, i32
  }
  func.func @transform_13(%arg0: i32) -> (i32, i32, i32) {
    %c0_i32 = arith.constant 0 : i32
    %c0_i32_0 = arith.constant 0 : i32
    %c0_i32_1 = arith.constant 0 : i32
    %c0_i32_2 = arith.constant 0 : i32
    return %c0_i32, %c0_i32_0, %c0_i32_1 : i32, i32, i32
  }
  func.func @transform_14(%arg0: i32) -> (i32, i32) {
    %c0_i32 = arith.constant 0 : i32
    %c0_i32_0 = arith.constant 0 : i32
    %c0_i32_1 = arith.constant 0 : i32
    return %c0_i32, %c0_i32_0 : i32, i32
  }
  func.func @transform_15(%arg0: i32) -> (i32, i32, i32) {
    %c0_i32 = arith.constant 0 : i32
    %c0_i32_0 = arith.constant 0 : i32
    %c0_i32_1 = arith.constant 0 : i32
    %c0_i32_2 = arith.constant 0 : i32
    return %c0_i32, %c0_i32_0, %c0_i32_1 : i32, i32, i32
  }
}

</mosaic_0001>

<bundles_post_ra>
// kernel: tpu_custom_call.1
= control target key start
LH: loop header
LB: loop body
LE: loop exit
PB: predicated region body
PF: predicated region fallthrough
CT: control target
= control target key end

     0   :  { %s8123_s0 = inlined_call_operand.vmem [shape: f32[32,2], index: 0, kind: input, shape index: {}]   ;;  %s8124_s1 = inlined_call_operand.hbm [shape: f32[2,32,32], index: 1, kind: input, shape index: {}]   ;;  %s8125_s2 = inlined_call_operand.hbm [shape: f32[32,192], index: 2, kind: input, shape index: {}]   ;;  %s8126_s3 = inlined_call_operand.vmem [shape: f32[6,2,64], index: 3, kind: input, shape index: {}]   ;;  %s8127_s4 = inlined_call_operand.hbm [shape: f32[6,32,64], index: 4, kind: input, shape index: {}]   ;;  %s8128_s5 = inlined_call_operand.vmem [shape: f32[1,64], index: 5, kind: input, shape index: {}]   ;;  %s8129_s6 = inlined_call_operand.vmem [shape: f32[6,2,32], index: 6, kind: input, shape index: {}]   ;;  %s8130_s7 = inlined_call_operand.hbm [shape: f32[6,32,32], index: 7, kind: input, shape index: {}]   ;;  %s8131_s8 = inlined_call_operand.vmem [shape: f32[1,32], index: 8, kind: input, shape index: {}]   ;;  %s8132_s9 = inlined_call_operand.hbm [shape: f32[6,32,64], index: 9, kind: input, shape index: {}]   ;;  %s8133_s10 = inlined_call_operand.hbm [shape: f32[6,32,64], index: 10, kind: input, shape index: {}]   ;;  %s8134_s11 = inlined_call_operand.vmem [shape: f32[1,64], index: 11, kind: input, shape index: {}]   ;;  %s8135_s12 = inlined_call_operand.hbm [shape: f32[6,32,32], index: 12, kind: input, shape index: {}]   ;;  %s8136_s13 = inlined_call_operand.hbm [shape: f32[6,32,32], index: 13, kind: input, shape index: {}]   ;;  %s8137_s14 = inlined_call_operand.vmem [shape: f32[1,32], index: 14, kind: input, shape index: {}]   ;;  %s8138_s15 = inlined_call_operand.hbm [shape: f32[2,32,32], index: 15, kind: output, shape index: {}]  }
   0x1   :  { %8140 = sst [smem:[#allocation23_spill]] %s8138_s15 }
   0x2   :  { %20 = vsyncpa [#allocation3], 0 }
   0x3   :  { %21 = vsyncpa [#allocation6], 0 }
   0x4   :  { %22 = vsyncpa [#allocation9], 0 }
   0x5   :  { %23 = vsyncpa [#allocation12], 0 }
   0x6   :  { %24 = vsyncpa [#allocation15], 0 }
   0x7   :  { %25 = vsyncpa [#allocation4], 0  ;;  %s7159_s18 = smov [#allocation5]   ;;  %s6949_s22 = scalar_lea.hbm %s8125_s2, 1024 }
   0x8   :  { %s45_s19 = sshll.u32 %s7159_s18, 4  ;;  %p6950_p0 = scmp.ne.s32.totalorder %s8125_s2, %s6949_s22  ;;  %s46_s19 = int_to_ptr.vmem [resolvable:$true] %s45_s19 }
   0x9   :  { %p6953_p1 = scmp.lt.u32.totalorder %s6949_s22, %s8125_s2 }
   0xb   :  { %p6955_p2 = pnand %p6953_p1, %p6950_p0 }
   0xd   :  { %6958 = shalt.err (!%p6955_p2)
}
   0xe   :  { %s6959_s27 = scalar_lea.vmem %s46_s19, 1024  ;;  %p6964_p4 = scmp.lt.s32.totalorder %s46_s19, %s46_s19 }
   0xf   :  { %p6960_p3 = scmp.ne.s32.totalorder %s46_s19, %s6959_s27  ;;  %p6965_p5 = scmp.lt.s32.totalorder %s6959_s27, %s6959_s27 }
  0x11   :  { %p6966_p6 = por %p6965_p5, %p6964_p4 }
  0x13   :  { %p6967_p7 = pnand %p6966_p6, %p6960_p3 }
  0x15   :  { %6970 = shalt.err (!%p6967_p7)
}
  0x16   :  { %s7160_s28 = smov 256   ;;  %s7161_s29 = smov 16  }
  0x17   :  { %51 = dma.hbm_to_vmem [thread:$0]  %s8125_s2, 1024, %s46_s19, [#allocation6], %s7160_s28, %s7160_s28, %s7161_s29  }
  0x18   :  { %s7162_s17 = smov [#allocation8]   ;;  %s7163_s20 = smov [#allocation11]  }
  0x19   :  { %s75_s18 = sshll.u32 %s7162_s17, 4  ;;  %s101_s21 = sshll.u32 %s7163_s20, 4  ;;  %s76_s18 = int_to_ptr.vmem [resolvable:$true] %s75_s18  ;;  %s102_s21 = int_to_ptr.vmem [resolvable:$true] %s101_s21 }
  0x1a   :  { %s6971_s24 = scalar_lea.hbm %s8130_s7, 3072 }
  0x1b   :  { %p6972_p8 = scmp.ne.s32.totalorder %s8130_s7, %s6971_s24  ;;  %p6975_p9 = scmp.lt.u32.totalorder %s6971_s24, %s8130_s7 }
  0x1d   :  { %p6977_p10 = pnand %p6975_p9, %p6972_p8 }
  0x1f   :  { %6980 = shalt.err (!%p6977_p10)
}
  0x20   :  { %s6981_s2 = scalar_lea.vmem %s76_s18, 3072  ;;  %p6986_p12 = scmp.lt.s32.totalorder %s76_s18, %s76_s18 }
  0x21   :  { %p6982_p11 = scmp.ne.s32.totalorder %s76_s18, %s6981_s2  ;;  %p6987_p13 = scmp.lt.s32.totalorder %s6981_s2, %s6981_s2 }
  0x23   :  { %p6988_p0 = por %p6987_p13, %p6986_p12 }
  0x25   :  { %p6989_p1 = pnand %p6988_p0, %p6982_p11 }
  0x27   :  { %6992 = shalt.err (!%p6989_p1)
}
  0x28   :  { %s7164_s19 = smov 128   ;;  %s7165_s28 = smov 8  }
  0x29   :  { %81 = dma.hbm_to_vmem [thread:$0]  %s8130_s7, 3072, %s76_s18, [#allocation9], %s7164_s19, %s7164_s19, %s7165_s28  }
  0x2a   :  { %s6993_s17 = scalar_lea.hbm %s8133_s10, 3072 }
  0x2b   :  { %p6994_p2 = scmp.ne.s32.totalorder %s8133_s10, %s6993_s17  ;;  %p6997_p3 = scmp.lt.u32.totalorder %s6993_s17, %s8133_s10 }
  0x2d   :  { %p6999_p4 = pnand %p6997_p3, %p6994_p2 }
  0x2f   :  { %7002 = shalt.err (!%p6999_p4)
}
  0x30   :  { %s7003_s25 = scalar_lea.vmem %s102_s21, 3072  ;;  %p7008_p6 = scmp.lt.s32.totalorder %s102_s21, %s102_s21 }
  0x31   :  { %p7004_p5 = scmp.ne.s32.totalorder %s102_s21, %s7003_s25  ;;  %p7009_p7 = scmp.lt.s32.totalorder %s7003_s25, %s7003_s25 }
  0x33   :  { %p7010_p8 = por %p7009_p7, %p7008_p6 }
  0x35   :  { %p7011_p9 = pnand %p7010_p8, %p7004_p5 }
  0x37   :  { %7014 = shalt.err (!%p7011_p9)
}
  0x38   :  { %107 = dma.hbm_to_vmem [thread:$0]  %s8133_s10, 3072, %s102_s21, [#allocation12], %s7164_s19, %s7164_s19, %s7165_s28  }
  0x39   :  { %s7166_s26 = smov [#allocation2]   ;;  %s7167_s2 = smov [#allocation7]  }
  0x3a   :  { %s33_s27 = sshll.u32 %s7166_s26, 4  ;;  %s59_s29 = sshll.u32 %s7167_s2, 4  ;;  %s34_s27 = int_to_ptr.vmem [resolvable:$true] %s33_s27  ;;  %s60_s29 = int_to_ptr.vmem [resolvable:$true] %s59_s29 }
  0x3b   :  { %s7015_s16 = scalar_lea.hbm %s8124_s1, 1024 }
  0x3c   :  { %p7016_p10 = scmp.ne.s32.totalorder %s8124_s1, %s7015_s16  ;;  %p7019_p11 = scmp.lt.u32.totalorder %s7015_s16, %s8124_s1 }
  0x3e   :  { %p7021_p12 = pnand %p7019_p11, %p7016_p10 }
  0x40   :  { %7024 = shalt.err (!%p7021_p12)
}
  0x41   :  { %s7025_s10 = scalar_lea.vmem %s34_s27, 1024  ;;  %p7030_p0 = scmp.lt.s32.totalorder %s34_s27, %s34_s27 }
  0x42   :  { %p7026_p13 = scmp.ne.s32.totalorder %s34_s27, %s7025_s10  ;;  %p7031_p1 = scmp.lt.s32.totalorder %s7025_s10, %s7025_s10 }
  0x44   :  { %p7032_p2 = por %p7031_p1, %p7030_p0 }
  0x46   :  { %p7033_p3 = pnand %p7032_p2, %p7026_p13 }
  0x48   :  { %7036 = shalt.err (!%p7033_p3)
}
  0x49   :  { %39 = dma.hbm_to_vmem [thread:$0]  %s8124_s1, 1024, %s34_s27, [#allocation3], %s7164_s19, %s7164_s19, %s7165_s28  }
  0x4a   :  { %s7037_s18 = scalar_lea.hbm %s8127_s4, 3072 }
  0x4b   :  { %p7038_p4 = scmp.ne.s32.totalorder %s8127_s4, %s7037_s18  ;;  %p7041_p5 = scmp.lt.u32.totalorder %s7037_s18, %s8127_s4 }
  0x4d   :  { %p7043_p6 = pnand %p7041_p5, %p7038_p4 }
  0x4f   :  { %7046 = shalt.err (!%p7043_p6)
}
  0x50   :  { %s7047_s16 = scalar_lea.vmem %s60_s29, 3072  ;;  %p7052_p8 = scmp.lt.s32.totalorder %s60_s29, %s60_s29 }
  0x51   :  { %p7048_p7 = scmp.ne.s32.totalorder %s60_s29, %s7047_s16  ;;  %p7053_p9 = scmp.lt.s32.totalorder %s7047_s16, %s7047_s16 }
  0x53   :  { %p7054_p10 = por %p7053_p9, %p7052_p8 }
  0x55   :  { %p7055_p11 = pnand %p7054_p10, %p7048_p7 }
  0x57   :  { %7058 = shalt.err (!%p7055_p11)
}
  0x58   :  { %65 = dma.hbm_to_vmem [thread:$0]  %s8127_s4, 3072, %s60_s29, [#allocation6], %s7164_s19, %s7164_s19, %s7165_s28  }
  0x59   :  { %s7168_s17 = smov [#allocation10]   ;;  %s7169_s22 = smov [#allocation13]  }
  0x5a   :  { %s89_s20 = sshll.u32 %s7168_s17, 4  ;;  %s115_s23 = sshll.u32 %s7169_s22, 4  ;;  %s90_s20 = int_to_ptr.vmem [resolvable:$true] %s89_s20  ;;  %s116_s23 = int_to_ptr.vmem [resolvable:$true] %s115_s23 }
  0x5b   :  { %s7059_s24 = scalar_lea.hbm %s8132_s9, 3072 }
  0x5c   :  { %p7060_p12 = scmp.ne.s32.totalorder %s8132_s9, %s7059_s24  ;;  %p7063_p13 = scmp.lt.u32.totalorder %s7059_s24, %s8132_s9 }
  0x5e   :  { %p7065_p0 = pnand %p7063_p13, %p7060_p12 }
  0x60   :  { %7068 = shalt.err (!%p7065_p0)
}
  0x61   :  { %s7069_s4 = scalar_lea.vmem %s90_s20, 3072  ;;  %p7074_p2 = scmp.lt.s32.totalorder %s90_s20, %s90_s20 }
  0x62   :  { %p7070_p1 = scmp.ne.s32.totalorder %s90_s20, %s7069_s4  ;;  %p7075_p3 = scmp.lt.s32.totalorder %s7069_s4, %s7069_s4 }
  0x64   :  { %p7076_p4 = por %p7075_p3, %p7074_p2 }
  0x66   :  { %p7077_p5 = pnand %p7076_p4, %p7070_p1 }
  0x68   :  { %7080 = shalt.err (!%p7077_p5)
}
  0x69   :  { %95 = dma.hbm_to_vmem [thread:$0]  %s8132_s9, 3072, %s90_s20, [#allocation9], %s7164_s19, %s7164_s19, %s7165_s28  }
  0x6a   :  { %s7081_s16 = scalar_lea.hbm %s8135_s12, 3072 }
  0x6b   :  { %p7082_p6 = scmp.ne.s32.totalorder %s8135_s12, %s7081_s16  ;;  %p7085_p7 = scmp.lt.u32.totalorder %s7081_s16, %s8135_s12 }
  0x6d   :  { %p7087_p8 = pnand %p7085_p7, %p7082_p6 }
  0x6f   :  { %7090 = shalt.err (!%p7087_p8)
}
  0x70   :  { %s7091_s10 = scalar_lea.vmem %s116_s23, 3072  ;;  %p7096_p10 = scmp.lt.s32.totalorder %s116_s23, %s116_s23 }
  0x71   :  { %p7092_p9 = scmp.ne.s32.totalorder %s116_s23, %s7091_s10  ;;  %p7097_p11 = scmp.lt.s32.totalorder %s7091_s10, %s7091_s10 }
  0x73   :  { %p7098_p12 = por %p7097_p11, %p7096_p10 }
  0x75   :  { %p7099_p13 = pnand %p7098_p12, %p7092_p9 }
  0x77   :  { %7102 = shalt.err (!%p7099_p13)
}
  0x78   :  { %121 = dma.hbm_to_vmem [thread:$0]  %s8135_s12, 3072, %s116_s23, [#allocation12], %s7164_s19, %s7164_s19, %s7165_s28  }
  0x79   :  { %s7170_s21 = smov [#allocation14]   ;;  %s7103_s18 = scalar_lea.hbm %s8136_s13, 3072 }
  0x7a   :  { %s127_s24 = sshll.u32 %s7170_s21, 4  ;;  %p7104_p0 = scmp.ne.s32.totalorder %s8136_s13, %s7103_s18  ;;  %s128_s24 = int_to_ptr.vmem [resolvable:$true] %s127_s24 }
  0x7b   :  { %p7107_p1 = scmp.lt.u32.totalorder %s7103_s18, %s8136_s13 }
  0x7d   :  { %p7109_p2 = pnand %p7107_p1, %p7104_p0 }
  0x7f   :  { %7112 = shalt.err (!%p7109_p2)
}
  0x80   :  { %s7113_s30 = scalar_lea.vmem %s128_s24, 3072  ;;  %p7118_p4 = scmp.lt.s32.totalorder %s128_s24, %s128_s24 }
  0x81   :  { %p7114_p3 = scmp.ne.s32.totalorder %s128_s24, %s7113_s30  ;;  %p7119_p5 = scmp.lt.s32.totalorder %s7113_s30, %s7113_s30 }
  0x83   :  { %p7120_p6 = por %p7119_p5, %p7118_p4 }
  0x85   :  { %p7121_p7 = pnand %p7120_p6, %p7114_p3 }
  0x87   :  { %7124 = shalt.err (!%p7121_p7)
}
  0x88   :  { %133 = dma.hbm_to_vmem [thread:$0]  %s8136_s13, 3072, %s128_s24, [#allocation15], %s7164_s19, %s7164_s19, %s7165_s28  }
  0x89   :  { %7147 = dma.done.wait [#allocation3], 1024  }
  0x8a   :  { %7148 = vsyncadd [#allocation3], 4294966272 }
  0x8b   :  { %7149 = dma.done.wait [#allocation6], 4096  }
  0x8c   :  { %7150 = vsyncadd [#allocation6], 4294963200 }
  0x8d   :  { %7151 = dma.done.wait [#allocation9], 6144  }
  0x8e   :  { %7152 = vsyncadd [#allocation9], 4294961152 }
  0x8f   :  { %7153 = dma.done.wait [#allocation12], 6144  }
  0x90   :  { %7154 = vsyncadd [#allocation12], 4294961152 }
  0x91   :  { %7155 = dma.done.wait [#allocation15], 3072  }
  0x92   :  { %7156 = vsyncadd [#allocation15], 4294964224  ;;  %vm181_vm0 = vcmask 261120   ;;  %v177_v0 = vld [vmem:[#allocation7] sm:$0xff]  ;;  %v178_v1 = vld [vmem:[#allocation7 + $0x8] sm:$0xff]  ;;  %vm279_vm1 = vcmask 15360  }
  0x93   :  { %v179_v2 = vld [vmem:[#allocation7 + $0x10] sm:$0xff]  ;;  %v6349_v3 = vpack.c.bf16 %v178_v1, %v177_v0  ;;  %v180_v4 = vld [vmem:[#allocation7 + $0x18] sm:$0xff]  ;;  %v7372_v5 = vld [vmem:[#allocation2] sm:$0xff]  ;;  %vm292_vm2 = vcmask 1041408   ;;  %v7171_v50 = vmov 0.0|0.0   ;;  %vm1288_vm3 = vcmask 523264  }
  0x94   :  { %v6353_v6 = vpack.c.bf16 %v180_v4, %v179_v2  ;;  %5757 = vmatprep.mubr.msk.f32.mxu1 %vm181_vm0, %v7372_v5  ;;  %v7379_v7 = vld [vmem:[%s8123_s0] sm:$0xff]  ;;  %v385_v10 = vld [vmem:[#allocation7 + $0x28] sm:$0xff]  ;;  %v7393_v15 = vld [vmem:[#allocation2 + $0x10] sm:$0xff] }
  0x95   :  { %6350 = vmatprep.subr.bf16.mxu1 %v6349_v3  ;;  %5809 = vmatprep.mubr.msk.f32.mxu0 %vm279_vm1, %v7379_v7  ;;  %v176_v8 = vld [vmem:[%s8126_s3] sm:$0x3]  ;;  %v5178_v11 = vld [vmem:[%s8126_s3 + $0x4] sm:$0x3]  ;;  %v7389_v12 = vld [vmem:[#allocation2 + $0x8] sm:$0xff] }
  0x96   :  { %6352 = vmatpush3.bf16.msra.mxu1 %v6349_v3  ;;  %v384_v9 = vld [vmem:[#allocation7 + $0x20] sm:$0xff]  ;;  %5807 = vmatprep.subr.msk.mxu0 %vm292_vm2, %v5178_v11  ;;  %v925_v14 = vld [vmem:[#allocation7 + $0x88] sm:$0xff]  ;;  %v926_v19 = vld [vmem:[#allocation7 + $0x90] sm:$0xff] }
  0x97   :  { %6354 = vmatprep.subr.bf16.mxu1 %v6353_v6  ;;  %v924_v13 = vld [vmem:[#allocation7 + $0x80] sm:$0xff]  ;;  %v7398_v16 = vld [vmem:[%s8123_s0 + $0x8] sm:$0xff]  ;;  %v6357_v17 = vpack.c.bf16 %v385_v10, %v384_v9  ;;  %5808 = vmatpush3.msk.msra.mxu0 %vm292_vm2, %v5178_v11  ;;  %v927_v20 = vld [vmem:[#allocation7 + $0x98] sm:$0xff] }
  0x98   :  { %v6381_v18 = vpack.c.bf16 %v925_v14, %v924_v13  ;;  %5810 = vmatmul.mubr.msk.f32.vlgmr.msra.gmra.mrb[0].mxu0 %vm279_vm1, %v7398_v16  ;;  %v6385_v21 = vpack.c.bf16 %v927_v20, %v926_v19  ;;  %v7408_v22 = vld [vmem:[#allocation2 + $0x18] sm:$0xff]  ;;  %v7413_v23 = vld [vmem:[%s8123_s0 + $0x10] sm:$0xff]  ;;  %v5198_v27 = vld [vmem:[%s8126_s3 + $0x8] sm:$0x3] }
  0x99   :  { %v7418_v24 = vld [vmem:[%s8123_s0 + $0x18] sm:$0xff]  ;;  %v386_v25 = vld [vmem:[#allocation7 + $0x30] sm:$0xff]  ;;  %5812 = vmatprep.mubr.msk.f32.mxu0 %vm279_vm1, %v7413_v23  ;;  %v5168_v29 = vld [vmem:[%s8126_s3 + $0x2] sm:$0x3] }
  0x9a   :  { %6356 = vmatpush3.bf16.msra.mxu1 %v6353_v6  ;;  %6382 = vmatprep.subr.bf16.mxu0 %v6381_v18  ;;  %v387_v26 = vld [vmem:[#allocation7 + $0x38] sm:$0xff]  ;;  %v564_v30 = vld [vmem:[#allocation7 + $0x40] sm:$0xff]  ;;  %v565_v31 = vld [vmem:[#allocation7 + $0x48] sm:$0xff] }
  0x9b   :  { %5763 = vmatprep.subr.msk.mxu1 %vm292_vm2, %v176_v8  ;;  %6384 = vmatpush3.bf16.msra.mxu0 %v6381_v18  ;;  %v6361_v28 = vpack.c.bf16 %v387_v26, %v386_v25  ;;  %v6365_v32 = vpack.c.bf16 %v565_v31, %v564_v30  ;;  %v566_v33 = vld [vmem:[#allocation7 + $0x50] sm:$0xff]  ;;  %v567_v34 = vld [vmem:[#allocation7 + $0x58] sm:$0xff]  ;;  %v744_v36 = vld [vmem:[#allocation7 + $0x60] sm:$0xff] }
  0x9c   :  { %6386 = vmatprep.subr.bf16.mxu0 %v6385_v21  ;;  %5813 = vmatmul.mubr.msk.f32.gmra.mrb[2].mxu0 %vm279_vm1, %v7418_v24  ;;  %v6369_v35 = vpack.c.bf16 %v567_v34, %v566_v33  ;;  %v745_v37 = vld [vmem:[#allocation7 + $0x68] sm:$0xff]  ;;  %v746_v39 = vld [vmem:[#allocation7 + $0x70] sm:$0xff]  ;;  %v747_v40 = vld [vmem:[#allocation7 + $0x78] sm:$0xff] }
  0x9d   :  { %5758 = vmatmul.mubr.msk.f32.vlgmr.msra.gmra.mrb[0].mxu1 %vm181_vm0, %v7389_v12  ;;  %5845 = vmatprep.mubr.msk.f32.mxu0 %vm181_vm0, %v7372_v5  ;;  %v6373_v38 = vpack.c.bf16 %v745_v37, %v744_v36  ;;  %v6377_v41 = vpack.c.bf16 %v747_v40, %v746_v39  ;;  %v5188_v42 = vld [vmem:[%s8126_s3 + $0x6] sm:$0x3]  ;;  %v1105_v44 = vld [vmem:[#allocation7 + $0xa8] sm:$0xff]  ;;  %v1106_v46 = vld [vmem:[#allocation7 + $0xb0] sm:$0xff] }
  0x9e   :  { %5764 = vmatpush3.msk.msra.mxu1 %vm292_vm2, %v176_v8  ;;  %5760 = vmatprep.mubr.msk.f32.mxu1 %vm181_vm0, %v7393_v15  ;;  %v1104_v43 = vld [vmem:[#allocation7 + $0xa0] sm:$0xff]  ;;  %v1107_v47 = vld [vmem:[#allocation7 + $0xb8] sm:$0xff]  ;;  %v5208_v49 = vld [vmem:[%s8126_s3 + $0xa] sm:$0x3]  ;;  %s7172_s3 = smov 32  }
  0x9f   :  { %6358 = vmatprep.subr.bf16.mxu1 %v6357_v17  ;;  %6388 = vmatpush3.bf16.msra.mxu0 %v6385_v21  ;;  %v6389_v45 = vpack.c.bf16 %v1105_v44, %v1104_v43  ;;  %v6393_v48 = vpack.c.bf16 %v1107_v47, %v1106_v46  ;;  %v7527_v51 = vld [vmem:[#allocation5 + $0x8] sm:$0xff]  ;;  %v7546_v40 = vld [vmem:[#allocation5] sm:$0xff]  ;;  %v7567_v46 = vld [vmem:[#allocation5 + $0x30] sm:$0xff] }
  0xa0   :  { %5851 = vmatprep.subr.msk.mxu0 %vm292_vm2, %v5198_v27  ;;  %2600 = vrot.lane.b32.xlu0 %v7372_v5, %s7172_s3  ;;  %v7555_v43 = vld [vmem:[#allocation5 + $0x28] sm:$0xff]  ;;  %v7560_v44 = vld [vmem:[#allocation5 + $0x20] sm:$0xff] }
  0xa1   :  { %5761 = vmatmul.mubr.msk.f32.gmra.mrb[2].mxu1 %vm181_vm0, %v7408_v22  ;;  %2602 = vrot.lane.b32.xlu1 %v7389_v12, %s7172_s3  ;;  %v1415_v47 = vld [vmem:[#allocation8] sm:$0xff] }
  0xa2   :  { %5765 = vmatprep.mubr.msk.f32.mxu1 %vm279_vm1, %v7379_v7  ;;  %5846 = vmatmul.mubr.msk.f32.vlgmr.msra.gmra.mrb[4].mxu0 %vm181_vm0, %v7389_v12 }
  0xa3   :  { %5848 = vmatprep.mubr.msk.f32.mxu0 %vm181_vm0, %v7393_v15  ;;  %5852 = vmatpush3.msk.msra.mxu0 %vm292_vm2, %v5198_v27 }
  0xa4   :  { %6397 = vmatprep.subr.bf16.mxu0 %v7171_v50 }
  0xa5   :  { %5766 = vmatmul.mubr.msk.f32.vlgmr.msra.gmra.mrb[0].mxu1 %vm279_vm1, %v7398_v16 }
  0xa6   :  { %6360 = vmatpush3.bf16.msra.mxu1 %v6357_v17  ;;  %5768 = vmatprep.mubr.msk.f32.mxu1 %vm279_vm1, %v7413_v23 }
  0xa7   :  { %6362 = vmatprep.subr.bf16.mxu1 %v6361_v28  ;;  %5849 = vmatmul.mubr.msk.f32.gmra.mrb[6].mxu0 %vm181_vm0, %v7408_v22 }
  0xa8   :  { %5853 = vmatprep.mubr.msk.f32.mxu0 %vm279_vm1, %v7379_v7 }
  0xa9   :  { %5769 = vmatmul.mubr.msk.f32.gmra.mrb[2].mxu1 %vm279_vm1, %v7418_v24 }
  0xaa   :  { %6364 = vmatpush3.bf16.msra.mxu1 %v6361_v28  ;;  %5779 = vmatprep.mubr.msk.f32.mxu1 %vm181_vm0, %v7372_v5 }
  0xab   :  { %5785 = vmatprep.subr.msk.mxu1 %vm292_vm2, %v5168_v29  ;;  %5854 = vmatmul.mubr.msk.f32.vlgmr.msra.gmra.mrb[4].mxu0 %vm279_vm1, %v7398_v16 }
  0xac   :  { %5856 = vmatprep.mubr.msk.f32.mxu0 %vm279_vm1, %v7413_v23 }
  0xad   :  { %5780 = vmatmul.mubr.msk.f32.vlgmr.msra.gmra.mrb[4].mxu1 %vm181_vm0, %v7389_v12 }
  0xae   :  { %5786 = vmatpush3.msk.msra.mxu1 %vm292_vm2, %v5168_v29  ;;  %5782 = vmatprep.mubr.msk.f32.mxu1 %vm181_vm0, %v7393_v15 }
  0xaf   :  { %6366 = vmatprep.subr.bf16.mxu1 %v6365_v32  ;;  %5857 = vmatmul.mubr.msk.f32.gmra.mrb[6].mxu0 %vm279_vm1, %v7418_v24 }
  0xb0   :  { %5219 = vmatprep.mubr.msk.f32.mxu0 %vm1288_vm3, %v7527_v51 }
  0xb1   :  { %5783 = vmatmul.mubr.msk.f32.gmra.mrb[6].mxu1 %vm181_vm0, %v7408_v22 }
  0xb2   :  { %5787 = vmatprep.mubr.msk.f32.mxu1 %vm279_vm1, %v7379_v7 }
  0xb5   :  { %5788 = vmatmul.mubr.msk.f32.vlgmr.msra.gmra.mrb[4].mxu1 %vm279_vm1, %v7398_v16 }
  0xb6   :  { %6368 = vmatpush3.bf16.msra.mxu1 %v6365_v32  ;;  %5790 = vmatprep.mubr.msk.f32.mxu1 %vm279_vm1, %v7413_v23 }
  0xb7   :  { %6370 = vmatprep.subr.bf16.mxu1 %v6369_v35 }
  0xb9   :  { %5791 = vmatmul.mubr.msk.f32.gmra.mrb[6].mxu1 %vm279_vm1, %v7418_v24 }
  0xba   :  { %6372 = vmatpush3.bf16.msra.mxu1 %v6369_v35  ;;  %5801 = vmatprep.mubr.msk.f32.mxu1 %vm181_vm0, %v7372_v5 }
  0xbb   :  { %6374 = vmatprep.subr.bf16.mxu1 %v6373_v38 }
  0xbd   :  { %5802 = vmatmul.mubr.msk.f32.vlgmr.msra.gmra.mrb[8].mxu1 %vm181_vm0, %v7389_v12 }
  0xbe   :  { %6376 = vmatpush3.bf16.msra.mxu1 %v6373_v38  ;;  %5804 = vmatprep.mubr.msk.f32.mxu1 %vm181_vm0, %v7393_v15 }
  0xbf   :  { %6378 = vmatprep.subr.bf16.mxu1 %v6377_v41 }
  0xc1   :  { %5805 = vmatmul.mubr.msk.f32.gmra.mrb[10].mxu1 %vm181_vm0, %v7408_v22 }
  0xc2   :  { %6380 = vmatpush3.bf16.msra.mxu1 %v6377_v41  ;;  %5823 = vmatprep.mubr.msk.f32.mxu1 %vm181_vm0, %v7372_v5  ;;  %v7548_v41 = vld [vmem:[#allocation5 + $0x18] sm:$0xff] }
  0xc3   :  { %5829 = vmatprep.subr.msk.mxu1 %vm292_vm2, %v5188_v42 }
  0xc5   :  { %5824 = vmatmul.mubr.msk.f32.vlgmr.msra.gmra.mrb[12].mxu1 %vm181_vm0, %v7389_v12 }
  0xc6   :  { %5830 = vmatpush3.msk.msra.mxu1 %vm292_vm2, %v5188_v42  ;;  %5826 = vmatprep.mubr.msk.f32.mxu1 %vm181_vm0, %v7393_v15  ;;  %v7553_v42 = vld [vmem:[#allocation5 + $0x10] sm:$0xff] }
  0xc7   :  { %6390 = vmatprep.subr.bf16.mxu1 %v6389_v45 }
  0xc9   :  { %5827 = vmatmul.mubr.msk.f32.gmra.mrb[14].mxu1 %vm181_vm0, %v7408_v22 }
  0xca   :  { %5831 = vmatprep.mubr.msk.f32.mxu1 %vm279_vm1, %v7379_v7 }
  0xcd   :  { %5832 = vmatmul.mubr.msk.f32.vlgmr.msra.gmra.mrb[12].mxu1 %vm279_vm1, %v7398_v16 }
  0xce   :  { %6392 = vmatpush3.bf16.msra.mxu1 %v6389_v45  ;;  %5834 = vmatprep.mubr.msk.f32.mxu1 %vm279_vm1, %v7413_v23  ;;  %v7562_v45 = vld [vmem:[#allocation5 + $0x38] sm:$0xff] }
  0xcf   :  { %6394 = vmatprep.subr.bf16.mxu1 %v6393_v48 }
  0xd1   :  { %5835 = vmatmul.mubr.msk.f32.gmra.mrb[14].mxu1 %vm279_vm1, %v7418_v24 }
  0xd2   :  { %6396 = vmatpush3.bf16.msra.mxu1 %v6393_v48  ;;  %5867 = vmatprep.mubr.msk.f32.mxu1 %vm181_vm0, %v7372_v5  ;;  %v1416_v48 = vld [vmem:[#allocation8 + $0x8] sm:$0xff] }
  0xd3   :  { %5873 = vmatprep.subr.msk.mxu1 %vm292_vm2, %v5208_v49 }
  0xd5   :  { %5868 = vmatmul.mubr.msk.f32.vlgmr.msra.gmra.mrb[16].mxu1 %vm181_vm0, %v7389_v12 }
  0xd6   :  { %5874 = vmatpush3.msk.msra.mxu1 %vm292_vm2, %v5208_v49  ;;  %5870 = vmatprep.mubr.msk.f32.mxu1 %vm181_vm0, %v7393_v15  ;;  %v2147_v49 = vld [vmem:[#allocation8 + $0x80] sm:$0xff] }
  0xd9   :  { %5871 = vmatmul.mubr.msk.f32.gmra.mrb[18].mxu1 %vm181_vm0, %v7408_v22 }
  0xda   :  { %5875 = vmatprep.mubr.msk.f32.mxu1 %vm279_vm1, %v7379_v7 }
  0xdd   :  { %5876 = vmatmul.mubr.msk.f32.vlgmr.msra.gmra.mrb[16].mxu1 %vm279_vm1, %v7398_v16 }
  0xde   :  { %5878 = vmatprep.mubr.msk.f32.mxu1 %vm279_vm1, %v7413_v23 }
  0xe1   :  { %5879 = vmatmul.mubr.msk.f32.gmra.mrb[18].mxu1 %vm279_vm1, %v7418_v24 }
 0x16b   :  { %v5811_v52 = vpop.f32.mrb[0].mxu0 }
 0x16c   :  { %v722_v53 = vpop.f32.mrb[1].mxu0 }
 0x16f   :  { %v5814_v54 = vpop.f32.mrb[2].mxu0 }
 0x170   :  { %v732_v55 = vpop.f32.mrb[3].mxu0 }
 0x178   :  { %v5767_v56 = vpop.f32.mrb[0].mxu1 }
 0x179   :  { %v362_v57 = vpop.f32.mrb[1].mxu1 }
 0x17a   :  { %v6398_v58 = vpack.c.bf16 %v5767_v56, %v362_v57  ;;  %v1418_v56 = vld [vmem:[#allocation8 + $0x18] sm:$0xff]  ;;  %v2149_v57 = vld [vmem:[#allocation8 + $0x90] sm:$0xff] }
 0x17c   :  { %v5770_v59 = vpop.f32.mrb[2].mxu1  ;;  %6399 = vmatpush1.bf16.msra.mxu0 %v6398_v58 }
 0x17d   :  { %v372_v60 = vpop.f32.mrb[3].mxu1  ;;  %6400 = vmatprep.subr.bf16.mxu0 %v7171_v50 }
 0x17e   :  { %v6401_v61 = vpack.c.bf16 %v5770_v59, %v372_v60  ;;  %v5855_v62 = vpop.f32.mrb[4].mxu0  ;;  %v2150_v59 = vld [vmem:[#allocation8 + $0x98] sm:$0xff] }
 0x17f   :  { %v1082_v63 = vpop.f32.mrb[5].mxu0  ;;  %v6469_v60 = vpack.c.bf16 %v2150_v59, %v2149_v57  ;;  %v1789_v57 = vld [vmem:[#allocation8 + $0x50] sm:$0xff] }
 0x180   :  { %6402 = vmatpush1.bf16.msra.mxu0 %v6401_v61  ;;  %v6422_v0 = vpack.c.bf16 %v5855_v62, %v1082_v63  ;;  %v1414_v61 = vld [vmem:[%s8129_s6] sm:$0x3]  ;;  %v5266_v62 = vld [vmem:[%s8129_s6 + $0x8] sm:$0x3] }
 0x181   :  { %6403 = vmatprep.subr.bf16.mxu0 %v7171_v50  ;;  %v5218_v63 = vld [vmem:[%s8128_s5] ss:$0 sm:$0xff] }
 0x182   :  { %v5858_v1 = vpop.f32.mrb[6].mxu0 }
 0x183   :  { %v1092_v2 = vpop.f32.mrb[7].mxu0 }
 0x184   :  { %v6425_v4 = vpack.c.bf16 %v5858_v1, %v1092_v2 }
 0x188   :  { %v5789_v3 = vpop.f32.mrb[4].mxu1 }
 0x189   :  { %v542_v6 = vpop.f32.mrb[5].mxu1 }
 0x18a   :  { %v6404_v8 = vpack.c.bf16 %v5789_v3, %v542_v6 }
 0x18c   :  { %v5792_v9 = vpop.f32.mrb[6].mxu1  ;;  %6405 = vmatpush1.bf16.msra.mxu0 %v6404_v8 }
 0x18d   :  { %v552_v10 = vpop.f32.mrb[7].mxu1  ;;  %6406 = vmatprep.subr.bf16.mxu0 %v7171_v50 }
 0x18e   :  { %v6407_v11 = vpack.c.bf16 %v5792_v9, %v552_v10 }
 0x190   :  { %v5803_v13 = vpop.f32.mrb[8].mxu1  ;;  %6408 = vmatpush1.bf16.msra.mxu0 %v6407_v11 }
 0x191   :  { %v728_v14 = vadd.f32 %v5811_v52, %v5803_v13  ;;  %v634_v17 = vpop.f32.mrb[9].mxu1  ;;  %6409 = vmatprep.subr.bf16.mxu0 %v7171_v50  ;;  %v6433_v52 = vpack.c.bf16 %v1416_v48, %v1415_v47  ;;  %v1609_v48 = vld [vmem:[#allocation8 + $0x30] sm:$0xff] }
 0x192   :  { %v723_v18 = vadd.f32 %v722_v53, %v634_v17  ;;  %v2148_v53 = vld [vmem:[#allocation8 + $0x88] sm:$0xff] }
 0x193   :  { %6434 = vmatprep.subr.bf16.mxu1 %v6433_v52 }
 0x194   :  { %v6410_v19 = vpack.c.bf16 %v728_v14, %v723_v18  ;;  %v5806_v20 = vpop.f32.mrb[10].mxu1  ;;  %6436 = vmatpush3.bf16.msra.mxu1 %v6433_v52 }
 0x195   :  { %v738_v21 = vadd.f32 %v5814_v54, %v5806_v20  ;;  %v644_v25 = vpop.f32.mrb[11].mxu1  ;;  %v6465_v54 = vpack.c.bf16 %v2148_v53, %v2147_v49  ;;  %v1610_v49 = vld [vmem:[#allocation8 + $0x38] sm:$0xff]  ;;  %v5236_v53 = vld [vmem:[%s8129_s6 + $0x2] sm:$0x3] }
 0x196   :  { %v733_v26 = vadd.f32 %v732_v55, %v644_v25  ;;  %6411 = vmatpush1.bf16.msra.mxu0 %v6410_v19  ;;  %v1417_v55 = vld [vmem:[#allocation8 + $0x10] sm:$0xff]  ;;  %v6445_v52 = vpack.c.bf16 %v1610_v49, %v1609_v48 }
 0x197   :  { %6412 = vmatprep.subr.bf16.mxu0 %v7171_v50  ;;  %v6437_v58 = vpack.c.bf16 %v1418_v56, %v1417_v55  ;;  %v1788_v55 = vld [vmem:[#allocation8 + $0x48] sm:$0xff] }
 0x198   :  { %v6413_v27 = vpack.c.bf16 %v738_v21, %v733_v26 }
 0x199   :  { %6438 = vmatprep.subr.bf16.mxu1 %v6437_v58 }
 0x19a   :  { %6414 = vmatpush1.bf16.msra.mxu0 %v6413_v27  ;;  %6440 = vmatpush3.bf16.msra.mxu1 %v6437_v58  ;;  %v1790_v58 = vld [vmem:[#allocation8 + $0x58] sm:$0xff] }
 0x19b   :  { %6415 = vmatprep.subr.bf16.mxu0 %v7171_v50  ;;  %5895 = vmatprep.subr.msk.mxu1 %vm292_vm2, %v1414_v61  ;;  %v6453_v59 = vpack.c.bf16 %v1790_v58, %v1789_v57 }
 0x1a0   :  { %v5833_v28 = vpop.f32.mrb[12].mxu1 }
 0x1a1   :  { %v902_v29 = vpop.f32.mrb[13].mxu1 }
 0x1a2   :  { %v6416_v30 = vpack.c.bf16 %v5833_v28, %v902_v29 }
 0x1a4   :  { %v5836_v31 = vpop.f32.mrb[14].mxu1  ;;  %6417 = vmatpush1.bf16.msra.mxu0 %v6416_v30 }
 0x1a5   :  { %v912_v32 = vpop.f32.mrb[15].mxu1  ;;  %6418 = vmatprep.subr.bf16.mxu0 %v7171_v50 }
 0x1a6   :  { %v6419_v33 = vpack.c.bf16 %v5836_v31, %v912_v32 }
 0x1a8   :  { %6420 = vmatpush1.bf16.msra.mxu0 %v6419_v33 }
 0x1a9   :  { %6421 = vmatprep.subr.bf16.mxu0 %v7171_v50 }
 0x1ac   :  { %6423 = vmatpush1.bf16.msra.mxu0 %v6422_v0 }
 0x1ad   :  { %6424 = vmatprep.subr.bf16.mxu0 %v7171_v50 }
 0x1b0   :  { %v5877_v34 = vpop.f32.mrb[16].mxu1  ;;  %6426 = vmatpush1.bf16.msra.mxu0 %v6425_v4 }
 0x1b1   :  { %v1262_v35 = vpop.f32.mrb[17].mxu1  ;;  %6427 = vmatprep.subr.bf16.mxu0 %v7171_v50 }
 0x1b2   :  { %v6428_v36 = vpack.c.bf16 %v5877_v34, %v1262_v35  ;;  %v1607_v34 = vld [vmem:[#allocation8 + $0x20] sm:$0xff]  ;;  %v1608_v35 = vld [vmem:[#allocation8 + $0x28] sm:$0xff] }
 0x1b4   :  { %v5880_v37 = vpop.f32.mrb[18].mxu1  ;;  %6429 = vmatpush1.bf16.msra.mxu0 %v6428_v36 }
 0x1b5   :  { %v1272_v38 = vpop.f32.mrb[19].mxu1  ;;  %6430 = vmatprep.subr.bf16.mxu0 %v7171_v50 }
 0x1b6   :  { %v6431_v39 = vpack.c.bf16 %v5880_v37, %v1272_v38  ;;  %v6441_v38 = vpack.c.bf16 %v1608_v35, %v1607_v34 }
 0x1b8   :  { %6432 = vmatpush1.bf16.msra.mxu0 %v6431_v39 }
 0x1b9   :  { %6466 = vmatprep.subr.bf16.mxu0 %v6465_v54 }
 0x1bb   :  { %1366 = vmatmul.mubr.f32.vlgmr.msra.gmra.mrb[8].mxu0 %v7546_v40 }
 0x1bc   :  { %5220 = vmatprep.mubr.msk.f32.mxu0 %vm1288_vm3, %v7548_v41  ;;  %6468 = vmatpush3.bf16.msra.mxu0 %v6465_v54  ;;  %v1787_v54 = vld [vmem:[#allocation8 + $0x40] sm:$0xff] }
 0x1bd   :  { %6470 = vmatprep.subr.bf16.mxu0 %v6469_v60  ;;  %v6449_v56 = vpack.c.bf16 %v1788_v55, %v1787_v54 }
 0x1bf   :  { %1371 = vmatmul.mubr.f32.gmra.mrb[10].mxu0 %v7553_v42 }
 0x1c0   :  { %5221 = vmatprep.mubr.msk.f32.mxu0 %vm1288_vm3, %v7555_v43  ;;  %6472 = vmatpush3.bf16.msra.mxu0 %v6469_v60  ;;  %v1967_v60 = vld [vmem:[#allocation8 + $0x60] sm:$0xff] }
 0x1c1   :  { %5983 = vmatprep.subr.msk.mxu0 %vm292_vm2, %v5266_v62 }
 0x1c3   :  { %1376 = vmatmul.mubr.f32.gmra.mrb[12].mxu0 %v7560_v44 }
 0x1c4   :  { %5222 = vmatprep.mubr.msk.f32.mxu0 %vm1288_vm3, %v7562_v45 }
 0x1c7   :  { %1381 = vmatmul.mubr.f32.gmra.mrb[14].mxu0 %v7567_v46 }
 0x28e   :  { %v1367_v0 = vpop.f32.mrb[8].mxu0 }
 0x28f   :  { %v1368_v1 = vadd.f32 %v5218_v63, %v1367_v0  ;;  %v1369_v2 = vpop.f32.mrb[9].mxu0  ;;  %v1970_v0 = vld [vmem:[#allocation8 + $0x78] sm:$0xff] }
 0x290   :  { %v5256_v2 = vld [vmem:[%s8129_s6 + $0x6] sm:$0x3] }
 0x291   :  { %v5223_v3 = vmul.f32 -1.442695, %v1368_v1 }
 0x292   :  { %v1372_v4 = vpop.f32.mrb[10].mxu0 }
 0x293   :  { %6893 = vpow2.f32 %v5223_v3  ;;  %v1373_v6 = vadd.f32 %v5218_v63, %v1372_v4  ;;  %v1374_v8 = vpop.f32.mrb[11].mxu0  ;;  %v2327_v3 = vld [vmem:[#allocation8 + $0xa0] sm:$0xff]  ;;  %v2328_v4 = vld [vmem:[#allocation8 + $0xa8] sm:$0xff] }
 0x294   :  { %v2329_v8 = vld [vmem:[#allocation8 + $0xb0] sm:$0xff] }
 0x295   :  { %v5224_v9 = vmul.f32 -1.442695, %v1373_v6  ;;  %v6473_v6 = vpack.c.bf16 %v2328_v4, %v2327_v3  ;;  %v2673_v4 = vld [vmem:[#allocation11] sm:$0xff] }
 0x296   :  { %v1377_v10 = vpop.f32.mrb[12].mxu0 }
 0x297   :  { %6895 = vpow2.f32 %v5224_v9  ;;  %v1378_v11 = vadd.f32 %v5218_v63, %v1377_v10  ;;  %v1379_v13 = vpop.f32.mrb[13].mxu0  ;;  %v2330_v9 = vld [vmem:[#allocation8 + $0xb8] sm:$0xff] }
 0x298   :  { %v6477_v10 = vpack.c.bf16 %v2330_v9, %v2329_v8  ;;  %v3233_v8 = vld [vmem:[#allocation11 + $0x60] sm:$0xff] }
 0x299   :  { %v5225_v14 = vmul.f32 -1.442695, %v1378_v11  ;;  %v5276_v11 = vld [vmem:[%s8129_s6 + $0xa] sm:$0x3] }
 0x29a   :  { %v1382_v17 = vpop.f32.mrb[14].mxu0 }
 0x29b   :  { %6897 = vpow2.f32 %v5225_v14  ;;  %v1383_v18 = vadd.f32 %v5218_v63, %v1382_v17  ;;  %v1384_v19 = vpop.f32.mrb[15].mxu0  ;;  %v1969_v63 = vld [vmem:[#allocation8 + $0x70] sm:$0xff] }
 0x29c   :  { %v6461_v1 = vpack.c.bf16 %v1970_v0, %v1969_v63 }
 0x29d   :  { %v6894_v20 = vpop.eup %6893  ;;  %v5226_v21 = vmul.f32 -1.442695, %v1383_v18 }
 0x29e   :  { %v1398_v25 = vadd.f32 1.0, %v6894_v20 }
 0x29f   :  { %6899 = vpow2.f32 %v5226_v21 }
 0x2a0   :  { %6901 = vrcp.f32 %v1398_v25 }
 0x2a1   :  { %v6896_v26 = vpop.eup %6895 }
 0x2a2   :  { %v1399_v27 = vadd.f32 1.0, %v6896_v26 }
 0x2a4   :  { %6903 = vrcp.f32 %v1399_v27 }
 0x2a5   :  { %v6898_v28 = vpop.eup %6897 }
 0x2a6   :  { %v1400_v29 = vadd.f32 1.0, %v6898_v28 }
 0x2a8   :  { %6905 = vrcp.f32 %v1400_v29 }
 0x2a9   :  { %v6900_v30 = vpop.eup %6899 }
 0x2aa   :  { %v7581_v31 = vpop.eup %6901  ;;  %v1401_v32 = vadd.f32 1.0, %v6900_v30 }
 0x2ab   :  { %v7585_v33 = vmul.f32 %v7581_v31, %v7372_v5 }
 0x2ac   :  { %6907 = vrcp.f32 %v1401_v32 }
 0x2ad   :  { %5889 = vmatprep.mubr.msk.f32.mxu1 %vm181_vm0, %v7585_v33  ;;  %5977 = vmatprep.mubr.msk.f32.mxu0 %vm181_vm0, %v7585_v33 }
 0x2ae   :  { %v7591_v36 = vpop.eup %6903 }
 0x2af   :  { %v7595_v37 = vmul.f32 %v7591_v36, %v7389_v12 }
 0x2b1   :  { %5890 = vmatmul.mubr.msk.f32.vlgmr.msra.gmra.mrb[20].mxu1 %vm181_vm0, %v7595_v37  ;;  %5978 = vmatmul.mubr.msk.f32.vlgmr.msra.gmra.mrb[16].mxu0 %vm181_vm0, %v7595_v37 }
 0x2b2   :  { %v7601_v5 = vpop.eup %6905  ;;  %5896 = vmatpush3.msk.msra.mxu1 %vm292_vm2, %v1414_v61  ;;  %5984 = vmatpush3.msk.msra.mxu0 %vm292_vm2, %v5266_v62  ;;  %v1968_v61 = vld [vmem:[#allocation8 + $0x68] sm:$0xff] }
 0x2b3   :  { %v7607_v39 = vmul.f32 %v7601_v5, %v7393_v15  ;;  %6442 = vmatprep.subr.bf16.mxu1 %v6441_v38  ;;  %6481 = vmatprep.subr.bf16.mxu0 %v7171_v50  ;;  %v6457_v62 = vpack.c.bf16 %v1968_v61, %v1967_v60  ;;  %v5286_v60 = vld [vmem:[%s8131_s8] ss:$0 sm:$0xff]  ;;  %s7173_s8 = smov 96  }
 0x2b5   :  { %5892 = vmatprep.mubr.msk.f32.mxu1 %vm181_vm0, %v7607_v39  ;;  %5980 = vmatprep.mubr.msk.f32.mxu0 %vm181_vm0, %v7607_v39 }
 0x2b6   :  { %v7614_v12 = vpop.eup %6907 }
 0x2b7   :  { %v7618_v47 = vmul.f32 %v7614_v12, %v7408_v22 }
 0x2b9   :  { %5893 = vmatmul.mubr.msk.f32.gmra.mrb[22].mxu1 %vm181_vm0, %v7618_v47  ;;  %5981 = vmatmul.mubr.msk.f32.gmra.mrb[18].mxu0 %vm181_vm0, %v7618_v47 }
 0x2ba   :  { %5897 = vmatprep.mubr.msk.f32.mxu1 %vm279_vm1, %v7379_v7  ;;  %5985 = vmatprep.mubr.msk.f32.mxu0 %vm279_vm1, %v7379_v7 }
 0x2bd   :  { %5898 = vmatmul.mubr.msk.f32.vlgmr.msra.gmra.mrb[20].mxu1 %vm279_vm1, %v7398_v16  ;;  %5986 = vmatmul.mubr.msk.f32.vlgmr.msra.gmra.mrb[16].mxu0 %vm279_vm1, %v7398_v16 }
 0x2be   :  { %6444 = vmatpush3.bf16.msra.mxu1 %v6441_v38  ;;  %5900 = vmatprep.mubr.msk.f32.mxu1 %vm279_vm1, %v7413_v23 }
 0x2bf   :  { %5988 = vmatprep.mubr.msk.f32.mxu0 %vm279_vm1, %v7413_v23  ;;  %6446 = vmatprep.subr.bf16.mxu1 %v6445_v52 }
 0x2c1   :  { %5901 = vmatmul.mubr.msk.f32.gmra.mrb[22].mxu1 %vm279_vm1, %v7418_v24  ;;  %5989 = vmatmul.mubr.msk.f32.gmra.mrb[18].mxu0 %vm279_vm1, %v7418_v24 }
 0x2c2   :  { %6448 = vmatpush3.bf16.msra.mxu1 %v6445_v52  ;;  %5911 = vmatprep.mubr.msk.f32.mxu1 %vm181_vm0, %v7585_v33 }
 0x2c3   :  { %5917 = vmatprep.subr.msk.mxu1 %vm292_vm2, %v5236_v53  ;;  %5287 = vmatprep.mubr.msk.f32.mxu0 %vm1288_vm3, %v7527_v51  ;;  %v5246_v51 = vld [vmem:[%s8129_s6 + $0x4] sm:$0x3] }
 0x2c5   :  { %5912 = vmatmul.mubr.msk.f32.vlgmr.msra.gmra.mrb[24].mxu1 %vm181_vm0, %v7595_v37 }
 0x2c6   :  { %5914 = vmatprep.mubr.msk.f32.mxu1 %vm181_vm0, %v7607_v39  ;;  %5918 = vmatpush3.msk.msra.mxu1 %vm292_vm2, %v5236_v53 }
 0x2c7   :  { %6450 = vmatprep.subr.bf16.mxu1 %v6449_v56 }
 0x2c9   :  { %5915 = vmatmul.mubr.msk.f32.gmra.mrb[26].mxu1 %vm181_vm0, %v7618_v47 }
 0x2ca   :  { %5919 = vmatprep.mubr.msk.f32.mxu1 %vm279_vm1, %v7379_v7 }
 0x2cd   :  { %5920 = vmatmul.mubr.msk.f32.vlgmr.msra.gmra.mrb[24].mxu1 %vm279_vm1, %v7398_v16 }
 0x2ce   :  { %6452 = vmatpush3.bf16.msra.mxu1 %v6449_v56  ;;  %5922 = vmatprep.mubr.msk.f32.mxu1 %vm279_vm1, %v7413_v23 }
 0x2cf   :  { %6454 = vmatprep.subr.bf16.mxu1 %v6453_v59 }
 0x2d1   :  { %5923 = vmatmul.mubr.msk.f32.gmra.mrb[26].mxu1 %vm279_vm1, %v7418_v24 }
 0x2d2   :  { %6456 = vmatpush3.bf16.msra.mxu1 %v6453_v59  ;;  %5933 = vmatprep.mubr.msk.f32.mxu1 %vm181_vm0, %v7585_v33 }
 0x2d3   :  { %5939 = vmatprep.subr.msk.mxu1 %vm292_vm2, %v5246_v51 }
 0x2d5   :  { %5934 = vmatmul.mubr.msk.f32.vlgmr.msra.gmra.mrb[28].mxu1 %vm181_vm0, %v7595_v37 }
 0x2d6   :  { %5936 = vmatprep.mubr.msk.f32.mxu1 %vm181_vm0, %v7607_v39  ;;  %5940 = vmatpush3.msk.msra.mxu1 %vm292_vm2, %v5246_v51 }
 0x2d7   :  { %6458 = vmatprep.subr.bf16.mxu1 %v6457_v62 }
 0x2d9   :  { %5937 = vmatmul.mubr.msk.f32.gmra.mrb[30].mxu1 %vm181_vm0, %v7618_v47 }
 0x2da   :  { %5941 = vmatprep.mubr.msk.f32.mxu1 %vm279_vm1, %v7379_v7 }
 0x2dd   :  { %5942 = vmatmul.mubr.msk.f32.vlgmr.msra.gmra.mrb[28].mxu1 %vm279_vm1, %v7398_v16 }
 0x2de   :  { %6460 = vmatpush3.bf16.msra.mxu1 %v6457_v62  ;;  %5944 = vmatprep.mubr.msk.f32.mxu1 %vm279_vm1, %v7413_v23 }
 0x2df   :  { %6462 = vmatprep.subr.bf16.mxu1 %v6461_v1 }
 0x2e1   :  { %5945 = vmatmul.mubr.msk.f32.gmra.mrb[30].mxu1 %vm279_vm1, %v7418_v24 }
 0x2e2   :  { %6464 = vmatpush3.bf16.msra.mxu1 %v6461_v1  ;;  %5955 = vmatprep.mubr.msk.f32.mxu1 %vm181_vm0, %v7585_v33 }
 0x2e3   :  { %5961 = vmatprep.subr.msk.mxu1 %vm292_vm2, %v5256_v2 }
 0x2e5   :  { %5956 = vmatmul.mubr.msk.f32.vlgmr.msra.gmra.mrb[32].mxu1 %vm181_vm0, %v7595_v37 }
 0x2e6   :  { %5958 = vmatprep.mubr.msk.f32.mxu1 %vm181_vm0, %v7607_v39  ;;  %5962 = vmatpush3.msk.msra.mxu1 %vm292_vm2, %v5256_v2 }
 0x2e7   :  { %6474 = vmatprep.subr.bf16.mxu1 %v6473_v6 }
 0x2e9   :  { %5959 = vmatmul.mubr.msk.f32.gmra.mrb[34].mxu1 %vm181_vm0, %v7618_v47 }
 0x2ea   :  { %5963 = vmatprep.mubr.msk.f32.mxu1 %vm279_vm1, %v7379_v7 }
 0x2ed   :  { %5964 = vmatmul.mubr.msk.f32.vlgmr.msra.gmra.mrb[32].mxu1 %vm279_vm1, %v7398_v16 }
 0x2ee   :  { %6476 = vmatpush3.bf16.msra.mxu1 %v6473_v6  ;;  %5966 = vmatprep.mubr.msk.f32.mxu1 %vm279_vm1, %v7413_v23  ;;  %v2674_v6 = vld [vmem:[#allocation11 + $0x8] sm:$0xff] }
 0x2ef   :  { %6478 = vmatprep.subr.bf16.mxu1 %v6477_v10  ;;  %v6517_v9 = vpack.c.bf16 %v2674_v6, %v2673_v4  ;;  %v3595_v4 = vld [vmem:[#allocation11 + $0xb0] sm:$0xff]  ;;  %v3596_v6 = vld [vmem:[#allocation11 + $0xb8] sm:$0xff] }
 0x2f1   :  { %5967 = vmatmul.mubr.msk.f32.gmra.mrb[34].mxu1 %vm279_vm1, %v7418_v24 }
 0x2f2   :  { %6480 = vmatpush3.bf16.msra.mxu1 %v6477_v10  ;;  %5999 = vmatprep.mubr.msk.f32.mxu1 %vm181_vm0, %v7585_v33  ;;  %v3234_v10 = vld [vmem:[#allocation11 + $0x68] sm:$0xff] }
 0x2f3   :  { %6005 = vmatprep.subr.msk.mxu1 %vm292_vm2, %v5276_v11 }
 0x2f5   :  { %6000 = vmatmul.mubr.msk.f32.vlgmr.msra.gmra.mrb[36].mxu1 %vm181_vm0, %v7595_v37 }
 0x2f6   :  { %6002 = vmatprep.mubr.msk.f32.mxu1 %vm181_vm0, %v7607_v39  ;;  %6006 = vmatpush3.msk.msra.mxu1 %vm292_vm2, %v5276_v11  ;;  %v2675_v11 = vld [vmem:[#allocation11 + $0x10] sm:$0xff] }
 0x2f7   :  { %6518 = vmatprep.subr.bf16.mxu1 %v6517_v9 }
 0x2f9   :  { %6003 = vmatmul.mubr.msk.f32.gmra.mrb[38].mxu1 %vm181_vm0, %v7618_v47 }
 0x2fa   :  { %6007 = vmatprep.mubr.msk.f32.mxu1 %vm279_vm1, %v7379_v7 }
 0x2fd   :  { %6008 = vmatmul.mubr.msk.f32.vlgmr.msra.gmra.mrb[36].mxu1 %vm279_vm1, %v7398_v16 }
 0x2fe   :  { %6010 = vmatprep.mubr.msk.f32.mxu1 %vm279_vm1, %v7413_v23  ;;  %6520 = vmatpush3.bf16.msra.mxu1 %v6517_v9  ;;  %v6601_v9 = vpack.c.bf16 %v3596_v6, %v3595_v4 }
 0x301   :  { %6011 = vmatmul.mubr.msk.f32.gmra.mrb[38].mxu1 %vm279_vm1, %v7418_v24 }
 0x390   :  { %v5899_v13 = vpop.f32.mrb[20].mxu1  ;;  %v5987_v14 = vpop.f32.mrb[16].mxu0 }
 0x391   :  { %v1585_v17 = vpop.f32.mrb[21].mxu1  ;;  %v2305_v18 = vpop.f32.mrb[17].mxu0 }
 0x392   :  { %v6482_v19 = vpack.c.bf16 %v5899_v13, %v1585_v17  ;;  %v6506_v20 = vpack.c.bf16 %v5987_v14, %v2305_v18  ;;  %v2676_v13 = vld [vmem:[#allocation11 + $0x18] sm:$0xff]  ;;  %v6565_v14 = vpack.c.bf16 %v3234_v10, %v3233_v8  ;;  %v3235_v18 = vld [vmem:[#allocation11 + $0x70] sm:$0xff]  ;;  %v2868_v10 = vld [vmem:[#allocation10 + $0x20] sm:$0xff] }
 0x393   :  { %v6521_v17 = vpack.c.bf16 %v2676_v13, %v2675_v11  ;;  %v2869_v13 = vld [vmem:[#allocation10 + $0x28] sm:$0xff] }
 0x394   :  { %v5902_v21 = vpop.f32.mrb[22].mxu1  ;;  %v5990_v25 = vpop.f32.mrb[18].mxu0  ;;  %6483 = vmatpush1.bf16.msra.mxu0 %v6482_v19  ;;  %v3236_v19 = vld [vmem:[#allocation11 + $0x78] sm:$0xff] }
 0x395   :  { %v1595_v26 = vpop.f32.mrb[23].mxu1  ;;  %v2315_v7 = vpop.f32.mrb[19].mxu0  ;;  %6484 = vmatprep.subr.bf16.mxu0 %v7171_v50  ;;  %6522 = vmatprep.subr.bf16.mxu1 %v6521_v17 }
 0x396   :  { %v6485_v16 = vpack.c.bf16 %v5902_v21, %v1595_v26  ;;  %v6509_v27 = vpack.c.bf16 %v5990_v25, %v2315_v7  ;;  %v6569_v21 = vpack.c.bf16 %v3236_v19, %v3235_v18  ;;  %v2669_v25 = vld [vmem:[#allocation10] sm:$0xff]  ;;  %v2670_v26 = vld [vmem:[#allocation10 + $0x8] sm:$0xff]  ;;  %6524 = vmatpush3.bf16.msra.mxu1 %v6521_v17  ;;  %v6541_v18 = vpack.c.bf16 %v2869_v13, %v2868_v10 }
 0x397   :  { %v3589_v17 = vld [vmem:[#allocation10 + $0xa8] sm:$0xff] }
 0x398   :  { %6486 = vmatpush1.bf16.msra.mxu0 %v6485_v16  ;;  %v3229_v16 = vld [vmem:[#allocation10 + $0x68] sm:$0xff] }
 0x399   :  { %6487 = vmatprep.subr.bf16.mxu0 %v7171_v50 }
 0x3a0   :  { %v5921_v23 = vpop.f32.mrb[24].mxu1 }
 0x3a1   :  { %v1765_v24 = vpop.f32.mrb[25].mxu1 }
 0x3a2   :  { %v6488_v28 = vpack.c.bf16 %v5921_v23, %v1765_v24 }
 0x3a4   :  { %v5924_v29 = vpop.f32.mrb[26].mxu1  ;;  %6489 = vmatpush1.bf16.msra.mxu0 %v6488_v28  ;;  %v7763_v28 = vld [vmem:[#allocation2 + $0x28] sm:$0xff] }
 0x3a5   :  { %v1775_v30 = vpop.f32.mrb[27].mxu1  ;;  %6490 = vmatprep.subr.bf16.mxu0 %v7171_v50 }
 0x3a6   :  { %v6491_v32 = vpack.c.bf16 %v5924_v29, %v1775_v30  ;;  %v7766_v29 = vld [vmem:[#allocation2 + $0x30] sm:$0xff] }
 0x3a7   :  { %v2671_v30 = vld [vmem:[#allocation10 + $0x10] sm:$0xff] }
 0x3a8   :  { %6492 = vmatpush1.bf16.msra.mxu0 %v6491_v32  ;;  %v2672_v32 = vld [vmem:[#allocation10 + $0x18] sm:$0xff] }
 0x3a9   :  { %6493 = vmatprep.subr.bf16.mxu0 %v7171_v50 }
 0x3b0   :  { %v5943_v33 = vpop.f32.mrb[28].mxu1 }
 0x3b1   :  { %v1945_v34 = vpop.f32.mrb[29].mxu1 }
 0x3b2   :  { %v6494_v35 = vpack.c.bf16 %v5943_v33, %v1945_v34  ;;  %v3230_v33 = vld [vmem:[#allocation10 + $0x70] sm:$0xff]  ;;  %v6529_v34 = vpack.c.bf16 %v2672_v32, %v2671_v30  ;;  %v3054_v30 = vld [vmem:[#allocation11 + $0x48] sm:$0xff] }
 0x3b4   :  { %v5946_v37 = vpop.f32.mrb[30].mxu1  ;;  %6495 = vmatpush1.bf16.msra.mxu0 %v6494_v35  ;;  %v3231_v35 = vld [vmem:[#allocation10 + $0x78] sm:$0xff] }
 0x3b5   :  { %v1955_v38 = vpop.f32.mrb[31].mxu1  ;;  %6496 = vmatprep.subr.bf16.mxu0 %v7171_v50 }
 0x3b6   :  { %v6497_v39 = vpack.c.bf16 %v5946_v37, %v1955_v38  ;;  %v6577_v37 = vpack.c.bf16 %v3231_v35, %v3230_v33  ;;  %v2601_v38 = vpop.permute.xlu0 %2600  ;;  %v3055_v33 = vld [vmem:[#allocation11 + $0x50] sm:$0xff] }
 0x3b8   :  { %6498 = vmatpush1.bf16.msra.mxu0 %v6497_v39  ;;  %v2873_v39 = vld [vmem:[#allocation11 + $0x20] sm:$0xff] }
 0x3b9   :  { %6499 = vmatprep.subr.bf16.mxu0 %v7171_v50 }
 0x3c0   :  { %v5965_v47 = vpop.f32.mrb[32].mxu1 }
 0x3c1   :  { %v2125_v48 = vpop.f32.mrb[33].mxu1 }
 0x3c2   :  { %v6500_v49 = vpack.c.bf16 %v5965_v47, %v2125_v48  ;;  %v2874_v47 = vld [vmem:[#allocation11 + $0x28] sm:$0xff]  ;;  %v3593_v48 = vld [vmem:[#allocation11 + $0xa0] sm:$0xff] }
 0x3c4   :  { %v5968_v52 = vpop.f32.mrb[34].mxu1  ;;  %6501 = vmatpush1.bf16.msra.mxu0 %v6500_v49  ;;  %v6533_v49 = vpack.c.bf16 %v2874_v47, %v2873_v39  ;;  %v3050_v47 = vld [vmem:[#allocation10 + $0x50] sm:$0xff] }
 0x3c5   :  { %v2135_v53 = vpop.f32.mrb[35].mxu1  ;;  %6502 = vmatprep.subr.bf16.mxu0 %v7171_v50 }
 0x3c6   :  { %v6503_v54 = vpack.c.bf16 %v5968_v52, %v2135_v53  ;;  %v3594_v52 = vld [vmem:[#allocation11 + $0xa8] sm:$0xff]  ;;  %v2616_v53 = vsub.f32 1.0, %v7581_v31 }
 0x3c8   :  { %6504 = vmatpush1.bf16.msra.mxu0 %v6503_v54  ;;  %v6597_v54 = vpack.c.bf16 %v3594_v52, %v3593_v48  ;;  %v3051_v48 = vld [vmem:[#allocation10 + $0x58] sm:$0xff]  ;;  %v3413_v52 = vld [vmem:[#allocation11 + $0x80] sm:$0xff] }
 0x3c9   :  { %6505 = vmatprep.subr.bf16.mxu0 %v7171_v50 }
 0x3cc   :  { %6507 = vmatpush1.bf16.msra.mxu0 %v6506_v20  ;;  %v7754_v20 = vld [vmem:[#allocation2 + $0x20] sm:$0xff] }
 0x3cd   :  { %6508 = vmatprep.subr.bf16.mxu0 %v7171_v50  ;;  %6021 = vmatprep.mubr.msk.f32.mxu1 %vm181_vm0, %v7754_v20 }
 0x3ce   :  { %6022 = vmatmul.mubr.msk.f32.vlgmr.msra.gmra.mrb[40].mxu1 %vm181_vm0, %v7763_v28 }
 0x3cf   :  { %6024 = vmatprep.mubr.msk.f32.mxu1 %vm181_vm0, %v7766_v29 }
 0x3d0   :  { %v6009_v55 = vpop.f32.mrb[36].mxu1  ;;  %6510 = vmatpush1.bf16.msra.mxu0 %v6509_v27  ;;  %v6525_v27 = vpack.c.bf16 %v2670_v26, %v2669_v25  ;;  %v2870_v26 = vld [vmem:[#allocation10 + $0x30] sm:$0xff] }
 0x3d1   :  { %v2485_v56 = vpop.f32.mrb[37].mxu1  ;;  %6511 = vmatprep.subr.bf16.mxu0 %v7171_v50 }
 0x3d2   :  { %v6512_v57 = vpack.c.bf16 %v6009_v55, %v2485_v56  ;;  %6526 = vmatprep.subr.bf16.mxu1 %v6525_v27  ;;  %v2603_v55 = vpop.permute.xlu1 %2602 }
 0x3d3   :  { %6528 = vmatpush3.bf16.msra.mxu1 %v6525_v27 }
 0x3d4   :  { %v6012_v58 = vpop.f32.mrb[38].mxu1  ;;  %6513 = vmatpush1.bf16.msra.mxu0 %v6512_v57  ;;  %6530 = vmatprep.subr.bf16.mxu1 %v6529_v34  ;;  %v2612_v57 = vmul.f32 %v7581_v31, %v2601_v38  ;;  %v3049_v38 = vld [vmem:[#allocation10 + $0x48] sm:$0xff] }
 0x3d5   :  { %v2495_v59 = vpop.f32.mrb[39].mxu1  ;;  %6514 = vmatprep.subr.bf16.mxu0 %v7171_v50 }
 0x3d6   :  { %v6515_v51 = vpack.c.bf16 %v6012_v58, %v2495_v59 }
 0x3d7   :  { %6532 = vmatpush3.bf16.msra.mxu1 %v6529_v34  ;;  %v3056_v34 = vld [vmem:[#allocation11 + $0x58] sm:$0xff] }
 0x3d8   :  { %6516 = vmatpush1.bf16.msra.mxu0 %v6515_v51  ;;  %6534 = vmatprep.subr.bf16.mxu1 %v6533_v49  ;;  %v2617_v51 = vsub.f32 1.0, %v7591_v36  ;;  %v6553_v35 = vpack.c.bf16 %v3056_v34, %v3055_v33 }
 0x3d9   :  { %6566 = vmatprep.subr.bf16.mxu0 %v6565_v14 }
 0x3db   :  { %2576 = vmatmul.mubr.f32.vlgmr.msra.gmra.mrb[20].mxu0 %v7546_v40 }
 0x3dc   :  { %5288 = vmatprep.mubr.msk.f32.mxu0 %vm1288_vm3, %v7548_v41  ;;  %6568 = vmatpush3.bf16.msra.mxu0 %v6565_v14  ;;  %v3588_v14 = vld [vmem:[#allocation10 + $0xa0] sm:$0xff] }
 0x3dd   :  { %6570 = vmatprep.subr.bf16.mxu0 %v6569_v21  ;;  %v6605_v19 = vpack.c.bf16 %v3589_v17, %v3588_v14 }
 0x3df   :  { %2581 = vmatmul.mubr.f32.gmra.mrb[22].mxu0 %v7553_v42 }
 0x3e0   :  { %5289 = vmatprep.mubr.msk.f32.mxu0 %vm1288_vm3, %v7555_v43  ;;  %6572 = vmatpush3.bf16.msra.mxu0 %v6569_v21 }
 0x3e3   :  { %2586 = vmatmul.mubr.f32.gmra.mrb[24].mxu0 %v7560_v44 }
 0x3e4   :  { %5290 = vmatprep.mubr.msk.f32.mxu0 %vm1288_vm3, %v7562_v45 }
 0x3e7   :  { %2591 = vmatmul.mubr.f32.gmra.mrb[26].mxu0 %v7567_v46 }
 0x3e8   :  { %6105 = vmatprep.mubr.msk.f32.mxu0 %vm181_vm0, %v7754_v20 }
 0x3eb   :  { %6106 = vmatmul.mubr.msk.f32.vlgmr.msra.gmra.mrb[28].mxu0 %vm181_vm0, %v7763_v28 }
 0x3ec   :  { %6108 = vmatprep.mubr.msk.f32.mxu0 %vm181_vm0, %v7766_v29 }
 0x4ae   :  { %v2577_v40 = vpop.f32.mrb[20].mxu0 }
 0x4af   :  { %v2578_v61 = vadd.f32 %v5286_v60, %v2577_v40  ;;  %v2579_v62 = vpop.f32.mrb[21].mxu0 }
 0x4b1   :  { %6909 = vtanh.f32 %v2578_v61  ;;  %v2613_v61 = vmul.f32 %v7591_v36, %v2603_v55  ;;  %v3415_v55 = vld [vmem:[#allocation11 + $0x90] sm:$0xff] }
 0x4b2   :  { %v2582_v41 = vpop.f32.mrb[22].mxu0 }
 0x4b3   :  { %v2583_v42 = vadd.f32 %v5286_v60, %v2582_v41  ;;  %v2584_v63 = vpop.f32.mrb[23].mxu0 }
 0x4b5   :  { %6911 = vtanh.f32 %v2583_v42  ;;  %v2618_v42 = vsub.f32 1.0, %v7601_v5 }
 0x4b6   :  { %v2587_v43 = vpop.f32.mrb[24].mxu0 }
 0x4b7   :  { %v2588_v0 = vadd.f32 %v5286_v60, %v2587_v43  ;;  %v2589_v44 = vpop.f32.mrb[25].mxu0 }
 0x4b9   :  { %6913 = vtanh.f32 %v2588_v0 }
 0x4ba   :  { %v2592_v1 = vpop.f32.mrb[26].mxu0 }
 0x4bb   :  { %v6910_v45 = vpop.eup %6909  ;;  %v2593_v2 = vadd.f32 %v5286_v60, %v2592_v1  ;;  %v2594_v46 = vpop.f32.mrb[27].mxu0  ;;  %v2619_v1 = vsub.f32 1.0, %v7614_v12 }
 0x4bc   :  { %2624 = vrot.lane.b32.xlu0 %v6910_v45, %s7172_s3 }
 0x4bd   :  { %6915 = vtanh.f32 %v2593_v2 }
 0x4bf   :  { %v6912_v3 = vpop.eup %6911 }
 0x4c0   :  { %2626 = vrot.lane.b32.xlu1 %v6912_v3, %s7172_s3  ;;  %2604 = vrot.lane.b32.xlu0 %v7393_v15, %s7172_s3  ;;  %v3228_v15 = vld [vmem:[#allocation10 + $0x60] sm:$0xff]  ;;  %v2876_v3 = vld [vmem:[#allocation11 + $0x38] sm:$0xff] }
 0x4c1   :  { %v6573_v23 = vpack.c.bf16 %v3229_v16, %v3228_v15  ;;  %v3590_v15 = vld [vmem:[#allocation10 + $0xb0] sm:$0xff]  ;;  %v3591_v16 = vld [vmem:[#allocation10 + $0xb8] sm:$0xff] }
 0x4c3   :  { %v6914_v7 = vpop.eup %6913  ;;  %6574 = vmatprep.subr.bf16.mxu0 %v6573_v23 }
 0x4c4   :  { %2628 = vrot.lane.b32.xlu1 %v6914_v7, %s7172_s3  ;;  %2606 = vrot.lane.b32.xlu0 %v7408_v22, %s7172_s3  ;;  %v7772_v22 = vld [vmem:[#allocation2 + $0x38] sm:$0xff] }
 0x4c5   :  { %6576 = vmatpush3.bf16.msra.mxu0 %v6573_v23  ;;  %6025 = vmatmul.mubr.msk.f32.gmra.mrb[42].mxu1 %vm181_vm0, %v7772_v22  ;;  %v2871_v7 = vld [vmem:[#allocation10 + $0x38] sm:$0xff]  ;;  %v6609_v23 = vpack.c.bf16 %v3591_v16, %v3590_v15 }
 0x4c6   :  { %6109 = vmatmul.mubr.msk.f32.gmra.mrb[30].mxu0 %vm181_vm0, %v7772_v22  ;;  %6578 = vmatprep.subr.bf16.mxu0 %v6577_v37  ;;  %v6545_v27 = vpack.c.bf16 %v2871_v7, %v2870_v26 }
 0x4c7   :  { %v6916_v24 = vpop.eup %6915 }
 0x4c8   :  { %2630 = vrot.lane.b32.xlu1 %v6916_v24, %s7172_s3  ;;  %v3053_v24 = vld [vmem:[#allocation11 + $0x40] sm:$0xff] }
 0x4c9   :  { %6580 = vmatpush3.bf16.msra.mxu0 %v6577_v37  ;;  %v6549_v32 = vpack.c.bf16 %v3054_v30, %v3053_v24  ;;  %v3048_v37 = vld [vmem:[#allocation10 + $0x40] sm:$0xff] }
 0x4ca   :  { %6598 = vmatprep.subr.bf16.mxu0 %v6597_v54  ;;  %v6557_v39 = vpack.c.bf16 %v3049_v38, %v3048_v37  ;;  %v7914_v37 = vld [vmem:[#allocation5] sm:$0xff]  ;;  %v7917_v38 = vld [vmem:[#allocation5 + $0x18] sm:$0xff] }
 0x52e   :  { %v2625_v56 = vpop.permute.xlu0 %2624 }
 0x52f   :  { %v2636_v58 = vmul.f32 %v2625_v56, %v2616_v53  ;;  %v3414_v53 = vld [vmem:[#allocation11 + $0x88] sm:$0xff]  ;;  %v3416_v56 = vld [vmem:[#allocation11 + $0x98] sm:$0xff] }
 0x531   :  { %v2640_v59 = vadd.f32 %v2636_v58, %v2612_v57  ;;  %v6585_v57 = vpack.c.bf16 %v3416_v56, %v3415_v55  ;;  %v3408_v58 = vld [vmem:[#allocation10 + $0x80] sm:$0xff] }
 0x532   :  { %v2627_v60 = vpop.permute.xlu1 %2626  ;;  %v2605_v40 = vpop.permute.xlu0 %2604  ;;  %v4443_v55 = vld [vmem:[#allocation14 + $0x60] sm:$0xff] }
 0x533   :  { %v2637_v62 = vmul.f32 %v2627_v60, %v2617_v51  ;;  %2648 = vrot.lane.b32.xlu0 %v2640_v59, %s7173_s8  ;;  %v2614_v43 = vmul.f32 %v7601_v5, %v2605_v40  ;;  %v2875_v5 = vld [vmem:[#allocation11 + $0x30] sm:$0xff]  ;;  %v3409_v59 = vld [vmem:[#allocation10 + $0x88] sm:$0xff]  ;;  %v3411_v40 = vld [vmem:[#allocation10 + $0x98] sm:$0xff] }
 0x534   :  { %v6537_v8 = vpack.c.bf16 %v2876_v3, %v2875_v5  ;;  %v6589_v51 = vpack.c.bf16 %v3409_v59, %v3408_v58  ;;  %v3410_v60 = vld [vmem:[#allocation10 + $0x90] sm:$0xff] }
 0x535   :  { %v2641_v41 = vadd.f32 %v2637_v62, %v2613_v61  ;;  %v6593_v61 = vpack.c.bf16 %v3411_v40, %v3410_v60  ;;  %v7899_v62 = vld [vmem:[#allocation5 + $0x8] sm:$0xff]  ;;  %v3893_v59 = vld [vmem:[#allocation14 + $0x10] sm:$0xff] }
 0x536   :  { %v2629_v63 = vpop.permute.xlu1 %2628  ;;  %v2607_v0 = vpop.permute.xlu0 %2606  ;;  %v4445_v60 = vld [vmem:[#allocation14 + $0x70] sm:$0xff] }
 0x537   :  { %v2638_v31 = vmul.f32 %v2629_v63, %v2618_v42  ;;  %2650 = vrot.lane.b32.xlu1 %v2641_v41, %s7173_s8  ;;  %v2615_v36 = vmul.f32 %v7614_v12, %v2607_v0 }
 0x539   :  { %v2642_v44 = vadd.f32 %v2638_v31, %v2614_v43 }
 0x53a   :  { %v2631_v45 = vpop.permute.xlu1 %2630 }
 0x53b   :  { %v2639_v2 = vmul.f32 %v2631_v45, %v2619_v1  ;;  %2652 = vrot.lane.b32.xlu0 %v2642_v44, %s7173_s8 }
 0x53d   :  { %v2643_v46 = vadd.f32 %v2639_v2, %v2615_v36 }
 0x53f   :  { %2654 = vrot.lane.b32.xlu1 %v2643_v46, %s7173_s8  ;;  %5073 = vrot.lane.b32.xlu0 %v7754_v20, %s7172_s3 }
 0x543   :  { %5075 = vrot.lane.b32.xlu1 %v7763_v28, %s7172_s3  ;;  %5077 = vrot.lane.b32.xlu0 %v7766_v29, %s7172_s3 }
 0x547   :  { %5079 = vrot.lane.b32.xlu1 %v7772_v22, %s7172_s3 }
 0x5a5   :  { %v7802_v12 = vpop.permute.xlu0 %2648 }
 0x5a6   :  { %2660 = vst.msk [vmem:[#allocation16] sm:$0xff] %vm181_vm0, %v7802_v12  ;;  %6035 = vmatprep.mubr.msk.f32.mxu1 %vm181_vm0, %v7802_v12  ;;  %6119 = vmatprep.mubr.msk.f32.mxu0 %vm181_vm0, %v7802_v12 }
 0x5a9   :  { %v7810_v11 = vpop.permute.xlu1 %2650 }
 0x5aa   :  { %2661 = vst.msk [vmem:[#allocation16 + $0x8] sm:$0xff] %vm181_vm0, %v7810_v11  ;;  %6036 = vmatmul.mubr.msk.f32.vlgmr.msra.gmra.mrb[40].mxu1 %vm181_vm0, %v7810_v11  ;;  %6120 = vmatmul.mubr.msk.f32.vlgmr.msra.gmra.mrb[28].mxu0 %vm181_vm0, %v7810_v11 }
 0x5ab   :  { %6536 = vmatpush3.bf16.msra.mxu1 %v6533_v49  ;;  %6600 = vmatpush3.bf16.msra.mxu0 %v6597_v54  ;;  %v6561_v49 = vpack.c.bf16 %v3051_v48, %v3050_v47  ;;  %v6581_v54 = vpack.c.bf16 %v3414_v53, %v3413_v52  ;;  %v7924_v47 = vld [vmem:[#allocation5 + $0x28] sm:$0xff]  ;;  %v7928_v48 = vld [vmem:[#allocation5 + $0x20] sm:$0xff]  ;;  %v7935_v52 = vld [vmem:[#allocation5 + $0x30] sm:$0xff] }
 0x5ac   :  { %6538 = vmatprep.subr.bf16.mxu1 %v6537_v8  ;;  %6602 = vmatprep.subr.bf16.mxu0 %v6601_v9  ;;  %v3891_v53 = vld [vmem:[#allocation14] sm:$0xff] }
 0x5ad   :  { %v7818_v21 = vpop.permute.xlu0 %2652 }
 0x5ae   :  { %2662 = vst.msk [vmem:[#allocation16 + $0x10] sm:$0xff] %vm181_vm0, %v7818_v21  ;;  %6038 = vmatprep.mubr.msk.f32.mxu1 %vm181_vm0, %v7818_v21  ;;  %6122 = vmatprep.mubr.msk.f32.mxu0 %vm181_vm0, %v7818_v21 }
 0x5af   :  { %6540 = vmatpush3.bf16.msra.mxu1 %v6537_v8  ;;  %6604 = vmatpush3.bf16.msra.mxu0 %v6601_v9 }
 0x5b0   :  { %6542 = vmatprep.subr.bf16.mxu1 %v6541_v18  ;;  %6606 = vmatprep.subr.bf16.mxu0 %v6605_v19 }
 0x5b1   :  { %v7826_v25 = vpop.permute.xlu1 %2654 }
 0x5b2   :  { %2663 = vst.msk [vmem:[#allocation16 + $0x18] sm:$0xff] %vm181_vm0, %v7826_v25  ;;  %6039 = vmatmul.mubr.msk.f32.gmra.mrb[42].mxu1 %vm181_vm0, %v7826_v25  ;;  %6123 = vmatmul.mubr.msk.f32.gmra.mrb[30].mxu0 %vm181_vm0, %v7826_v25 }
 0x5b3   :  { %6049 = vmatprep.mubr.msk.f32.mxu1 %vm181_vm0, %v7754_v20  ;;  %6161 = vmatprep.mubr.msk.f32.mxu0 %vm181_vm0, %v7754_v20 }
 0x5b6   :  { %6050 = vmatmul.mubr.msk.f32.vlgmr.msra.gmra.mrb[44].mxu1 %vm181_vm0, %v7763_v28  ;;  %6162 = vmatmul.mubr.msk.f32.vlgmr.msra.gmra.mrb[32].mxu0 %vm181_vm0, %v7763_v28 }
 0x5b7   :  { %6544 = vmatpush3.bf16.msra.mxu1 %v6541_v18  ;;  %6608 = vmatpush3.bf16.msra.mxu0 %v6605_v19 }
 0x5b8   :  { %6052 = vmatprep.mubr.msk.f32.mxu1 %vm181_vm0, %v7766_v29  ;;  %6164 = vmatprep.mubr.msk.f32.mxu0 %vm181_vm0, %v7766_v29 }
 0x5b9   :  { %6546 = vmatprep.subr.bf16.mxu1 %v6545_v27  ;;  %6610 = vmatprep.subr.bf16.mxu0 %v6609_v23 }
 0x5ba   :  { %6053 = vmatmul.mubr.msk.f32.gmra.mrb[46].mxu1 %vm181_vm0, %v7772_v22  ;;  %6165 = vmatmul.mubr.msk.f32.gmra.mrb[34].mxu0 %vm181_vm0, %v7772_v22 }
 0x5bb   :  { %6548 = vmatpush3.bf16.msra.mxu1 %v6545_v27  ;;  %6063 = vmatprep.mubr.msk.f32.mxu1 %vm181_vm0, %v7802_v12 }
 0x5bc   :  { %6612 = vmatpush3.bf16.msra.mxu0 %v6609_v23  ;;  %6175 = vmatprep.mubr.msk.f32.mxu0 %vm181_vm0, %v7802_v12 }
 0x5bd   :  { %6550 = vmatprep.subr.bf16.mxu1 %v6549_v32 }
 0x5be   :  { %6064 = vmatmul.mubr.msk.f32.vlgmr.msra.gmra.mrb[44].mxu1 %vm181_vm0, %v7810_v11 }
 0x5bf   :  { %6176 = vmatmul.mubr.msk.f32.vlgmr.msra.gmra.mrb[32].mxu0 %vm181_vm0, %v7810_v11  ;;  %6066 = vmatprep.mubr.msk.f32.mxu1 %vm181_vm0, %v7818_v21 }
 0x5c0   :  { %6552 = vmatpush3.bf16.msra.mxu1 %v6549_v32  ;;  %6178 = vmatprep.mubr.msk.f32.mxu0 %vm181_vm0, %v7818_v21 }
 0x5c1   :  { %6554 = vmatprep.subr.bf16.mxu1 %v6553_v35 }
 0x5c2   :  { %6067 = vmatmul.mubr.msk.f32.gmra.mrb[46].mxu1 %vm181_vm0, %v7826_v25 }
 0x5c3   :  { %6179 = vmatmul.mubr.msk.f32.gmra.mrb[34].mxu0 %vm181_vm0, %v7826_v25  ;;  %6077 = vmatprep.mubr.msk.f32.mxu1 %vm181_vm0, %v7754_v20 }
 0x5c4   :  { %6556 = vmatpush3.bf16.msra.mxu1 %v6553_v35 }
 0x5c5   :  { %6558 = vmatprep.subr.bf16.mxu1 %v6557_v39 }
 0x5c7   :  { %6078 = vmatmul.mubr.msk.f32.vlgmr.msra.gmra.mrb[48].mxu1 %vm181_vm0, %v7763_v28 }
 0x5c8   :  { %6560 = vmatpush3.bf16.msra.mxu1 %v6557_v39  ;;  %6080 = vmatprep.mubr.msk.f32.mxu1 %vm181_vm0, %v7766_v29  ;;  %v7921_v39 = vld [vmem:[#allocation5 + $0x10] sm:$0xff] }
 0x5c9   :  { %6562 = vmatprep.subr.bf16.mxu1 %v6561_v49 }
 0x5cb   :  { %6081 = vmatmul.mubr.msk.f32.gmra.mrb[50].mxu1 %vm181_vm0, %v7772_v22 }
 0x5cc   :  { %6564 = vmatpush3.bf16.msra.mxu1 %v6561_v49  ;;  %6091 = vmatprep.mubr.msk.f32.mxu1 %vm181_vm0, %v7802_v12  ;;  %v7931_v49 = vld [vmem:[#allocation5 + $0x38] sm:$0xff] }
 0x5cd   :  { %6582 = vmatprep.subr.bf16.mxu1 %v6581_v54 }
 0x5cf   :  { %6092 = vmatmul.mubr.msk.f32.vlgmr.msra.gmra.mrb[48].mxu1 %vm181_vm0, %v7810_v11 }
 0x5d0   :  { %6094 = vmatprep.mubr.msk.f32.mxu1 %vm181_vm0, %v7818_v21  ;;  %6584 = vmatpush3.bf16.msra.mxu1 %v6581_v54  ;;  %v3892_v54 = vld [vmem:[#allocation14 + $0x8] sm:$0xff] }
 0x5d1   :  { %6586 = vmatprep.subr.bf16.mxu1 %v6585_v57  ;;  %v6649_v56 = vpack.c.bf16 %v3892_v54, %v3891_v53  ;;  %v4440_v53 = vld [vmem:[#allocation13 + $0x70] sm:$0xff]  ;;  %v4441_v54 = vld [vmem:[#allocation13 + $0x78] sm:$0xff] }
 0x5d3   :  { %6095 = vmatmul.mubr.msk.f32.gmra.mrb[50].mxu1 %vm181_vm0, %v7826_v25  ;;  %6650 = vmatprep.subr.bf16.mxu0 %v6649_v56 }
 0x5d4   :  { %6588 = vmatpush3.bf16.msra.mxu1 %v6585_v57  ;;  %6133 = vmatprep.mubr.msk.f32.mxu1 %vm181_vm0, %v7754_v20  ;;  %v4444_v57 = vld [vmem:[#allocation14 + $0x68] sm:$0xff] }
 0x5d5   :  { %6590 = vmatprep.subr.bf16.mxu1 %v6589_v51  ;;  %v6697_v58 = vpack.c.bf16 %v4444_v57, %v4443_v55  ;;  %6652 = vmatpush3.bf16.msra.mxu0 %v6649_v56 }
 0x5d7   :  { %6134 = vmatmul.mubr.msk.f32.vlgmr.msra.gmra.mrb[52].mxu1 %vm181_vm0, %v7763_v28 }
 0x5d8   :  { %6592 = vmatpush3.bf16.msra.mxu1 %v6589_v51  ;;  %6136 = vmatprep.mubr.msk.f32.mxu1 %vm181_vm0, %v7766_v29  ;;  %v3894_v51 = vld [vmem:[#allocation14 + $0x18] sm:$0xff] }
 0x5d9   :  { %6594 = vmatprep.subr.bf16.mxu1 %v6593_v61  ;;  %v6653_v40 = vpack.c.bf16 %v3894_v51, %v3893_v59  ;;  %v4084_v59 = vld [vmem:[#allocation14 + $0x28] sm:$0xff]  ;;  %v4803_v51 = vld [vmem:[#allocation14 + $0xa0] sm:$0xff] }
 0x5db   :  { %6137 = vmatmul.mubr.msk.f32.gmra.mrb[54].mxu1 %vm181_vm0, %v7772_v22  ;;  %6654 = vmatprep.subr.bf16.mxu0 %v6653_v40 }
 0x5dc   :  { %6596 = vmatpush3.bf16.msra.mxu1 %v6593_v61  ;;  %6147 = vmatprep.mubr.msk.f32.mxu1 %vm181_vm0, %v7802_v12  ;;  %v4446_v61 = vld [vmem:[#allocation14 + $0x78] sm:$0xff] }
 0x5dd   :  { %6613 = vmatprep.subr.bf16.mxu1 %v7171_v50  ;;  %6656 = vmatpush3.bf16.msra.mxu0 %v6653_v40 }
 0x5df   :  { %6148 = vmatmul.mubr.msk.f32.vlgmr.msra.gmra.mrb[52].mxu1 %vm181_vm0, %v7810_v11 }
 0x5e0   :  { %6150 = vmatprep.mubr.msk.f32.mxu1 %vm181_vm0, %v7818_v21 }
 0x5e3   :  { %6151 = vmatmul.mubr.msk.f32.gmra.mrb[54].mxu1 %vm181_vm0, %v7826_v25 }
 0x5e4   :  { %5340 = vmatprep.mubr.msk.f32.mxu1 %vm1288_vm3, %v7899_v62 }
 0x67d   :  { %v6037_v41 = vpop.f32.mrb[40].mxu1  ;;  %v6121_v42 = vpop.f32.mrb[28].mxu0 }
 0x67e   :  { %v2848_v63 = vpop.f32.mrb[41].mxu1  ;;  %v3388_v43 = vpop.f32.mrb[29].mxu0 }
 0x67f   :  { %v6614_v31 = vpack.c.bf16 %v6037_v41, %v2848_v63  ;;  %v6632_v0 = vpack.c.bf16 %v6121_v42, %v3388_v43  ;;  %v6701_v41 = vpack.c.bf16 %v4446_v61, %v4445_v60  ;;  %v3887_v42 = vld [vmem:[#allocation13] sm:$0xff]  ;;  %v3888_v63 = vld [vmem:[#allocation13 + $0x8] sm:$0xff] }
 0x680   :  { %v4438_v43 = vld [vmem:[#allocation13 + $0x60] sm:$0xff]  ;;  %v4804_v60 = vld [vmem:[#allocation14 + $0xa8] sm:$0xff] }
 0x681   :  { %6615 = vmatpush1.bf16.msra.mxu1 %v6614_v31  ;;  %v6657_v31 = vpack.c.bf16 %v3888_v63, %v3887_v42 }
 0x682   :  { %6616 = vmatprep.subr.bf16.mxu1 %v7171_v50 }
 0x683   :  { %6658 = vmatprep.subr.bf16.mxu0 %v6657_v31 }
 0x685   :  { %v6040_v44 = vpop.f32.mrb[42].mxu1  ;;  %v6124_v1 = vpop.f32.mrb[30].mxu0 }
 0x686   :  { %v2858_v45 = vpop.f32.mrb[43].mxu1  ;;  %v3398_v36 = vpop.f32.mrb[31].mxu0 }
 0x687   :  { %v6617_v2 = vpack.c.bf16 %v6040_v44, %v2858_v45  ;;  %v6635_v46 = vpack.c.bf16 %v6124_v1, %v3398_v36  ;;  %v5339_v1 = vld [vmem:[%s8134_s11] ss:$0 sm:$0xff] }
 0x689   :  { %6618 = vmatpush1.bf16.msra.mxu1 %v6617_v2 }
 0x68a   :  { %6619 = vmatprep.subr.bf16.mxu1 %v7171_v50 }
 0x691   :  { %v6065_v5 = vpop.f32.mrb[44].mxu1 }
 0x692   :  { %v6177_v3 = vpop.f32.mrb[32].mxu0  ;;  %v3028_v4 = vpop.f32.mrb[45].mxu1 }
 0x693   :  { %v6620_v6 = vpack.c.bf16 %v6065_v5, %v3028_v4  ;;  %v3748_v8 = vpop.f32.mrb[33].mxu0 }
 0x694   :  { %v6644_v9 = vpack.c.bf16 %v6177_v3, %v3748_v8 }
 0x695   :  { %v6068_v10 = vpop.f32.mrb[46].mxu1  ;;  %6621 = vmatpush1.bf16.msra.mxu1 %v6620_v6 }
 0x696   :  { %v6180_v13 = vpop.f32.mrb[34].mxu0  ;;  %v3038_v14 = vpop.f32.mrb[47].mxu1  ;;  %6622 = vmatprep.subr.bf16.mxu1 %v7171_v50 }
 0x697   :  { %v6623_v17 = vpack.c.bf16 %v6068_v10, %v3038_v14  ;;  %v3758_v18 = vpop.f32.mrb[35].mxu0 }
 0x698   :  { %v6647_v19 = vpack.c.bf16 %v6180_v13, %v3758_v18 }
 0x699   :  { %6624 = vmatpush1.bf16.msra.mxu1 %v6623_v17 }
 0x69a   :  { %6625 = vmatprep.subr.bf16.mxu1 %v7171_v50 }
 0x6a2   :  { %v6093_v26 = vpop.f32.mrb[48].mxu1 }
 0x6a3   :  { %v3208_v7 = vpop.f32.mrb[49].mxu1 }
 0x6a4   :  { %v6626_v15 = vpack.c.bf16 %v6093_v26, %v3208_v7 }
 0x6a6   :  { %v6096_v16 = vpop.f32.mrb[50].mxu1  ;;  %6627 = vmatpush1.bf16.msra.mxu1 %v6626_v15 }
 0x6a7   :  { %v3218_v27 = vpop.f32.mrb[51].mxu1  ;;  %6628 = vmatprep.subr.bf16.mxu1 %v7171_v50 }
 0x6a8   :  { %v6629_v23 = vpack.c.bf16 %v6096_v16, %v3218_v27 }
 0x6aa   :  { %6630 = vmatpush1.bf16.msra.mxu1 %v6629_v23 }
 0x6ab   :  { %6631 = vmatprep.subr.bf16.mxu1 %v7171_v50 }
 0x6ae   :  { %6633 = vmatpush1.bf16.msra.mxu1 %v6632_v0  ;;  %v4439_v0 = vld [vmem:[#allocation13 + $0x68] sm:$0xff] }
 0x6af   :  { %6634 = vmatprep.subr.bf16.mxu1 %v7171_v50  ;;  %v6705_v44 = vpack.c.bf16 %v4439_v0, %v4438_v43  ;;  %v4086_v43 = vld [vmem:[#allocation14 + $0x38] sm:$0xff] }
 0x6b0   :  { %v4806_v0 = vld [vmem:[#allocation14 + $0xb8] sm:$0xff] }
 0x6b2   :  { %v6149_v24 = vpop.f32.mrb[52].mxu1  ;;  %6636 = vmatpush1.bf16.msra.mxu1 %v6635_v46 }
 0x6b3   :  { %v3568_v30 = vpop.f32.mrb[53].mxu1  ;;  %6637 = vmatprep.subr.bf16.mxu1 %v7171_v50 }
 0x6b4   :  { %v6638_v32 = vpack.c.bf16 %v6149_v24, %v3568_v30 }
 0x6b6   :  { %v6152_v33 = vpop.f32.mrb[54].mxu1  ;;  %6639 = vmatpush1.bf16.msra.mxu1 %v6638_v32 }
 0x6b7   :  { %v3578_v34 = vpop.f32.mrb[55].mxu1  ;;  %6640 = vmatprep.subr.bf16.mxu1 %v7171_v50 }
 0x6b8   :  { %v6641_v35 = vpack.c.bf16 %v6152_v33, %v3578_v34  ;;  %v3889_v34 = vld [vmem:[#allocation13 + $0x10] sm:$0xff] }
 0x6ba   :  { %6642 = vmatpush1.bf16.msra.mxu1 %v6641_v35  ;;  %v3890_v35 = vld [vmem:[#allocation13 + $0x18] sm:$0xff] }
 0x6bb   :  { %6643 = vmatprep.subr.bf16.mxu1 %v7171_v50  ;;  %v6661_v57 = vpack.c.bf16 %v3890_v35, %v3889_v34  ;;  %v4624_v34 = vld [vmem:[#allocation14 + $0x88] sm:$0xff] }
 0x6be   :  { %6645 = vmatpush1.bf16.msra.mxu1 %v6644_v9 }
 0x6bf   :  { %6646 = vmatprep.subr.bf16.mxu1 %v7171_v50 }
 0x6c2   :  { %6648 = vmatpush1.bf16.msra.mxu1 %v6647_v19 }
 0x6c3   :  { %6698 = vmatprep.subr.bf16.mxu1 %v6697_v58 }
 0x6c5   :  { %3839 = vmatmul.mubr.f32.vlgmr.msra.gmra.mrb[56].mxu1 %v7914_v37 }
 0x6c6   :  { %5341 = vmatprep.mubr.msk.f32.mxu1 %vm1288_vm3, %v7917_v38  ;;  %6700 = vmatpush3.bf16.msra.mxu1 %v6697_v58  ;;  %v4083_v58 = vld [vmem:[#allocation14 + $0x20] sm:$0xff] }
 0x6c7   :  { %6702 = vmatprep.subr.bf16.mxu1 %v6701_v41  ;;  %v6665_v61 = vpack.c.bf16 %v4084_v59, %v4083_v58  ;;  %v4619_v58 = vld [vmem:[#allocation13 + $0x88] sm:$0xff] }
 0x6c9   :  { %3844 = vmatmul.mubr.f32.gmra.mrb[58].mxu1 %v7921_v39 }
 0x6ca   :  { %5342 = vmatprep.mubr.msk.f32.mxu1 %vm1288_vm3, %v7924_v47  ;;  %6704 = vmatpush3.bf16.msra.mxu1 %v6701_v41  ;;  %v6729_v41 = vpack.c.bf16 %v4804_v60, %v4803_v51  ;;  %v4620_v51 = vld [vmem:[#allocation13 + $0x90] sm:$0xff]  ;;  %v4621_v60 = vld [vmem:[#allocation13 + $0x98] sm:$0xff] }
 0x6cb   :  { %6706 = vmatprep.subr.bf16.mxu1 %v6705_v44 }
 0x6cd   :  { %3849 = vmatmul.mubr.f32.gmra.mrb[60].mxu1 %v7928_v48 }
 0x6ce   :  { %5343 = vmatprep.mubr.msk.f32.mxu1 %vm1288_vm3, %v7931_v49 }
 0x6d1   :  { %3854 = vmatmul.mubr.f32.gmra.mrb[62].mxu1 %v7935_v52 }
 0x798   :  { %v3840_v45 = vpop.f32.mrb[56].mxu1 }
 0x799   :  { %v3841_v36 = vadd.f32 %v5339_v1, %v3840_v45  ;;  %v3842_v2 = vpop.f32.mrb[57].mxu1  ;;  %v4079_v45 = vld [vmem:[#allocation13 + $0x28] sm:$0xff] }
 0x79a   :  { %v4799_v2 = vld [vmem:[#allocation13 + $0xa8] sm:$0xff] }
 0x79b   :  { %v5344_v46 = vmul.f32 -1.442695, %v3841_v36  ;;  %v4798_v36 = vld [vmem:[#allocation13 + $0xa0] sm:$0xff] }
 0x79c   :  { %v3845_v5 = vpop.f32.mrb[58].mxu1 }
 0x79d   :  { %6917 = vpow2.f32 %v5344_v46  ;;  %v3846_v3 = vadd.f32 %v5339_v1, %v3845_v5  ;;  %v3847_v4 = vpop.f32.mrb[59].mxu1  ;;  %v6737_v5 = vpack.c.bf16 %v4799_v2, %v4798_v36 }
 0x79e   :  { %v4081_v4 = vld [vmem:[#allocation13 + $0x38] sm:$0xff] }
 0x79f   :  { %v5345_v6 = vmul.f32 -1.442695, %v3846_v3  ;;  %v4080_v3 = vld [vmem:[#allocation13 + $0x30] sm:$0xff] }
 0x7a0   :  { %v3850_v8 = vpop.f32.mrb[60].mxu1 }
 0x7a1   :  { %6919 = vpow2.f32 %v5345_v6  ;;  %v3851_v9 = vadd.f32 %v5339_v1, %v3850_v8  ;;  %v3852_v10 = vpop.f32.mrb[61].mxu1  ;;  %v4800_v6 = vld [vmem:[#allocation13 + $0xb0] sm:$0xff]  ;;  %v4801_v8 = vld [vmem:[#allocation13 + $0xb8] sm:$0xff] }
 0x7a2   :  { %v6741_v10 = vpack.c.bf16 %v4801_v8, %v4800_v6 }
 0x7a3   :  { %v5346_v13 = vmul.f32 -1.442695, %v3851_v9  ;;  %v6677_v9 = vpack.c.bf16 %v4081_v4, %v4080_v3 }
 0x7a4   :  { %v3855_v14 = vpop.f32.mrb[62].mxu1 }
 0x7a5   :  { %6921 = vpow2.f32 %v5346_v13  ;;  %v3856_v17 = vadd.f32 %v5339_v1, %v3855_v14  ;;  %v3857_v18 = vpop.f32.mrb[63].mxu1  ;;  %v4078_v1 = vld [vmem:[#allocation13 + $0x20] sm:$0xff]  ;;  %v4264_v14 = vld [vmem:[#allocation14 + $0x48] sm:$0xff] }
 0x7a6   :  { %v6673_v46 = vpack.c.bf16 %v4079_v45, %v4078_v1  ;;  %v4263_v13 = vld [vmem:[#allocation14 + $0x40] sm:$0xff]  ;;  %v4265_v18 = vld [vmem:[#allocation14 + $0x50] sm:$0xff] }
 0x7a7   :  { %v6918_v19 = vpop.eup %6917  ;;  %v5347_v26 = vmul.f32 -1.442695, %v3856_v17  ;;  %v6681_v17 = vpack.c.bf16 %v4264_v14, %v4263_v13 }
 0x7a8   :  { %v3871_v7 = vadd.f32 1.0, %v6918_v19  ;;  %v4266_v19 = vld [vmem:[#allocation14 + $0x58] sm:$0xff] }
 0x7a9   :  { %6923 = vpow2.f32 %v5347_v26  ;;  %v6685_v26 = vpack.c.bf16 %v4266_v19, %v4265_v18 }
 0x7aa   :  { %6925 = vrcp.f32 %v3871_v7  ;;  %v4258_v7 = vld [vmem:[#allocation13 + $0x40] sm:$0xff] }
 0x7ab   :  { %v6920_v15 = vpop.eup %6919 }
 0x7ac   :  { %v3872_v16 = vadd.f32 1.0, %v6920_v15  ;;  %v4259_v15 = vld [vmem:[#allocation13 + $0x48] sm:$0xff] }
 0x7ae   :  { %6927 = vrcp.f32 %v3872_v16  ;;  %v6689_v16 = vpack.c.bf16 %v4259_v15, %v4258_v7 }
 0x7af   :  { %v6922_v27 = vpop.eup %6921 }
 0x7b0   :  { %v3873_v23 = vadd.f32 1.0, %v6922_v27  ;;  %v4260_v27 = vld [vmem:[#allocation13 + $0x50] sm:$0xff] }
 0x7b2   :  { %6929 = vrcp.f32 %v3873_v23  ;;  %v4261_v23 = vld [vmem:[#allocation13 + $0x58] sm:$0xff] }
 0x7b3   :  { %v6924_v24 = vpop.eup %6923 }
 0x7b4   :  { %v7941_v30 = vpop.eup %6925  ;;  %v3874_v32 = vadd.f32 1.0, %v6924_v24  ;;  %v6693_v24 = vpack.c.bf16 %v4261_v23, %v4260_v27 }
 0x7b5   :  { %v7945_v33 = vmul.f32 %v7941_v30, %v7754_v20  ;;  %v6709_v20 = vpack.c.bf16 %v4441_v54, %v4440_v53  ;;  %v4625_v53 = vld [vmem:[#allocation14 + $0x90] sm:$0xff]  ;;  %v4626_v54 = vld [vmem:[#allocation14 + $0x98] sm:$0xff] }
 0x7b6   :  { %6931 = vrcp.f32 %v3874_v32  ;;  %v4623_v32 = vld [vmem:[#allocation14 + $0x80] sm:$0xff] }
 0x7b7   :  { %6189 = vmatprep.mubr.msk.f32.mxu0 %vm181_vm0, %v7945_v33  ;;  %6273 = vmatprep.mubr.msk.f32.mxu1 %vm181_vm0, %v7945_v33  ;;  %v6713_v35 = vpack.c.bf16 %v4624_v34, %v4623_v32 }
 0x7b8   :  { %v7951_v55 = vpop.eup %6927 }
 0x7b9   :  { %v7955_v56 = vmul.f32 %v7951_v55, %v7763_v28 }
 0x7bb   :  { %6190 = vmatmul.mubr.msk.f32.vlgmr.msra.gmra.mrb[36].mxu0 %vm181_vm0, %v7955_v56  ;;  %6274 = vmatmul.mubr.msk.f32.vlgmr.msra.gmra.mrb[64].mxu1 %vm181_vm0, %v7955_v56 }
 0x7bc   :  { %v7961_v40 = vpop.eup %6929  ;;  %6660 = vmatpush3.bf16.msra.mxu0 %v6657_v31  ;;  %6708 = vmatpush3.bf16.msra.mxu1 %v6705_v44  ;;  %v4805_v31 = vld [vmem:[#allocation14 + $0xb0] sm:$0xff] }
 0x7bd   :  { %v7965_v28 = vmul.f32 %v7961_v40, %v7766_v29  ;;  %6662 = vmatprep.subr.bf16.mxu0 %v6661_v57  ;;  %6710 = vmatprep.subr.bf16.mxu1 %v6709_v20  ;;  %v4085_v29 = vld [vmem:[#allocation14 + $0x30] sm:$0xff]  ;;  %v6733_v44 = vpack.c.bf16 %v4806_v0, %v4805_v31 }
 0x7bf   :  { %6192 = vmatprep.mubr.msk.f32.mxu0 %vm181_vm0, %v7965_v28  ;;  %6276 = vmatprep.mubr.msk.f32.mxu1 %vm181_vm0, %v7965_v28 }
 0x7c0   :  { %v7971_v42 = vpop.eup %6931  ;;  %6664 = vmatpush3.bf16.msra.mxu0 %v6661_v57  ;;  %6712 = vmatpush3.bf16.msra.mxu1 %v6709_v20  ;;  %v6717_v57 = vpack.c.bf16 %v4626_v54, %v4625_v53  ;;  %v4618_v20 = vld [vmem:[#allocation13 + $0x80] sm:$0xff] }
 0x7c1   :  { %v7975_v63 = vmul.f32 %v7971_v42, %v7772_v22  ;;  %6666 = vmatprep.subr.bf16.mxu0 %v6665_v61  ;;  %6730 = vmatprep.subr.bf16.mxu1 %v6729_v41  ;;  %v6669_v22 = vpack.c.bf16 %v4086_v43, %v4085_v29  ;;  %v6721_v59 = vpack.c.bf16 %v4619_v58, %v4618_v20  ;;  %v5076_v20 = vpop.permute.xlu1 %5075 }
 0x7c3   :  { %6193 = vmatmul.mubr.msk.f32.gmra.mrb[38].mxu0 %vm181_vm0, %v7975_v63  ;;  %6277 = vmatmul.mubr.msk.f32.gmra.mrb[66].mxu1 %vm181_vm0, %v7975_v63 }
 0x7c4   :  { %6203 = vmatprep.mubr.msk.f32.mxu0 %vm181_vm0, %v7802_v12  ;;  %6287 = vmatprep.mubr.msk.f32.mxu1 %vm181_vm0, %v7802_v12 }
 0x7c7   :  { %6204 = vmatmul.mubr.msk.f32.vlgmr.msra.gmra.mrb[36].mxu0 %vm181_vm0, %v7810_v11  ;;  %6288 = vmatmul.mubr.msk.f32.vlgmr.msra.gmra.mrb[64].mxu1 %vm181_vm0, %v7810_v11 }
 0x7c8   :  { %6206 = vmatprep.mubr.msk.f32.mxu0 %vm181_vm0, %v7818_v21  ;;  %6668 = vmatpush3.bf16.msra.mxu0 %v6665_v61  ;;  %v6725_v61 = vpack.c.bf16 %v4621_v60, %v4620_v51  ;;  %v5080_v51 = vpop.permute.xlu1 %5079 }
 0x7c9   :  { %6290 = vmatprep.mubr.msk.f32.mxu1 %vm181_vm0, %v7818_v21  ;;  %6732 = vmatpush3.bf16.msra.mxu1 %v6729_v41 }
 0x7ca   :  { %6670 = vmatprep.subr.bf16.mxu0 %v6669_v22  ;;  %6734 = vmatprep.subr.bf16.mxu1 %v6733_v44 }
 0x7cb   :  { %6207 = vmatmul.mubr.msk.f32.gmra.mrb[38].mxu0 %vm181_vm0, %v7826_v25  ;;  %6291 = vmatmul.mubr.msk.f32.gmra.mrb[66].mxu1 %vm181_vm0, %v7826_v25 }
 0x7cc   :  { %6672 = vmatpush3.bf16.msra.mxu0 %v6669_v22  ;;  %6217 = vmatprep.mubr.msk.f32.mxu0 %vm181_vm0, %v7945_v33 }
 0x7cd   :  { %6736 = vmatpush3.bf16.msra.mxu1 %v6733_v44  ;;  %6329 = vmatprep.mubr.msk.f32.mxu1 %vm181_vm0, %v7945_v33 }
 0x7ce   :  { %6674 = vmatprep.subr.bf16.mxu0 %v6673_v46  ;;  %6738 = vmatprep.subr.bf16.mxu1 %v6737_v5 }
 0x7cf   :  { %6218 = vmatmul.mubr.msk.f32.vlgmr.msra.gmra.mrb[40].mxu0 %vm181_vm0, %v7955_v56 }
 0x7d0   :  { %6330 = vmatmul.mubr.msk.f32.vlgmr.msra.gmra.mrb[68].mxu1 %vm181_vm0, %v7955_v56  ;;  %6220 = vmatprep.mubr.msk.f32.mxu0 %vm181_vm0, %v7965_v28 }
 0x7d1   :  { %6676 = vmatpush3.bf16.msra.mxu0 %v6673_v46  ;;  %6332 = vmatprep.mubr.msk.f32.mxu1 %vm181_vm0, %v7965_v28 }
 0x7d2   :  { %6740 = vmatpush3.bf16.msra.mxu1 %v6737_v5  ;;  %6678 = vmatprep.subr.bf16.mxu0 %v6677_v9 }
 0x7d3   :  { %6221 = vmatmul.mubr.msk.f32.gmra.mrb[42].mxu0 %vm181_vm0, %v7975_v63  ;;  %6742 = vmatprep.subr.bf16.mxu1 %v6741_v10 }
 0x7d4   :  { %6333 = vmatmul.mubr.msk.f32.gmra.mrb[70].mxu1 %vm181_vm0, %v7975_v63  ;;  %6231 = vmatprep.mubr.msk.f32.mxu0 %vm181_vm0, %v7802_v12 }
 0x7d5   :  { %6680 = vmatpush3.bf16.msra.mxu0 %v6677_v9  ;;  %6343 = vmatprep.mubr.msk.f32.mxu1 %vm181_vm0, %v7802_v12 }
 0x7d6   :  { %6744 = vmatpush3.bf16.msra.mxu1 %v6741_v10  ;;  %6682 = vmatprep.subr.bf16.mxu0 %v6681_v17 }
 0x7d8   :  { %6232 = vmatmul.mubr.msk.f32.vlgmr.msra.gmra.mrb[40].mxu0 %vm181_vm0, %v7810_v11 }
 0x7d9   :  { %6344 = vmatmul.mubr.msk.f32.vlgmr.msra.gmra.mrb[68].mxu1 %vm181_vm0, %v7810_v11  ;;  %6234 = vmatprep.mubr.msk.f32.mxu0 %vm181_vm0, %v7818_v21 }
 0x7da   :  { %6684 = vmatpush3.bf16.msra.mxu0 %v6681_v17  ;;  %6346 = vmatprep.mubr.msk.f32.mxu1 %vm181_vm0, %v7818_v21 }
 0x7db   :  { %6686 = vmatprep.subr.bf16.mxu0 %v6685_v26 }
 0x7dc   :  { %6235 = vmatmul.mubr.msk.f32.gmra.mrb[42].mxu0 %vm181_vm0, %v7826_v25 }
 0x7dd   :  { %6347 = vmatmul.mubr.msk.f32.gmra.mrb[70].mxu1 %vm181_vm0, %v7826_v25  ;;  %6245 = vmatprep.mubr.msk.f32.mxu0 %vm181_vm0, %v7945_v33 }
 0x7de   :  { %6688 = vmatpush3.bf16.msra.mxu0 %v6685_v26 }
 0x7df   :  { %6690 = vmatprep.subr.bf16.mxu0 %v6689_v16 }
 0x7e1   :  { %6246 = vmatmul.mubr.msk.f32.vlgmr.msra.gmra.mrb[44].mxu0 %vm181_vm0, %v7955_v56 }
 0x7e2   :  { %6248 = vmatprep.mubr.msk.f32.mxu0 %vm181_vm0, %v7965_v28  ;;  %6692 = vmatpush3.bf16.msra.mxu0 %v6689_v16 }
 0x7e3   :  { %6694 = vmatprep.subr.bf16.mxu0 %v6693_v24 }
 0x7e5   :  { %6249 = vmatmul.mubr.msk.f32.gmra.mrb[46].mxu0 %vm181_vm0, %v7975_v63 }
 0x7e6   :  { %6696 = vmatpush3.bf16.msra.mxu0 %v6693_v24  ;;  %6259 = vmatprep.mubr.msk.f32.mxu0 %vm181_vm0, %v7802_v12 }
 0x7e7   :  { %6714 = vmatprep.subr.bf16.mxu0 %v6713_v35 }
 0x7e9   :  { %6260 = vmatmul.mubr.msk.f32.vlgmr.msra.gmra.mrb[44].mxu0 %vm181_vm0, %v7810_v11 }
 0x7ea   :  { %6262 = vmatprep.mubr.msk.f32.mxu0 %vm181_vm0, %v7818_v21  ;;  %6716 = vmatpush3.bf16.msra.mxu0 %v6713_v35 }
 0x7eb   :  { %6718 = vmatprep.subr.bf16.mxu0 %v6717_v57 }
 0x7ed   :  { %6263 = vmatmul.mubr.msk.f32.gmra.mrb[46].mxu0 %vm181_vm0, %v7826_v25 }
 0x7ee   :  { %6720 = vmatpush3.bf16.msra.mxu0 %v6717_v57  ;;  %6301 = vmatprep.mubr.msk.f32.mxu0 %vm181_vm0, %v7945_v33  ;;  %v5074_v57 = vpop.permute.xlu0 %5073 }
 0x7ef   :  { %6722 = vmatprep.subr.bf16.mxu0 %v6721_v59 }
 0x7f1   :  { %6302 = vmatmul.mubr.msk.f32.vlgmr.msra.gmra.mrb[48].mxu0 %vm181_vm0, %v7955_v56 }
 0x7f2   :  { %6304 = vmatprep.mubr.msk.f32.mxu0 %vm181_vm0, %v7965_v28  ;;  %6724 = vmatpush3.bf16.msra.mxu0 %v6721_v59  ;;  %v5078_v58 = vpop.permute.xlu0 %5077  ;;  %v5089_v59 = vsub.f32 1.0, %v7941_v30 }
 0x7f3   :  { %6726 = vmatprep.subr.bf16.mxu0 %v6725_v61 }
 0x7f5   :  { %6305 = vmatmul.mubr.msk.f32.gmra.mrb[50].mxu0 %vm181_vm0, %v7975_v63 }
 0x7f6   :  { %6728 = vmatpush3.bf16.msra.mxu0 %v6725_v61  ;;  %6315 = vmatprep.mubr.msk.f32.mxu0 %vm181_vm0, %v7802_v12  ;;  %v5085_v61 = vmul.f32 %v7941_v30, %v5074_v57 }
 0x7f7   :  { %6745 = vmatprep.subr.bf16.mxu0 %v7171_v50 }
 0x7f9   :  { %6316 = vmatmul.mubr.msk.f32.vlgmr.msra.gmra.mrb[48].mxu0 %vm181_vm0, %v7810_v11 }
 0x7fa   :  { %6318 = vmatprep.mubr.msk.f32.mxu0 %vm181_vm0, %v7818_v21 }
 0x7fd   :  { %6319 = vmatmul.mubr.msk.f32.gmra.mrb[50].mxu0 %vm181_vm0, %v7826_v25 }
 0x7fe   :  { %5397 = vmatprep.mubr.msk.f32.mxu0 %vm1288_vm3, %v7899_v62 }
 0x89a   :  { %v6205_v33 = vpop.f32.mrb[36].mxu0  ;;  %v6289_v56 = vpop.f32.mrb[64].mxu1 }
 0x89b   :  { %v4058_v28 = vpop.f32.mrb[37].mxu0  ;;  %v4598_v41 = vpop.f32.mrb[65].mxu1 }
 0x89c   :  { %v6746_v63 = vpack.c.bf16 %v6205_v33, %v4058_v28  ;;  %v6764_v12 = vpack.c.bf16 %v6289_v56, %v4598_v41  ;;  %v5090_v28 = vsub.f32 1.0, %v7951_v55 }
 0x89e   :  { %v6208_v29 = vpop.f32.mrb[38].mxu0  ;;  %v6292_v43 = vpop.f32.mrb[66].mxu1  ;;  %6747 = vmatpush1.bf16.msra.mxu0 %v6746_v63  ;;  %v5086_v63 = vmul.f32 %v7951_v55, %v5076_v20 }
 0x89f   :  { %v4068_v31 = vpop.f32.mrb[39].mxu0  ;;  %v4608_v11 = vpop.f32.mrb[67].mxu1  ;;  %6748 = vmatprep.subr.bf16.mxu0 %v7171_v50 }
 0x8a0   :  { %v6749_v21 = vpack.c.bf16 %v6208_v29, %v4068_v31  ;;  %v6767_v0 = vpack.c.bf16 %v6292_v43, %v4608_v11  ;;  %v5091_v43 = vsub.f32 1.0, %v7961_v40  ;;  %v5087_v11 = vmul.f32 %v7961_v40, %v5078_v58 }
 0x8a2   :  { %6750 = vmatpush1.bf16.msra.mxu0 %v6749_v21 }
 0x8a3   :  { %6751 = vmatprep.subr.bf16.mxu0 %v7171_v50 }
 0x8ab   :  { %v6233_v25 = vpop.f32.mrb[40].mxu0 }
 0x8ac   :  { %v6345_v62 = vpop.f32.mrb[68].mxu1  ;;  %v4238_v22 = vpop.f32.mrb[41].mxu0 }
 0x8ad   :  { %v6752_v44 = vpack.c.bf16 %v6233_v25, %v4238_v22  ;;  %v4958_v1 = vpop.f32.mrb[69].mxu1 }
 0x8ae   :  { %v6776_v45 = vpack.c.bf16 %v6345_v62, %v4958_v1  ;;  %v5088_v62 = vmul.f32 %v7971_v42, %v5080_v51 }
 0x8af   :  { %v6236_v36 = vpop.f32.mrb[42].mxu0  ;;  %6753 = vmatpush1.bf16.msra.mxu0 %v6752_v44 }
 0x8b0   :  { %v6348_v2 = vpop.f32.mrb[70].mxu1  ;;  %v4248_v46 = vpop.f32.mrb[43].mxu0  ;;  %6754 = vmatprep.subr.bf16.mxu0 %v7171_v50 }
 0x8b1   :  { %v6755_v5 = vpack.c.bf16 %v6236_v36, %v4248_v46  ;;  %v4968_v3 = vpop.f32.mrb[71].mxu1 }
 0x8b2   :  { %v6779_v4 = vpack.c.bf16 %v6348_v2, %v4968_v3 }
 0x8b3   :  { %6756 = vmatpush1.bf16.msra.mxu0 %v6755_v5 }
 0x8b4   :  { %6757 = vmatprep.subr.bf16.mxu0 %v7171_v50 }
 0x8bc   :  { %v6261_v6 = vpop.f32.mrb[44].mxu0 }
 0x8bd   :  { %v4418_v8 = vpop.f32.mrb[45].mxu0 }
 0x8be   :  { %v6758_v9 = vpack.c.bf16 %v6261_v6, %v4418_v8 }
 0x8c0   :  { %v6264_v10 = vpop.f32.mrb[46].mxu0  ;;  %6759 = vmatpush1.bf16.msra.mxu0 %v6758_v9 }
 0x8c1   :  { %v4428_v13 = vpop.f32.mrb[47].mxu0  ;;  %6760 = vmatprep.subr.bf16.mxu0 %v7171_v50 }
 0x8c2   :  { %v6761_v14 = vpack.c.bf16 %v6264_v10, %v4428_v13 }
 0x8c4   :  { %6762 = vmatpush1.bf16.msra.mxu0 %v6761_v14 }
 0x8c5   :  { %6763 = vmatprep.subr.bf16.mxu0 %v7171_v50 }
 0x8c8   :  { %6765 = vmatpush1.bf16.msra.mxu0 %v6764_v12 }
 0x8c9   :  { %6766 = vmatprep.subr.bf16.mxu0 %v7171_v50 }
 0x8cc   :  { %v6317_v17 = vpop.f32.mrb[48].mxu0  ;;  %6768 = vmatpush1.bf16.msra.mxu0 %v6767_v0  ;;  %v5092_v0 = vsub.f32 1.0, %v7971_v42 }
 0x8cd   :  { %v4778_v18 = vpop.f32.mrb[49].mxu0  ;;  %6769 = vmatprep.subr.bf16.mxu0 %v7171_v50 }
 0x8ce   :  { %v6770_v19 = vpack.c.bf16 %v6317_v17, %v4778_v18 }
 0x8d0   :  { %v6320_v26 = vpop.f32.mrb[50].mxu0  ;;  %6771 = vmatpush1.bf16.msra.mxu0 %v6770_v19 }
 0x8d1   :  { %v4788_v7 = vpop.f32.mrb[51].mxu0  ;;  %6772 = vmatprep.subr.bf16.mxu0 %v7171_v50 }
 0x8d2   :  { %v6773_v15 = vpack.c.bf16 %v6320_v26, %v4788_v7 }
 0x8d4   :  { %6774 = vmatpush1.bf16.msra.mxu0 %v6773_v15 }
 0x8d5   :  { %6775 = vmatprep.subr.bf16.mxu0 %v7171_v50 }
 0x8d8   :  { %6777 = vmatpush1.bf16.msra.mxu0 %v6776_v45 }
 0x8d9   :  { %6778 = vmatprep.subr.bf16.mxu0 %v7171_v50  ;;  %v5396_v50 = vld [vmem:[%s8137_s14] ss:$0 sm:$0xff]  ;;  %s7174_s14 = smov [#allocation16]  }
 0x8da   :  { %s5143_s0 = sshll.u32 %s7174_s14, 4  ;;  %s5144_s0 = int_to_ptr.vmem [resolvable:$true] %s5143_s0 }
 0x8db   :  { %s7125_s18 = scalar_lea.vmem %s5144_s0, 1024  ;;  %p7130_p9 = scmp.lt.s32.totalorder %s5144_s0, %s5144_s0 }
 0x8dc   :  { %6780 = vmatpush1.bf16.msra.mxu0 %v6779_v4  ;;  %p7126_p8 = scmp.ne.s32.totalorder %s5144_s0, %s7125_s18  ;;  %p7131_p10 = scmp.lt.s32.totalorder %s7125_s18, %s7125_s18 }
 0x8de   :  { %p7132_p11 = por %p7131_p10, %p7130_p9 }
 0x8df   :  { %5049 = vmatmul.mubr.f32.vlgmr.msra.gmra.mrb[52].mxu0 %v7914_v37 }
 0x8e0   :  { %5398 = vmatprep.mubr.msk.f32.mxu0 %vm1288_vm3, %v7917_v38  ;;  %p7133_p12 = pnand %p7132_p11, %p7126_p8 }
 0x8e3   :  { %5054 = vmatmul.mubr.f32.gmra.mrb[54].mxu0 %v7921_v39 }
 0x8e4   :  { %5399 = vmatprep.mubr.msk.f32.mxu0 %vm1288_vm3, %v7924_v47 }
 0x8e7   :  { %5059 = vmatmul.mubr.f32.gmra.mrb[56].mxu0 %v7928_v48 }
 0x8e8   :  { %5400 = vmatprep.mubr.msk.f32.mxu0 %vm1288_vm3, %v7931_v49 }
 0x8eb   :  { %5064 = vmatmul.mubr.f32.gmra.mrb[58].mxu0 %v7935_v52 }
 0x9b2   :  { %v5050_v37 = vpop.f32.mrb[52].mxu0 }
 0x9b3   :  { %v5051_v16 = vadd.f32 %v5396_v50, %v5050_v37  ;;  %v5052_v27 = vpop.f32.mrb[53].mxu0 }
 0x9b5   :  { %6933 = vtanh.f32 %v5051_v16 }
 0x9b6   :  { %v5055_v38 = vpop.f32.mrb[54].mxu0 }
 0x9b7   :  { %v5056_v39 = vadd.f32 %v5396_v50, %v5055_v38  ;;  %v5057_v23 = vpop.f32.mrb[55].mxu0 }
 0x9b9   :  { %6935 = vtanh.f32 %v5056_v39 }
 0x9ba   :  { %v5060_v47 = vpop.f32.mrb[56].mxu0 }
 0x9bb   :  { %v5061_v24 = vadd.f32 %v5396_v50, %v5060_v47  ;;  %v5062_v48 = vpop.f32.mrb[57].mxu0 }
 0x9bd   :  { %6937 = vtanh.f32 %v5061_v24 }
 0x9be   :  { %v5065_v32 = vpop.f32.mrb[58].mxu0 }
 0x9bf   :  { %v6934_v49 = vpop.eup %6933  ;;  %v5066_v34 = vadd.f32 %v5396_v50, %v5065_v32  ;;  %v5067_v52 = vpop.f32.mrb[59].mxu0 }
 0x9c0   :  { %5097 = vrot.lane.b32.xlu0 %v6934_v49, %s7172_s3 }
 0x9c1   :  { %6939 = vtanh.f32 %v5066_v34 }
 0x9c3   :  { %v6936_v35 = vpop.eup %6935 }
 0x9c4   :  { %5099 = vrot.lane.b32.xlu1 %v6936_v35, %s7172_s3 }
 0x9c7   :  { %v6938_v53 = vpop.eup %6937 }
 0x9c8   :  { %5101 = vrot.lane.b32.xlu0 %v6938_v53, %s7172_s3 }
 0x9cb   :  { %v6940_v54 = vpop.eup %6939 }
 0x9cc   :  { %5103 = vrot.lane.b32.xlu1 %v6940_v54, %s7172_s3 }
 0xa32   :  { %v5098_v60 = vpop.permute.xlu0 %5097 }
 0xa33   :  { %v5109_v33 = vmul.f32 %v5098_v60, %v5089_v59 }
 0xa35   :  { %v5113_v56 = vadd.f32 %v5109_v33, %v5085_v61 }
 0xa36   :  { %v5100_v41 = vpop.permute.xlu1 %5099 }
 0xa37   :  { %v5110_v12 = vmul.f32 %v5100_v41, %v5090_v28  ;;  %5121 = vrot.lane.b32.xlu0 %v5113_v56, %s7173_s8 }
 0xa39   :  { %v5114_v29 = vadd.f32 %v5110_v12, %v5086_v63 }
 0xa3a   :  { %v5102_v31 = vpop.permute.xlu0 %5101 }
 0xa3b   :  { %v5111_v21 = vmul.f32 %v5102_v31, %v5091_v43  ;;  %5123 = vrot.lane.b32.xlu1 %v5114_v29, %s7173_s8 }
 0xa3d   :  { %v5115_v30 = vadd.f32 %v5111_v21, %v5087_v11 }
 0xa3e   :  { %v5104_v25 = vpop.permute.xlu1 %5103 }
 0xa3f   :  { %v5112_v22 = vmul.f32 %v5104_v25, %v5092_v0  ;;  %5125 = vrot.lane.b32.xlu0 %v5115_v30, %s7173_s8 }
 0xa41   :  { %v5116_v55 = vadd.f32 %v5112_v22, %v5088_v62 }
 0xa43   :  { %5127 = vrot.lane.b32.xlu1 %v5116_v55, %s7173_s8 }
 0xaa9   :  { %v5122_v44 = vpop.permute.xlu0 %5121 }
 0xaaa   :  { %5134 = vst.msk [vmem:[#allocation16 + $0x20] sm:$0xff] %vm181_vm0, %v5122_v44 }
 0xaad   :  { %v5124_v1 = vpop.permute.xlu1 %5123 }
 0xaae   :  { %5135 = vst.msk [vmem:[#allocation16 + $0x28] sm:$0xff] %vm181_vm0, %v5124_v1 }
 0xab1   :  { %v5126_v40 = vpop.permute.xlu0 %5125 }
 0xab2   :  { %5136 = vst.msk [vmem:[#allocation16 + $0x30] sm:$0xff] %vm181_vm0, %v5126_v40 }
 0xab5   :  { %v5128_v45 = vpop.permute.xlu1 %5127 }
 0xab6   :  { %5137 = vst.msk [vmem:[#allocation16 + $0x38] sm:$0xff] %vm181_vm0, %v5128_v45 }
 0xab7   :  { %7136 = shalt.err (!%p7133_p12)
}
 0xab8   :  { %s8141_s29 = sld [smem:[#allocation23_spill]] }
 0xabe   :  { %s7137_s2 = scalar_lea.hbm %s8141_s29, 1024 }
 0xabf   :  { %p7138_p13 = scmp.ne.s32.totalorder %s8141_s29, %s7137_s2  ;;  %p7141_p0 = scmp.lt.u32.totalorder %s7137_s2, %s8141_s29 }
 0xac1   :  { %p7143_p1 = pnand %p7141_p0, %p7138_p13 }
 0xac3   :  { %7146 = shalt.err (!%p7143_p1)
}
 0xac4   :  { %5149 = dma.vmem_to_hbm [thread:$0]  %s5144_s0, 1024, %s8141_s29, [#allocation4], %s7164_s19, %s7164_s19, %s7165_s28  }
 0xac5   :  { %7157 = dma.done.wait [#allocation4], 1024  }
 0xac6   :  { %7158 = vsyncadd [#allocation4], 4294966272 }
 0xac7   :  { %5153 = vsyncpa [#allocation3], 1 }
 0xac8   :  { %5154 = vsyncpa [#allocation6], 1 }
 0xac9   :  { %5155 = vsyncpa [#allocation9], 1 }
 0xaca   :  { %5156 = vsyncpa [#allocation12], 1 }
 0xacb   :  { %5157 = vsyncpa [#allocation15], 1 }
 0xacc   :  { %5158 = vsyncpa [#allocation4], 1 }

</bundles_post_ra>
